<compile_context>
chip_gen: v7x
topology: tpu7x:2x2x1
jax: 0.10.0
libtpu: 0.0.40
codegen_flags: <defaults>
</compile_context>

<pallas_src>
import math
from functools import partial

import jax
import jax.numpy as jnp
from jax.experimental import pallas as pl
from jax.experimental.pallas import tpu as pltpu

# ----------------------------- model config (small, synthetic) ---------------
IMG = 16          # image size (reference uses 224; scaled down)
PATCH = 4         # patch size (reference 16)
IN_CHANS = 3
EMBED = 64        # embed_dim (reference 768)
DEPTH = 2         # depth (reference 12)
HEADS = 4         # num_heads (reference 12)
MLP_RATIO = 4
NUM_CLASSES = 10
LN_EPS = 1e-6     # timm ViT LayerNorm eps

DH = EMBED // HEADS
HID = EMBED * MLP_RATIO
N_PATCH = (IMG // PATCH) ** 2
S = N_PATCH + 1                  # tokens incl. CLS
SP = 24                          # tokens padded to a multiple of 8 sublanes
CPP = IN_CHANS * PATCH * PATCH
NPAD = 128                       # lane-dense classifier output width
NEG_INF = -1e30


# ----------------------------- fused Pallas kernel ----------------------------
def _vit_fused_kernel(patches_ref, patch_w_ref, tok_add_ref,
                      ln1_g_ref, ln1_b_ref, qkv_w_ref, qkv_b_ref,
                      proj_w_ref, proj_b_ref, ln2_g_ref, ln2_b_ref,
                      fc1_w_ref, fc1_b_ref, fc2_w_ref, fc2_b_ref,
                      norm_g_ref, norm_b_ref, last_w_ref, last_b_ref,
                      logits_ref, cls_ref):
    f32 = jnp.float32
    bf16 = jnp.bfloat16
    nb = patches_ref.shape[0] // SP          # batch folded into matmul rows

    def mm(a_bf16, w_bf16):                  # bf16 MXU operands, f32 accumulation
        return jnp.dot(a_bf16, w_bf16, preferred_element_type=f32)

    def ln(z, g, b):
        # single-pass stats: two independent XLU reductions, var = E[x^2] - mean^2
        mu = jnp.mean(z, axis=-1, keepdims=True)
        m2 = jnp.mean(z * z, axis=-1, keepdims=True)
        var = jnp.maximum(m2 - mu * mu, 0.0)
        return (z - mu) * jax.lax.rsqrt(var + LN_EPS) * g + b

    def gelu(z):
        # tanh-approx GELU (EUP tanh); deviation vs exact erf-GELU ~3e-4 abs
        return 0.5 * z * (1.0 + jnp.tanh(0.7978845608028654 *
                                         (z + 0.044715 * z * z * z)))

    # key-padding mask: per-sample columns >= S are token padding
    col = jax.lax.broadcasted_iota(jnp.int32, (1, SP), 1)
    kmask = jnp.where(col < S, 0.0, NEG_INF).astype(f32)

    # ---- patch embed + (cls token / pos embed / patch bias) additive ----
    # patches: per sample, row 0 is a zero dummy patch (CLS), rows >= S are padding
    x = mm(patches_ref[...], patch_w_ref[...]) + tok_add_ref[...]    # (nb*SP, D) f32

    for d in range(DEPTH):                                           # static unroll
        # ---- pre-norm multi-head self-attention ----
        h = ln(x, ln1_g_ref[d], ln1_b_ref[d])
        # Q slice of qkv_w / qkv_b is pre-scaled by 1/sqrt(DH) in the wrapper
        qkv = mm(h.astype(bf16), qkv_w_ref[d]) + qkv_b_ref[d]        # (nb*SP, 3D) f32
        attn_rows = []
        for b in range(nb):                                          # per-sample attention
            r0 = b * SP
            q_s = qkv[r0:r0 + SP, 0:EMBED].astype(bf16)              # (SP, D)
            kT = qkv[r0:r0 + SP, EMBED:2 * EMBED].T.astype(bf16)     # (D, SP), hoisted transpose
            v_s = qkv[r0:r0 + SP, 2 * EMBED:3 * EMBED].astype(bf16)  # (SP, D)
            head_outs = []
            for hd in range(HEADS):
                c = hd * DH
                s = mm(q_s[:, c:c + DH], kT[c:c + DH, :]) + kmask    # (SP, SP) f32
                s = s - jnp.max(s, axis=-1, keepdims=True)
                e = jnp.exp(s)
                p = e * pl.reciprocal(jnp.sum(e, axis=-1, keepdims=True), approx=True)
                head_outs.append(mm(p.astype(bf16), v_s[:, c:c + DH]))   # (SP, DH)
            attn_rows.append(jnp.concatenate(head_outs, axis=-1))    # (SP, D)
        attn = jnp.concatenate(attn_rows, axis=0)                    # (nb*SP, D)
        # merged head projection: one K=EMBED matmul; bias fused with residual add
        x = x + mm(attn.astype(bf16), proj_w_ref[d]) + proj_b_ref[d]

        # ---- pre-norm MLP ----
        h = ln(x, ln2_g_ref[d], ln2_b_ref[d])
        h = gelu(mm(h.astype(bf16), fc1_w_ref[d]) + fc1_b_ref[d])    # (nb*SP, 4D)
        x = x + mm(h.astype(bf16), fc2_w_ref[d]) + fc2_b_ref[d]

    # ---- final LayerNorm on the CLS rows + lane-padded classifier ----
    cls_rows = jnp.concatenate([x[b * SP:b * SP + 1, :] for b in range(nb)], axis=0)
    cls_tok = ln(cls_rows, norm_g_ref[...], norm_b_ref[...])         # (nb, D)
    cls_ref[...] = cls_tok.astype(cls_ref.dtype)
    logits_ref[...] = (mm(cls_tok.astype(bf16), last_w_ref[...]) + last_b_ref[...]
                       ).astype(logits_ref.dtype)


# ----------------------------- parameter init --------------------------------
def init_params(key):
    n_rand = 4 + 4 * DEPTH
    keys = iter(jax.random.split(key, n_rand))
    nrm = lambda shape, s=0.02: s * jax.random.normal(next(keys), shape, jnp.float32)
    stack_nrm = lambda shape: jnp.stack([nrm(shape) for _ in range(DEPTH)])

    params = {
        # patch-embed conv (EMBED, C, p, p) stored flattened as (C*p*p, EMBED)
        "patch_w": nrm((CPP, EMBED)),
        "patch_b": jnp.zeros((EMBED,), jnp.float32),
        "cls_token": nrm((1, 1, EMBED)),
        "pos_embed": nrm((1, S, EMBED)),
        # per-block weights stacked over DEPTH
        "ln1_g": jnp.ones((DEPTH, 1, EMBED), jnp.float32),
        "ln1_b": jnp.zeros((DEPTH, 1, EMBED), jnp.float32),
        "qkv_w": stack_nrm((EMBED, 3 * EMBED)),
        "qkv_b": jnp.zeros((DEPTH, 1, 3 * EMBED), jnp.float32),
        "proj_w": stack_nrm((EMBED, EMBED)),
        "proj_b": jnp.zeros((DEPTH, 1, EMBED), jnp.float32),
        "ln2_g": jnp.ones((DEPTH, 1, EMBED), jnp.float32),
        "ln2_b": jnp.zeros((DEPTH, 1, EMBED), jnp.float32),
        "fc1_w": stack_nrm((EMBED, HID)),
        "fc1_b": jnp.zeros((DEPTH, 1, HID), jnp.float32),
        "fc2_w": stack_nrm((HID, EMBED)),
        "fc2_b": jnp.zeros((DEPTH, 1, EMBED), jnp.float32),
        # final norm + classifier
        "norm_g": jnp.ones((1, EMBED), jnp.float32),
        "norm_b": jnp.zeros((1, EMBED), jnp.float32),
        "last_w": nrm((EMBED, NUM_CLASSES)),
        "last_b": jnp.zeros((NUM_CLASSES,), jnp.float32),
    }
    return params


def _prep_weights(params):
    """Fold constants and pre-cast MXU weights to bf16 (runs once under jit)."""
    bf16 = jnp.bfloat16
    scale = 1.0 / math.sqrt(DH)
    # fold attention scale into the Q slice of the QKV projection
    qkv_w = params["qkv_w"].at[:, :, :EMBED].multiply(scale)
    qkv_b = params["qkv_b"].at[:, :, :EMBED].multiply(scale)

    # additive term per token row: CLS row gets cls_token + pos[0]; patch rows get
    # pos[1:] + conv bias; padded rows get 0.
    pos = params["pos_embed"].reshape(S, EMBED)
    tok_add = jnp.concatenate(
        [params["cls_token"].reshape(1, EMBED) + pos[:1],
         pos[1:] + params["patch_b"].reshape(1, EMBED),
         jnp.zeros((SP - S, EMBED), jnp.float32)], axis=0)           # (SP, D)

    # lane-dense classifier: pad 10 -> 128 output lanes
    last_w = jnp.zeros((EMBED, NPAD), jnp.float32).at[:, :NUM_CLASSES].set(params["last_w"])
    last_b = jnp.zeros((1, NPAD), jnp.float32).at[:, :NUM_CLASSES].set(
        params["last_b"].reshape(1, NUM_CLASSES))

    return dict(
        patch_w=params["patch_w"].astype(bf16), tok_add=tok_add,
        ln1_g=params["ln1_g"], ln1_b=params["ln1_b"],
        qkv_w=qkv_w.astype(bf16), qkv_b=qkv_b,
        proj_w=params["proj_w"].astype(bf16), proj_b=params["proj_b"],
        ln2_g=params["ln2_g"], ln2_b=params["ln2_b"],
        fc1_w=params["fc1_w"].astype(bf16), fc1_b=params["fc1_b"],
        fc2_w=params["fc2_w"].astype(bf16), fc2_b=params["fc2_b"],
        norm_g=params["norm_g"], norm_b=params["norm_b"],
        last_w=last_w.astype(bf16), last_b=last_b,
    )


# ----------------------------- forward pass -----------------------------------
@partial(jax.jit, static_argnames=("pen",))
def vitzoo_forward(x, params, pen=False):
    """x: (B, C, H, W) NCHW float32 -> logits (B, NUM_CLASSES) (or CLS feats if pen)."""
    B, C, H, W = x.shape
    p = PATCH
    nH, nW = H // p, W // p
    N = nH * nW

    w = _prep_weights(params)

    # ---- patchify (pure data movement, stays in XLA), pad tokens S -> SP ----
    patches = x.reshape(B, C, nH, p, nW, p).transpose(0, 2, 4, 1, 3, 5).reshape(B, N, CPP)
    patches = jnp.concatenate(
        [jnp.zeros((B, 1, CPP), patches.dtype),     # zero dummy "patch" for CLS slot
         patches,
         jnp.zeros((B, SP - S, CPP), patches.dtype)], axis=1)        # (B, SP, CPP)
    # fold batch into matmul rows; bf16 MXU operand
    patches = patches.reshape(B * SP, CPP).astype(jnp.bfloat16)
    tok_add = jnp.tile(w["tok_add"], (B, 1))                         # (B*SP, D)

    args = (patches, w["patch_w"], tok_add,
            w["ln1_g"], w["ln1_b"], w["qkv_w"], w["qkv_b"],
            w["proj_w"], w["proj_b"], w["ln2_g"], w["ln2_b"],
            w["fc1_w"], w["fc1_b"], w["fc2_w"], w["fc2_b"],
            w["norm_g"], w["norm_b"], w["last_w"], w["last_b"])

    vmem = pl.BlockSpec(memory_space=pltpu.MemorySpace.VMEM)
    logits_pad, cls_feat = pl.pallas_call(
        _vit_fused_kernel,
        # single invocation (no grid): whole model + activations stay VMEM-resident
        in_specs=[vmem] * len(args),
        out_specs=(vmem, vmem),
        out_shape=(jax.ShapeDtypeStruct((B, NPAD), jnp.float32),
                   jax.ShapeDtypeStruct((B, EMBED), jnp.float32)),
    )(*args)

    if pen:
        return cls_feat                                              # post-norm CLS
    return logits_pad[:, :NUM_CLASSES]                               # self.last(out)


# ----------------------------- main -------------------------------------------
if __name__ == "__main__":
    key = jax.random.PRNGKey(0)
    pkey, xkey = jax.random.split(key)
    params = init_params(pkey)
    x = jax.random.normal(xkey, (2, IN_CHANS, IMG, IMG), jnp.float32)  # NCHW

    logits = vitzoo_forward(x, params)
    jax.block_until_ready(logits)
    assert logits.shape == (2, NUM_CLASSES)
    assert bool(jnp.all(jnp.isfinite(logits)))
    print("KERNEL_OK")
</pallas_src>

<mosaic_0001>
module attributes {stable_mosaic.version = 11 : i64} {
  func.func @_vit_fused_kernel(%arg0: memref<48x48xbf16, #tpu.memory_space<vmem>>, %arg1: memref<48x64xbf16, #tpu.memory_space<vmem>>, %arg2: memref<48x64xf32, #tpu.memory_space<vmem>>, %arg3: memref<2x1x64xf32, #tpu.memory_space<vmem>>, %arg4: memref<2x1x64xf32, #tpu.memory_space<vmem>>, %arg5: memref<2x64x192xbf16, #tpu.memory_space<vmem>>, %arg6: memref<2x1x192xf32, #tpu.memory_space<vmem>>, %arg7: memref<2x64x64xbf16, #tpu.memory_space<vmem>>, %arg8: memref<2x1x64xf32, #tpu.memory_space<vmem>>, %arg9: memref<2x1x64xf32, #tpu.memory_space<vmem>>, %arg10: memref<2x1x64xf32, #tpu.memory_space<vmem>>, %arg11: memref<2x64x256xbf16, #tpu.memory_space<vmem>>, %arg12: memref<2x1x256xf32, #tpu.memory_space<vmem>>, %arg13: memref<2x256x64xbf16, #tpu.memory_space<vmem>>, %arg14: memref<2x1x64xf32, #tpu.memory_space<vmem>>, %arg15: memref<1x64xf32, #tpu.memory_space<vmem>>, %arg16: memref<1x64xf32, #tpu.memory_space<vmem>>, %arg17: memref<64x128xbf16, #tpu.memory_space<vmem>>, %arg18: memref<1x128xf32, #tpu.memory_space<vmem>>, %arg19: memref<2x128xf32, #tpu.memory_space<vmem>>, %arg20: memref<2x64xf32, #tpu.memory_space<vmem>>) attributes {dimension_semantics = [], scalar_prefetch = 0 : i64, scratch_operands = 0 : i64, tpu.core_type = #tpu.core_type<tc>} {
    %0 = tpu.iota {dimensions = array<i32: 1>} : vector<1x24xi32>
    %c17_i32 = arith.constant 17 : i32
    %1 = vector.broadcast %c17_i32 : i32 to vector<1x24xi32>
    %2 = arith.cmpi slt, %0, %1 : vector<1x24xi32>
    %cst = arith.constant 0.000000e+00 : f32
    %cst_0 = arith.constant -1.000000e+30 : f32
    %3 = vector.broadcast %cst : f32 to vector<1x24xf32>
    %4 = vector.broadcast %cst_0 : f32 to vector<1x24xf32>
    %5 = arith.select %2, %3, %4 : vector<1x24xi1>, vector<1x24xf32>
    %c0 = arith.constant 0 : index
    %c0_1 = arith.constant 0 : index
    %6 = vector.load %arg0[%c0, %c0_1] : memref<48x48xbf16, #tpu.memory_space<vmem>>, vector<48x48xbf16>
    %c0_2 = arith.constant 0 : index
    %c0_3 = arith.constant 0 : index
    %7 = vector.load %arg1[%c0_2, %c0_3] : memref<48x64xbf16, #tpu.memory_space<vmem>>, vector<48x64xbf16>
    %cst_4 = arith.constant dense<0.000000e+00> : vector<48x64xf32>
    %8 = tpu.matmul %6, %7, %cst_4 {dimension_numbers = #tpu.dot_dimension_numbers<[1], [0], [0], [1], [0, 0, 1, 1], [], []>} : vector<48x48xbf16>, vector<48x64xbf16>, vector<48x64xf32> -> vector<48x64xf32>
    %c0_5 = arith.constant 0 : index
    %c0_6 = arith.constant 0 : index
    %9 = vector.load %arg2[%c0_5, %c0_6] : memref<48x64xf32, #tpu.memory_space<vmem>>, vector<48x64xf32>
    %10 = arith.addf %8, %9 : vector<48x64xf32>
    %c0_7 = arith.constant 0 : index
    %c0_8 = arith.constant 0 : index
    %c0_9 = arith.constant 0 : index
    %11 = vector.load %arg3[%c0_7, %c0_8, %c0_9] : memref<2x1x64xf32, #tpu.memory_space<vmem>>, vector<1x1x64xf32>
    %12 = vector.shape_cast %11 : vector<1x1x64xf32> to vector<1x64xf32>
    %c0_10 = arith.constant 0 : index
    %c0_11 = arith.constant 0 : index
    %c0_12 = arith.constant 0 : index
    %13 = vector.load %arg4[%c0_10, %c0_11, %c0_12] : memref<2x1x64xf32, #tpu.memory_space<vmem>>, vector<1x1x64xf32>
    %14 = vector.shape_cast %13 : vector<1x1x64xf32> to vector<1x64xf32>
    %cst_13 = arith.constant dense<0.000000e+00> : vector<48xf32>
    %15 = vector.multi_reduction <add>, %10, %cst_13 [1] : vector<48x64xf32> to vector<48xf32>
    %16 = vector.shape_cast %15 : vector<48xf32> to vector<48x1xf32>
    %cst_14 = arith.constant 6.400000e+01 : f32
    %17 = vector.broadcast %cst_14 : f32 to vector<48x1xf32>
    %18 = arith.divf %16, %17 : vector<48x1xf32>
    %19 = arith.mulf %10, %10 : vector<48x64xf32>
    %cst_15 = arith.constant dense<0.000000e+00> : vector<48xf32>
    %20 = vector.multi_reduction <add>, %19, %cst_15 [1] : vector<48x64xf32> to vector<48xf32>
    %21 = vector.shape_cast %20 : vector<48xf32> to vector<48x1xf32>
    %cst_16 = arith.constant 6.400000e+01 : f32
    %22 = vector.broadcast %cst_16 : f32 to vector<48x1xf32>
    %23 = arith.divf %21, %22 : vector<48x1xf32>
    %24 = arith.mulf %18, %18 : vector<48x1xf32>
    %25 = arith.subf %23, %24 : vector<48x1xf32>
    %cst_17 = arith.constant 0.000000e+00 : f32
    %26 = vector.broadcast %cst_17 : f32 to vector<48x1xf32>
    %27 = arith.maximumf %25, %26 : vector<48x1xf32>
    %28 = vector.broadcast %18 : vector<48x1xf32> to vector<48x64xf32>
    %29 = arith.subf %10, %28 : vector<48x64xf32>
    %cst_18 = arith.constant 9.99999997E-7 : f32
    %30 = vector.broadcast %cst_18 : f32 to vector<48x1xf32>
    %31 = arith.addf %27, %30 : vector<48x1xf32>
    %32 = math.rsqrt %31 : vector<48x1xf32>
    %33 = vector.broadcast %32 : vector<48x1xf32> to vector<48x64xf32>
    %34 = arith.mulf %29, %33 : vector<48x64xf32>
    %35 = vector.broadcast %12 : vector<1x64xf32> to vector<48x64xf32>
    %36 = arith.mulf %34, %35 : vector<48x64xf32>
    %37 = vector.broadcast %14 : vector<1x64xf32> to vector<48x64xf32>
    %38 = arith.addf %36, %37 : vector<48x64xf32>
    %39 = arith.truncf %38 : vector<48x64xf32> to vector<48x64xbf16>
    %c0_19 = arith.constant 0 : index
    %c0_20 = arith.constant 0 : index
    %c0_21 = arith.constant 0 : index
    %40 = vector.load %arg5[%c0_19, %c0_20, %c0_21] : memref<2x64x192xbf16, #tpu.memory_space<vmem>>, vector<1x64x192xbf16>
    %41 = vector.shape_cast %40 : vector<1x64x192xbf16> to vector<64x192xbf16>
    %cst_22 = arith.constant dense<0.000000e+00> : vector<48x192xf32>
    %42 = tpu.matmul %39, %41, %cst_22 {dimension_numbers = #tpu.dot_dimension_numbers<[1], [0], [0], [1], [0, 0, 1, 1], [], []>} : vector<48x64xbf16>, vector<64x192xbf16>, vector<48x192xf32> -> vector<48x192xf32>
    %c0_23 = arith.constant 0 : index
    %c0_24 = arith.constant 0 : index
    %c0_25 = arith.constant 0 : index
    %43 = vector.load %arg6[%c0_23, %c0_24, %c0_25] : memref<2x1x192xf32, #tpu.memory_space<vmem>>, vector<1x1x192xf32>
    %44 = vector.shape_cast %43 : vector<1x1x192xf32> to vector<1x192xf32>
    %45 = vector.broadcast %44 : vector<1x192xf32> to vector<48x192xf32>
    %46 = arith.addf %42, %45 : vector<48x192xf32>
    %47 = vector.extract_strided_slice %46 {offsets = [0, 0], sizes = [24, 64], strides = [1, 1]} : vector<48x192xf32> to vector<24x64xf32>
    %48 = arith.truncf %47 : vector<24x64xf32> to vector<24x64xbf16>
    %49 = vector.extract_strided_slice %46 {offsets = [0, 64], sizes = [24, 64], strides = [1, 1]} : vector<48x192xf32> to vector<24x64xf32>
    %50 = tpu.transpose %49, [1, 0] : vector<24x64xf32> -> vector<64x24xf32>
    %51 = arith.truncf %50 : vector<64x24xf32> to vector<64x24xbf16>
    %52 = vector.extract_strided_slice %46 {offsets = [0, 128], sizes = [24, 64], strides = [1, 1]} : vector<48x192xf32> to vector<24x64xf32>
    %53 = arith.truncf %52 : vector<24x64xf32> to vector<24x64xbf16>
    %54 = vector.extract_strided_slice %48 {offsets = [0, 0], sizes = [24, 16], strides = [1, 1]} : vector<24x64xbf16> to vector<24x16xbf16>
    %55 = vector.extract_strided_slice %51 {offsets = [0, 0], sizes = [16, 24], strides = [1, 1]} : vector<64x24xbf16> to vector<16x24xbf16>
    %cst_26 = arith.constant dense<0.000000e+00> : vector<24x24xf32>
    %56 = tpu.matmul %54, %55, %cst_26 {dimension_numbers = #tpu.dot_dimension_numbers<[1], [0], [0], [1], [0, 0, 1, 1], [], []>} : vector<24x16xbf16>, vector<16x24xbf16>, vector<24x24xf32> -> vector<24x24xf32>
    %57 = vector.broadcast %5 : vector<1x24xf32> to vector<24x24xf32>
    %58 = arith.addf %56, %57 : vector<24x24xf32>
    %cst_27 = arith.constant dense<0xFF800000> : vector<24xf32>
    %59 = vector.multi_reduction <maximumf>, %58, %cst_27 [1] : vector<24x24xf32> to vector<24xf32>
    %60 = vector.shape_cast %59 : vector<24xf32> to vector<24x1xf32>
    %61 = vector.broadcast %60 : vector<24x1xf32> to vector<24x24xf32>
    %62 = arith.subf %58, %61 : vector<24x24xf32>
    %63 = math.exp %62 : vector<24x24xf32>
    %cst_28 = arith.constant dense<0.000000e+00> : vector<24xf32>
    %64 = vector.multi_reduction <add>, %63, %cst_28 [1] : vector<24x24xf32> to vector<24xf32>
    %65 = vector.shape_cast %64 : vector<24xf32> to vector<24x1xf32>
    %66 = tpu.reciprocal %65 {approx = true} : vector<24x1xf32> -> vector<24x1xf32>
    %67 = vector.broadcast %66 : vector<24x1xf32> to vector<24x24xf32>
    %68 = arith.mulf %63, %67 : vector<24x24xf32>
    %69 = arith.truncf %68 : vector<24x24xf32> to vector<24x24xbf16>
    %70 = vector.extract_strided_slice %53 {offsets = [0, 0], sizes = [24, 16], strides = [1, 1]} : vector<24x64xbf16> to vector<24x16xbf16>
    %cst_29 = arith.constant dense<0.000000e+00> : vector<24x16xf32>
    %71 = tpu.matmul %69, %70, %cst_29 {dimension_numbers = #tpu.dot_dimension_numbers<[1], [0], [0], [1], [0, 0, 1, 1], [], []>} : vector<24x24xbf16>, vector<24x16xbf16>, vector<24x16xf32> -> vector<24x16xf32>
    %72 = vector.extract_strided_slice %48 {offsets = [0, 16], sizes = [24, 16], strides = [1, 1]} : vector<24x64xbf16> to vector<24x16xbf16>
    %73 = vector.extract_strided_slice %51 {offsets = [16, 0], sizes = [16, 24], strides = [1, 1]} : vector<64x24xbf16> to vector<16x24xbf16>
    %cst_30 = arith.constant dense<0.000000e+00> : vector<24x24xf32>
    %74 = tpu.matmul %72, %73, %cst_30 {dimension_numbers = #tpu.dot_dimension_numbers<[1], [0], [0], [1], [0, 0, 1, 1], [], []>} : vector<24x16xbf16>, vector<16x24xbf16>, vector<24x24xf32> -> vector<24x24xf32>
    %75 = vector.broadcast %5 : vector<1x24xf32> to vector<24x24xf32>
    %76 = arith.addf %74, %75 : vector<24x24xf32>
    %cst_31 = arith.constant dense<0xFF800000> : vector<24xf32>
    %77 = vector.multi_reduction <maximumf>, %76, %cst_31 [1] : vector<24x24xf32> to vector<24xf32>
    %78 = vector.shape_cast %77 : vector<24xf32> to vector<24x1xf32>
    %79 = vector.broadcast %78 : vector<24x1xf32> to vector<24x24xf32>
    %80 = arith.subf %76, %79 : vector<24x24xf32>
    %81 = math.exp %80 : vector<24x24xf32>
    %cst_32 = arith.constant dense<0.000000e+00> : vector<24xf32>
    %82 = vector.multi_reduction <add>, %81, %cst_32 [1] : vector<24x24xf32> to vector<24xf32>
    %83 = vector.shape_cast %82 : vector<24xf32> to vector<24x1xf32>
    %84 = tpu.reciprocal %83 {approx = true} : vector<24x1xf32> -> vector<24x1xf32>
    %85 = vector.broadcast %84 : vector<24x1xf32> to vector<24x24xf32>
    %86 = arith.mulf %81, %85 : vector<24x24xf32>
    %87 = arith.truncf %86 : vector<24x24xf32> to vector<24x24xbf16>
    %88 = vector.extract_strided_slice %53 {offsets = [0, 16], sizes = [24, 16], strides = [1, 1]} : vector<24x64xbf16> to vector<24x16xbf16>
    %cst_33 = arith.constant dense<0.000000e+00> : vector<24x16xf32>
    %89 = tpu.matmul %87, %88, %cst_33 {dimension_numbers = #tpu.dot_dimension_numbers<[1], [0], [0], [1], [0, 0, 1, 1], [], []>} : vector<24x24xbf16>, vector<24x16xbf16>, vector<24x16xf32> -> vector<24x16xf32>
    %90 = vector.extract_strided_slice %48 {offsets = [0, 32], sizes = [24, 16], strides = [1, 1]} : vector<24x64xbf16> to vector<24x16xbf16>
    %91 = vector.extract_strided_slice %51 {offsets = [32, 0], sizes = [16, 24], strides = [1, 1]} : vector<64x24xbf16> to vector<16x24xbf16>
    %cst_34 = arith.constant dense<0.000000e+00> : vector<24x24xf32>
    %92 = tpu.matmul %90, %91, %cst_34 {dimension_numbers = #tpu.dot_dimension_numbers<[1], [0], [0], [1], [0, 0, 1, 1], [], []>} : vector<24x16xbf16>, vector<16x24xbf16>, vector<24x24xf32> -> vector<24x24xf32>
    %93 = vector.broadcast %5 : vector<1x24xf32> to vector<24x24xf32>
    %94 = arith.addf %92, %93 : vector<24x24xf32>
    %cst_35 = arith.constant dense<0xFF800000> : vector<24xf32>
    %95 = vector.multi_reduction <maximumf>, %94, %cst_35 [1] : vector<24x24xf32> to vector<24xf32>
    %96 = vector.shape_cast %95 : vector<24xf32> to vector<24x1xf32>
    %97 = vector.broadcast %96 : vector<24x1xf32> to vector<24x24xf32>
    %98 = arith.subf %94, %97 : vector<24x24xf32>
    %99 = math.exp %98 : vector<24x24xf32>
    %cst_36 = arith.constant dense<0.000000e+00> : vector<24xf32>
    %100 = vector.multi_reduction <add>, %99, %cst_36 [1] : vector<24x24xf32> to vector<24xf32>
    %101 = vector.shape_cast %100 : vector<24xf32> to vector<24x1xf32>
    %102 = tpu.reciprocal %101 {approx = true} : vector<24x1xf32> -> vector<24x1xf32>
    %103 = vector.broadcast %102 : vector<24x1xf32> to vector<24x24xf32>
    %104 = arith.mulf %99, %103 : vector<24x24xf32>
    %105 = arith.truncf %104 : vector<24x24xf32> to vector<24x24xbf16>
    %106 = vector.extract_strided_slice %53 {offsets = [0, 32], sizes = [24, 16], strides = [1, 1]} : vector<24x64xbf16> to vector<24x16xbf16>
    %cst_37 = arith.constant dense<0.000000e+00> : vector<24x16xf32>
    %107 = tpu.matmul %105, %106, %cst_37 {dimension_numbers = #tpu.dot_dimension_numbers<[1], [0], [0], [1], [0, 0, 1, 1], [], []>} : vector<24x24xbf16>, vector<24x16xbf16>, vector<24x16xf32> -> vector<24x16xf32>
    %108 = vector.extract_strided_slice %48 {offsets = [0, 48], sizes = [24, 16], strides = [1, 1]} : vector<24x64xbf16> to vector<24x16xbf16>
    %109 = vector.extract_strided_slice %51 {offsets = [48, 0], sizes = [16, 24], strides = [1, 1]} : vector<64x24xbf16> to vector<16x24xbf16>
    %cst_38 = arith.constant dense<0.000000e+00> : vector<24x24xf32>
    %110 = tpu.matmul %108, %109, %cst_38 {dimension_numbers = #tpu.dot_dimension_numbers<[1], [0], [0], [1], [0, 0, 1, 1], [], []>} : vector<24x16xbf16>, vector<16x24xbf16>, vector<24x24xf32> -> vector<24x24xf32>
    %111 = vector.broadcast %5 : vector<1x24xf32> to vector<24x24xf32>
    %112 = arith.addf %110, %111 : vector<24x24xf32>
    %cst_39 = arith.constant dense<0xFF800000> : vector<24xf32>
    %113 = vector.multi_reduction <maximumf>, %112, %cst_39 [1] : vector<24x24xf32> to vector<24xf32>
    %114 = vector.shape_cast %113 : vector<24xf32> to vector<24x1xf32>
    %115 = vector.broadcast %114 : vector<24x1xf32> to vector<24x24xf32>
    %116 = arith.subf %112, %115 : vector<24x24xf32>
    %117 = math.exp %116 : vector<24x24xf32>
    %cst_40 = arith.constant dense<0.000000e+00> : vector<24xf32>
    %118 = vector.multi_reduction <add>, %117, %cst_40 [1] : vector<24x24xf32> to vector<24xf32>
    %119 = vector.shape_cast %118 : vector<24xf32> to vector<24x1xf32>
    %120 = tpu.reciprocal %119 {approx = true} : vector<24x1xf32> -> vector<24x1xf32>
    %121 = vector.broadcast %120 : vector<24x1xf32> to vector<24x24xf32>
    %122 = arith.mulf %117, %121 : vector<24x24xf32>
    %123 = arith.truncf %122 : vector<24x24xf32> to vector<24x24xbf16>
    %124 = vector.extract_strided_slice %53 {offsets = [0, 48], sizes = [24, 16], strides = [1, 1]} : vector<24x64xbf16> to vector<24x16xbf16>
    %cst_41 = arith.constant dense<0.000000e+00> : vector<24x16xf32>
    %125 = tpu.matmul %123, %124, %cst_41 {dimension_numbers = #tpu.dot_dimension_numbers<[1], [0], [0], [1], [0, 0, 1, 1], [], []>} : vector<24x24xbf16>, vector<24x16xbf16>, vector<24x16xf32> -> vector<24x16xf32>
    %126 = tpu.concatenate %71, %89, %107, %125 in 1 : vector<24x16xf32>, vector<24x16xf32>, vector<24x16xf32>, vector<24x16xf32> -> vector<24x64xf32>
    %127 = vector.extract_strided_slice %46 {offsets = [24, 0], sizes = [24, 64], strides = [1, 1]} : vector<48x192xf32> to vector<24x64xf32>
    %128 = arith.truncf %127 : vector<24x64xf32> to vector<24x64xbf16>
    %129 = vector.extract_strided_slice %46 {offsets = [24, 64], sizes = [24, 64], strides = [1, 1]} : vector<48x192xf32> to vector<24x64xf32>
    %130 = tpu.transpose %129, [1, 0] : vector<24x64xf32> -> vector<64x24xf32>
    %131 = arith.truncf %130 : vector<64x24xf32> to vector<64x24xbf16>
    %132 = vector.extract_strided_slice %46 {offsets = [24, 128], sizes = [24, 64], strides = [1, 1]} : vector<48x192xf32> to vector<24x64xf32>
    %133 = arith.truncf %132 : vector<24x64xf32> to vector<24x64xbf16>
    %134 = vector.extract_strided_slice %128 {offsets = [0, 0], sizes = [24, 16], strides = [1, 1]} : vector<24x64xbf16> to vector<24x16xbf16>
    %135 = vector.extract_strided_slice %131 {offsets = [0, 0], sizes = [16, 24], strides = [1, 1]} : vector<64x24xbf16> to vector<16x24xbf16>
    %cst_42 = arith.constant dense<0.000000e+00> : vector<24x24xf32>
    %136 = tpu.matmul %134, %135, %cst_42 {dimension_numbers = #tpu.dot_dimension_numbers<[1], [0], [0], [1], [0, 0, 1, 1], [], []>} : vector<24x16xbf16>, vector<16x24xbf16>, vector<24x24xf32> -> vector<24x24xf32>
    %137 = vector.broadcast %5 : vector<1x24xf32> to vector<24x24xf32>
    %138 = arith.addf %136, %137 : vector<24x24xf32>
    %cst_43 = arith.constant dense<0xFF800000> : vector<24xf32>
    %139 = vector.multi_reduction <maximumf>, %138, %cst_43 [1] : vector<24x24xf32> to vector<24xf32>
    %140 = vector.shape_cast %139 : vector<24xf32> to vector<24x1xf32>
    %141 = vector.broadcast %140 : vector<24x1xf32> to vector<24x24xf32>
    %142 = arith.subf %138, %141 : vector<24x24xf32>
    %143 = math.exp %142 : vector<24x24xf32>
    %cst_44 = arith.constant dense<0.000000e+00> : vector<24xf32>
    %144 = vector.multi_reduction <add>, %143, %cst_44 [1] : vector<24x24xf32> to vector<24xf32>
    %145 = vector.shape_cast %144 : vector<24xf32> to vector<24x1xf32>
    %146 = tpu.reciprocal %145 {approx = true} : vector<24x1xf32> -> vector<24x1xf32>
    %147 = vector.broadcast %146 : vector<24x1xf32> to vector<24x24xf32>
    %148 = arith.mulf %143, %147 : vector<24x24xf32>
    %149 = arith.truncf %148 : vector<24x24xf32> to vector<24x24xbf16>
    %150 = vector.extract_strided_slice %133 {offsets = [0, 0], sizes = [24, 16], strides = [1, 1]} : vector<24x64xbf16> to vector<24x16xbf16>
    %cst_45 = arith.constant dense<0.000000e+00> : vector<24x16xf32>
    %151 = tpu.matmul %149, %150, %cst_45 {dimension_numbers = #tpu.dot_dimension_numbers<[1], [0], [0], [1], [0, 0, 1, 1], [], []>} : vector<24x24xbf16>, vector<24x16xbf16>, vector<24x16xf32> -> vector<24x16xf32>
    %152 = vector.extract_strided_slice %128 {offsets = [0, 16], sizes = [24, 16], strides = [1, 1]} : vector<24x64xbf16> to vector<24x16xbf16>
    %153 = vector.extract_strided_slice %131 {offsets = [16, 0], sizes = [16, 24], strides = [1, 1]} : vector<64x24xbf16> to vector<16x24xbf16>
    %cst_46 = arith.constant dense<0.000000e+00> : vector<24x24xf32>
    %154 = tpu.matmul %152, %153, %cst_46 {dimension_numbers = #tpu.dot_dimension_numbers<[1], [0], [0], [1], [0, 0, 1, 1], [], []>} : vector<24x16xbf16>, vector<16x24xbf16>, vector<24x24xf32> -> vector<24x24xf32>
    %155 = vector.broadcast %5 : vector<1x24xf32> to vector<24x24xf32>
    %156 = arith.addf %154, %155 : vector<24x24xf32>
    %cst_47 = arith.constant dense<0xFF800000> : vector<24xf32>
    %157 = vector.multi_reduction <maximumf>, %156, %cst_47 [1] : vector<24x24xf32> to vector<24xf32>
    %158 = vector.shape_cast %157 : vector<24xf32> to vector<24x1xf32>
    %159 = vector.broadcast %158 : vector<24x1xf32> to vector<24x24xf32>
    %160 = arith.subf %156, %159 : vector<24x24xf32>
    %161 = math.exp %160 : vector<24x24xf32>
    %cst_48 = arith.constant dense<0.000000e+00> : vector<24xf32>
    %162 = vector.multi_reduction <add>, %161, %cst_48 [1] : vector<24x24xf32> to vector<24xf32>
    %163 = vector.shape_cast %162 : vector<24xf32> to vector<24x1xf32>
    %164 = tpu.reciprocal %163 {approx = true} : vector<24x1xf32> -> vector<24x1xf32>
    %165 = vector.broadcast %164 : vector<24x1xf32> to vector<24x24xf32>
    %166 = arith.mulf %161, %165 : vector<24x24xf32>
    %167 = arith.truncf %166 : vector<24x24xf32> to vector<24x24xbf16>
    %168 = vector.extract_strided_slice %133 {offsets = [0, 16], sizes = [24, 16], strides = [1, 1]} : vector<24x64xbf16> to vector<24x16xbf16>
    %cst_49 = arith.constant dense<0.000000e+00> : vector<24x16xf32>
    %169 = tpu.matmul %167, %168, %cst_49 {dimension_numbers = #tpu.dot_dimension_numbers<[1], [0], [0], [1], [0, 0, 1, 1], [], []>} : vector<24x24xbf16>, vector<24x16xbf16>, vector<24x16xf32> -> vector<24x16xf32>
    %170 = vector.extract_strided_slice %128 {offsets = [0, 32], sizes = [24, 16], strides = [1, 1]} : vector<24x64xbf16> to vector<24x16xbf16>
    %171 = vector.extract_strided_slice %131 {offsets = [32, 0], sizes = [16, 24], strides = [1, 1]} : vector<64x24xbf16> to vector<16x24xbf16>
    %cst_50 = arith.constant dense<0.000000e+00> : vector<24x24xf32>
    %172 = tpu.matmul %170, %171, %cst_50 {dimension_numbers = #tpu.dot_dimension_numbers<[1], [0], [0], [1], [0, 0, 1, 1], [], []>} : vector<24x16xbf16>, vector<16x24xbf16>, vector<24x24xf32> -> vector<24x24xf32>
    %173 = vector.broadcast %5 : vector<1x24xf32> to vector<24x24xf32>
    %174 = arith.addf %172, %173 : vector<24x24xf32>
    %cst_51 = arith.constant dense<0xFF800000> : vector<24xf32>
    %175 = vector.multi_reduction <maximumf>, %174, %cst_51 [1] : vector<24x24xf32> to vector<24xf32>
    %176 = vector.shape_cast %175 : vector<24xf32> to vector<24x1xf32>
    %177 = vector.broadcast %176 : vector<24x1xf32> to vector<24x24xf32>
    %178 = arith.subf %174, %177 : vector<24x24xf32>
    %179 = math.exp %178 : vector<24x24xf32>
    %cst_52 = arith.constant dense<0.000000e+00> : vector<24xf32>
    %180 = vector.multi_reduction <add>, %179, %cst_52 [1] : vector<24x24xf32> to vector<24xf32>
    %181 = vector.shape_cast %180 : vector<24xf32> to vector<24x1xf32>
    %182 = tpu.reciprocal %181 {approx = true} : vector<24x1xf32> -> vector<24x1xf32>
    %183 = vector.broadcast %182 : vector<24x1xf32> to vector<24x24xf32>
    %184 = arith.mulf %179, %183 : vector<24x24xf32>
    %185 = arith.truncf %184 : vector<24x24xf32> to vector<24x24xbf16>
    %186 = vector.extract_strided_slice %133 {offsets = [0, 32], sizes = [24, 16], strides = [1, 1]} : vector<24x64xbf16> to vector<24x16xbf16>
    %cst_53 = arith.constant dense<0.000000e+00> : vector<24x16xf32>
    %187 = tpu.matmul %185, %186, %cst_53 {dimension_numbers = #tpu.dot_dimension_numbers<[1], [0], [0], [1], [0, 0, 1, 1], [], []>} : vector<24x24xbf16>, vector<24x16xbf16>, vector<24x16xf32> -> vector<24x16xf32>
    %188 = vector.extract_strided_slice %128 {offsets = [0, 48], sizes = [24, 16], strides = [1, 1]} : vector<24x64xbf16> to vector<24x16xbf16>
    %189 = vector.extract_strided_slice %131 {offsets = [48, 0], sizes = [16, 24], strides = [1, 1]} : vector<64x24xbf16> to vector<16x24xbf16>
    %cst_54 = arith.constant dense<0.000000e+00> : vector<24x24xf32>
    %190 = tpu.matmul %188, %189, %cst_54 {dimension_numbers = #tpu.dot_dimension_numbers<[1], [0], [0], [1], [0, 0, 1, 1], [], []>} : vector<24x16xbf16>, vector<16x24xbf16>, vector<24x24xf32> -> vector<24x24xf32>
    %191 = vector.broadcast %5 : vector<1x24xf32> to vector<24x24xf32>
    %192 = arith.addf %190, %191 : vector<24x24xf32>
    %cst_55 = arith.constant dense<0xFF800000> : vector<24xf32>
    %193 = vector.multi_reduction <maximumf>, %192, %cst_55 [1] : vector<24x24xf32> to vector<24xf32>
    %194 = vector.shape_cast %193 : vector<24xf32> to vector<24x1xf32>
    %195 = vector.broadcast %194 : vector<24x1xf32> to vector<24x24xf32>
    %196 = arith.subf %192, %195 : vector<24x24xf32>
    %197 = math.exp %196 : vector<24x24xf32>
    %cst_56 = arith.constant dense<0.000000e+00> : vector<24xf32>
    %198 = vector.multi_reduction <add>, %197, %cst_56 [1] : vector<24x24xf32> to vector<24xf32>
    %199 = vector.shape_cast %198 : vector<24xf32> to vector<24x1xf32>
    %200 = tpu.reciprocal %199 {approx = true} : vector<24x1xf32> -> vector<24x1xf32>
    %201 = vector.broadcast %200 : vector<24x1xf32> to vector<24x24xf32>
    %202 = arith.mulf %197, %201 : vector<24x24xf32>
    %203 = arith.truncf %202 : vector<24x24xf32> to vector<24x24xbf16>
    %204 = vector.extract_strided_slice %133 {offsets = [0, 48], sizes = [24, 16], strides = [1, 1]} : vector<24x64xbf16> to vector<24x16xbf16>
    %cst_57 = arith.constant dense<0.000000e+00> : vector<24x16xf32>
    %205 = tpu.matmul %203, %204, %cst_57 {dimension_numbers = #tpu.dot_dimension_numbers<[1], [0], [0], [1], [0, 0, 1, 1], [], []>} : vector<24x24xbf16>, vector<24x16xbf16>, vector<24x16xf32> -> vector<24x16xf32>
    %206 = tpu.concatenate %151, %169, %187, %205 in 1 : vector<24x16xf32>, vector<24x16xf32>, vector<24x16xf32>, vector<24x16xf32> -> vector<24x64xf32>
    %207 = tpu.concatenate %126, %206 in 0 : vector<24x64xf32>, vector<24x64xf32> -> vector<48x64xf32>
    %208 = arith.truncf %207 : vector<48x64xf32> to vector<48x64xbf16>
    %c0_58 = arith.constant 0 : index
    %c0_59 = arith.constant 0 : index
    %c0_60 = arith.constant 0 : index
    %209 = vector.load %arg7[%c0_58, %c0_59, %c0_60] : memref<2x64x64xbf16, #tpu.memory_space<vmem>>, vector<1x64x64xbf16>
    %210 = vector.shape_cast %209 : vector<1x64x64xbf16> to vector<64x64xbf16>
    %cst_61 = arith.constant dense<0.000000e+00> : vector<48x64xf32>
    %211 = tpu.matmul %208, %210, %cst_61 {dimension_numbers = #tpu.dot_dimension_numbers<[1], [0], [0], [1], [0, 0, 1, 1], [], []>} : vector<48x64xbf16>, vector<64x64xbf16>, vector<48x64xf32> -> vector<48x64xf32>
    %212 = arith.addf %10, %211 : vector<48x64xf32>
    %c0_62 = arith.constant 0 : index
    %c0_63 = arith.constant 0 : index
    %c0_64 = arith.constant 0 : index
    %213 = vector.load %arg8[%c0_62, %c0_63, %c0_64] : memref<2x1x64xf32, #tpu.memory_space<vmem>>, vector<1x1x64xf32>
    %214 = vector.shape_cast %213 : vector<1x1x64xf32> to vector<1x64xf32>
    %215 = vector.broadcast %214 : vector<1x64xf32> to vector<48x64xf32>
    %216 = arith.addf %212, %215 : vector<48x64xf32>
    %c0_65 = arith.constant 0 : index
    %c0_66 = arith.constant 0 : index
    %c0_67 = arith.constant 0 : index
    %217 = vector.load %arg9[%c0_65, %c0_66, %c0_67] : memref<2x1x64xf32, #tpu.memory_space<vmem>>, vector<1x1x64xf32>
    %218 = vector.shape_cast %217 : vector<1x1x64xf32> to vector<1x64xf32>
    %c0_68 = arith.constant 0 : index
    %c0_69 = arith.constant 0 : index
    %c0_70 = arith.constant 0 : index
    %219 = vector.load %arg10[%c0_68, %c0_69, %c0_70] : memref<2x1x64xf32, #tpu.memory_space<vmem>>, vector<1x1x64xf32>
    %220 = vector.shape_cast %219 : vector<1x1x64xf32> to vector<1x64xf32>
    %cst_71 = arith.constant dense<0.000000e+00> : vector<48xf32>
    %221 = vector.multi_reduction <add>, %216, %cst_71 [1] : vector<48x64xf32> to vector<48xf32>
    %222 = vector.shape_cast %221 : vector<48xf32> to vector<48x1xf32>
    %cst_72 = arith.constant 6.400000e+01 : f32
    %223 = vector.broadcast %cst_72 : f32 to vector<48x1xf32>
    %224 = arith.divf %222, %223 : vector<48x1xf32>
    %225 = arith.mulf %216, %216 : vector<48x64xf32>
    %cst_73 = arith.constant dense<0.000000e+00> : vector<48xf32>
    %226 = vector.multi_reduction <add>, %225, %cst_73 [1] : vector<48x64xf32> to vector<48xf32>
    %227 = vector.shape_cast %226 : vector<48xf32> to vector<48x1xf32>
    %cst_74 = arith.constant 6.400000e+01 : f32
    %228 = vector.broadcast %cst_74 : f32 to vector<48x1xf32>
    %229 = arith.divf %227, %228 : vector<48x1xf32>
    %230 = arith.mulf %224, %224 : vector<48x1xf32>
    %231 = arith.subf %229, %230 : vector<48x1xf32>
    %cst_75 = arith.constant 0.000000e+00 : f32
    %232 = vector.broadcast %cst_75 : f32 to vector<48x1xf32>
    %233 = arith.maximumf %231, %232 : vector<48x1xf32>
    %234 = vector.broadcast %224 : vector<48x1xf32> to vector<48x64xf32>
    %235 = arith.subf %216, %234 : vector<48x64xf32>
    %cst_76 = arith.constant 9.99999997E-7 : f32
    %236 = vector.broadcast %cst_76 : f32 to vector<48x1xf32>
    %237 = arith.addf %233, %236 : vector<48x1xf32>
    %238 = math.rsqrt %237 : vector<48x1xf32>
    %239 = vector.broadcast %238 : vector<48x1xf32> to vector<48x64xf32>
    %240 = arith.mulf %235, %239 : vector<48x64xf32>
    %241 = vector.broadcast %218 : vector<1x64xf32> to vector<48x64xf32>
    %242 = arith.mulf %240, %241 : vector<48x64xf32>
    %243 = vector.broadcast %220 : vector<1x64xf32> to vector<48x64xf32>
    %244 = arith.addf %242, %243 : vector<48x64xf32>
    %245 = arith.truncf %244 : vector<48x64xf32> to vector<48x64xbf16>
    %c0_77 = arith.constant 0 : index
    %c0_78 = arith.constant 0 : index
    %c0_79 = arith.constant 0 : index
    %246 = vector.load %arg11[%c0_77, %c0_78, %c0_79] : memref<2x64x256xbf16, #tpu.memory_space<vmem>>, vector<1x64x256xbf16>
    %247 = vector.shape_cast %246 : vector<1x64x256xbf16> to vector<64x256xbf16>
    %cst_80 = arith.constant dense<0.000000e+00> : vector<48x256xf32>
    %248 = tpu.matmul %245, %247, %cst_80 {dimension_numbers = #tpu.dot_dimension_numbers<[1], [0], [0], [1], [0, 0, 1, 1], [], []>} : vector<48x64xbf16>, vector<64x256xbf16>, vector<48x256xf32> -> vector<48x256xf32>
    %c0_81 = arith.constant 0 : index
    %c0_82 = arith.constant 0 : index
    %c0_83 = arith.constant 0 : index
    %249 = vector.load %arg12[%c0_81, %c0_82, %c0_83] : memref<2x1x256xf32, #tpu.memory_space<vmem>>, vector<1x1x256xf32>
    %250 = vector.shape_cast %249 : vector<1x1x256xf32> to vector<1x256xf32>
    %251 = vector.broadcast %250 : vector<1x256xf32> to vector<48x256xf32>
    %252 = arith.addf %248, %251 : vector<48x256xf32>
    %cst_84 = arith.constant 5.000000e-01 : f32
    %253 = vector.broadcast %cst_84 : f32 to vector<48x256xf32>
    %254 = arith.mulf %253, %252 : vector<48x256xf32>
    %cst_85 = arith.constant 4.471500e-02 : f32
    %255 = vector.broadcast %cst_85 : f32 to vector<48x256xf32>
    %256 = arith.mulf %255, %252 : vector<48x256xf32>
    %257 = arith.mulf %256, %252 : vector<48x256xf32>
    %258 = arith.mulf %257, %252 : vector<48x256xf32>
    %259 = arith.addf %252, %258 : vector<48x256xf32>
    %cst_86 = arith.constant 0.797884583 : f32
    %260 = vector.broadcast %cst_86 : f32 to vector<48x256xf32>
    %261 = arith.mulf %260, %259 : vector<48x256xf32>
    %262 = math.tanh %261 : vector<48x256xf32>
    %cst_87 = arith.constant 1.000000e+00 : f32
    %263 = vector.broadcast %cst_87 : f32 to vector<48x256xf32>
    %264 = arith.addf %263, %262 : vector<48x256xf32>
    %265 = arith.mulf %254, %264 : vector<48x256xf32>
    %266 = arith.truncf %265 : vector<48x256xf32> to vector<48x256xbf16>
    %c0_88 = arith.constant 0 : index
    %c0_89 = arith.constant 0 : index
    %c0_90 = arith.constant 0 : index
    %267 = vector.load %arg13[%c0_88, %c0_89, %c0_90] : memref<2x256x64xbf16, #tpu.memory_space<vmem>>, vector<1x256x64xbf16>
    %268 = vector.shape_cast %267 : vector<1x256x64xbf16> to vector<256x64xbf16>
    %cst_91 = arith.constant dense<0.000000e+00> : vector<48x64xf32>
    %269 = tpu.matmul %266, %268, %cst_91 {dimension_numbers = #tpu.dot_dimension_numbers<[1], [0], [0], [1], [0, 0, 1, 1], [], []>} : vector<48x256xbf16>, vector<256x64xbf16>, vector<48x64xf32> -> vector<48x64xf32>
    %270 = arith.addf %216, %269 : vector<48x64xf32>
    %c0_92 = arith.constant 0 : index
    %c0_93 = arith.constant 0 : index
    %c0_94 = arith.constant 0 : index
    %271 = vector.load %arg14[%c0_92, %c0_93, %c0_94] : memref<2x1x64xf32, #tpu.memory_space<vmem>>, vector<1x1x64xf32>
    %272 = vector.shape_cast %271 : vector<1x1x64xf32> to vector<1x64xf32>
    %273 = vector.broadcast %272 : vector<1x64xf32> to vector<48x64xf32>
    %274 = arith.addf %270, %273 : vector<48x64xf32>
    %c1 = arith.constant 1 : index
    %c0_95 = arith.constant 0 : index
    %c0_96 = arith.constant 0 : index
    %275 = vector.load %arg3[%c1, %c0_95, %c0_96] : memref<2x1x64xf32, #tpu.memory_space<vmem>>, vector<1x1x64xf32>
    %276 = vector.shape_cast %275 : vector<1x1x64xf32> to vector<1x64xf32>
    %c1_97 = arith.constant 1 : index
    %c0_98 = arith.constant 0 : index
    %c0_99 = arith.constant 0 : index
    %277 = vector.load %arg4[%c1_97, %c0_98, %c0_99] : memref<2x1x64xf32, #tpu.memory_space<vmem>>, vector<1x1x64xf32>
    %278 = vector.shape_cast %277 : vector<1x1x64xf32> to vector<1x64xf32>
    %cst_100 = arith.constant dense<0.000000e+00> : vector<48xf32>
    %279 = vector.multi_reduction <add>, %274, %cst_100 [1] : vector<48x64xf32> to vector<48xf32>
    %280 = vector.shape_cast %279 : vector<48xf32> to vector<48x1xf32>
    %cst_101 = arith.constant 6.400000e+01 : f32
    %281 = vector.broadcast %cst_101 : f32 to vector<48x1xf32>
    %282 = arith.divf %280, %281 : vector<48x1xf32>
    %283 = arith.mulf %274, %274 : vector<48x64xf32>
    %cst_102 = arith.constant dense<0.000000e+00> : vector<48xf32>
    %284 = vector.multi_reduction <add>, %283, %cst_102 [1] : vector<48x64xf32> to vector<48xf32>
    %285 = vector.shape_cast %284 : vector<48xf32> to vector<48x1xf32>
    %cst_103 = arith.constant 6.400000e+01 : f32
    %286 = vector.broadcast %cst_103 : f32 to vector<48x1xf32>
    %287 = arith.divf %285, %286 : vector<48x1xf32>
    %288 = arith.mulf %282, %282 : vector<48x1xf32>
    %289 = arith.subf %287, %288 : vector<48x1xf32>
    %cst_104 = arith.constant 0.000000e+00 : f32
    %290 = vector.broadcast %cst_104 : f32 to vector<48x1xf32>
    %291 = arith.maximumf %289, %290 : vector<48x1xf32>
    %292 = vector.broadcast %282 : vector<48x1xf32> to vector<48x64xf32>
    %293 = arith.subf %274, %292 : vector<48x64xf32>
    %cst_105 = arith.constant 9.99999997E-7 : f32
    %294 = vector.broadcast %cst_105 : f32 to vector<48x1xf32>
    %295 = arith.addf %291, %294 : vector<48x1xf32>
    %296 = math.rsqrt %295 : vector<48x1xf32>
    %297 = vector.broadcast %296 : vector<48x1xf32> to vector<48x64xf32>
    %298 = arith.mulf %293, %297 : vector<48x64xf32>
    %299 = vector.broadcast %276 : vector<1x64xf32> to vector<48x64xf32>
    %300 = arith.mulf %298, %299 : vector<48x64xf32>
    %301 = vector.broadcast %278 : vector<1x64xf32> to vector<48x64xf32>
    %302 = arith.addf %300, %301 : vector<48x64xf32>
    %303 = arith.truncf %302 : vector<48x64xf32> to vector<48x64xbf16>
    %c1_106 = arith.constant 1 : index
    %c0_107 = arith.constant 0 : index
    %c0_108 = arith.constant 0 : index
    %304 = vector.load %arg5[%c1_106, %c0_107, %c0_108] : memref<2x64x192xbf16, #tpu.memory_space<vmem>>, vector<1x64x192xbf16>
    %305 = vector.shape_cast %304 : vector<1x64x192xbf16> to vector<64x192xbf16>
    %cst_109 = arith.constant dense<0.000000e+00> : vector<48x192xf32>
    %306 = tpu.matmul %303, %305, %cst_109 {dimension_numbers = #tpu.dot_dimension_numbers<[1], [0], [0], [1], [0, 0, 1, 1], [], []>} : vector<48x64xbf16>, vector<64x192xbf16>, vector<48x192xf32> -> vector<48x192xf32>
    %c1_110 = arith.constant 1 : index
    %c0_111 = arith.constant 0 : index
    %c0_112 = arith.constant 0 : index
    %307 = vector.load %arg6[%c1_110, %c0_111, %c0_112] : memref<2x1x192xf32, #tpu.memory_space<vmem>>, vector<1x1x192xf32>
    %308 = vector.shape_cast %307 : vector<1x1x192xf32> to vector<1x192xf32>
    %309 = vector.broadcast %308 : vector<1x192xf32> to vector<48x192xf32>
    %310 = arith.addf %306, %309 : vector<48x192xf32>
    %311 = vector.extract_strided_slice %310 {offsets = [0, 0], sizes = [24, 64], strides = [1, 1]} : vector<48x192xf32> to vector<24x64xf32>
    %312 = arith.truncf %311 : vector<24x64xf32> to vector<24x64xbf16>
    %313 = vector.extract_strided_slice %310 {offsets = [0, 64], sizes = [24, 64], strides = [1, 1]} : vector<48x192xf32> to vector<24x64xf32>
    %314 = tpu.transpose %313, [1, 0] : vector<24x64xf32> -> vector<64x24xf32>
    %315 = arith.truncf %314 : vector<64x24xf32> to vector<64x24xbf16>
    %316 = vector.extract_strided_slice %310 {offsets = [0, 128], sizes = [24, 64], strides = [1, 1]} : vector<48x192xf32> to vector<24x64xf32>
    %317 = arith.truncf %316 : vector<24x64xf32> to vector<24x64xbf16>
    %318 = vector.extract_strided_slice %312 {offsets = [0, 0], sizes = [24, 16], strides = [1, 1]} : vector<24x64xbf16> to vector<24x16xbf16>
    %319 = vector.extract_strided_slice %315 {offsets = [0, 0], sizes = [16, 24], strides = [1, 1]} : vector<64x24xbf16> to vector<16x24xbf16>
    %cst_113 = arith.constant dense<0.000000e+00> : vector<24x24xf32>
    %320 = tpu.matmul %318, %319, %cst_113 {dimension_numbers = #tpu.dot_dimension_numbers<[1], [0], [0], [1], [0, 0, 1, 1], [], []>} : vector<24x16xbf16>, vector<16x24xbf16>, vector<24x24xf32> -> vector<24x24xf32>
    %321 = vector.broadcast %5 : vector<1x24xf32> to vector<24x24xf32>
    %322 = arith.addf %320, %321 : vector<24x24xf32>
    %cst_114 = arith.constant dense<0xFF800000> : vector<24xf32>
    %323 = vector.multi_reduction <maximumf>, %322, %cst_114 [1] : vector<24x24xf32> to vector<24xf32>
    %324 = vector.shape_cast %323 : vector<24xf32> to vector<24x1xf32>
    %325 = vector.broadcast %324 : vector<24x1xf32> to vector<24x24xf32>
    %326 = arith.subf %322, %325 : vector<24x24xf32>
    %327 = math.exp %326 : vector<24x24xf32>
    %cst_115 = arith.constant dense<0.000000e+00> : vector<24xf32>
    %328 = vector.multi_reduction <add>, %327, %cst_115 [1] : vector<24x24xf32> to vector<24xf32>
    %329 = vector.shape_cast %328 : vector<24xf32> to vector<24x1xf32>
    %330 = tpu.reciprocal %329 {approx = true} : vector<24x1xf32> -> vector<24x1xf32>
    %331 = vector.broadcast %330 : vector<24x1xf32> to vector<24x24xf32>
    %332 = arith.mulf %327, %331 : vector<24x24xf32>
    %333 = arith.truncf %332 : vector<24x24xf32> to vector<24x24xbf16>
    %334 = vector.extract_strided_slice %317 {offsets = [0, 0], sizes = [24, 16], strides = [1, 1]} : vector<24x64xbf16> to vector<24x16xbf16>
    %cst_116 = arith.constant dense<0.000000e+00> : vector<24x16xf32>
    %335 = tpu.matmul %333, %334, %cst_116 {dimension_numbers = #tpu.dot_dimension_numbers<[1], [0], [0], [1], [0, 0, 1, 1], [], []>} : vector<24x24xbf16>, vector<24x16xbf16>, vector<24x16xf32> -> vector<24x16xf32>
    %336 = vector.extract_strided_slice %312 {offsets = [0, 16], sizes = [24, 16], strides = [1, 1]} : vector<24x64xbf16> to vector<24x16xbf16>
    %337 = vector.extract_strided_slice %315 {offsets = [16, 0], sizes = [16, 24], strides = [1, 1]} : vector<64x24xbf16> to vector<16x24xbf16>
    %cst_117 = arith.constant dense<0.000000e+00> : vector<24x24xf32>
    %338 = tpu.matmul %336, %337, %cst_117 {dimension_numbers = #tpu.dot_dimension_numbers<[1], [0], [0], [1], [0, 0, 1, 1], [], []>} : vector<24x16xbf16>, vector<16x24xbf16>, vector<24x24xf32> -> vector<24x24xf32>
    %339 = vector.broadcast %5 : vector<1x24xf32> to vector<24x24xf32>
    %340 = arith.addf %338, %339 : vector<24x24xf32>
    %cst_118 = arith.constant dense<0xFF800000> : vector<24xf32>
    %341 = vector.multi_reduction <maximumf>, %340, %cst_118 [1] : vector<24x24xf32> to vector<24xf32>
    %342 = vector.shape_cast %341 : vector<24xf32> to vector<24x1xf32>
    %343 = vector.broadcast %342 : vector<24x1xf32> to vector<24x24xf32>
    %344 = arith.subf %340, %343 : vector<24x24xf32>
    %345 = math.exp %344 : vector<24x24xf32>
    %cst_119 = arith.constant dense<0.000000e+00> : vector<24xf32>
    %346 = vector.multi_reduction <add>, %345, %cst_119 [1] : vector<24x24xf32> to vector<24xf32>
    %347 = vector.shape_cast %346 : vector<24xf32> to vector<24x1xf32>
    %348 = tpu.reciprocal %347 {approx = true} : vector<24x1xf32> -> vector<24x1xf32>
    %349 = vector.broadcast %348 : vector<24x1xf32> to vector<24x24xf32>
    %350 = arith.mulf %345, %349 : vector<24x24xf32>
    %351 = arith.truncf %350 : vector<24x24xf32> to vector<24x24xbf16>
    %352 = vector.extract_strided_slice %317 {offsets = [0, 16], sizes = [24, 16], strides = [1, 1]} : vector<24x64xbf16> to vector<24x16xbf16>
    %cst_120 = arith.constant dense<0.000000e+00> : vector<24x16xf32>
    %353 = tpu.matmul %351, %352, %cst_120 {dimension_numbers = #tpu.dot_dimension_numbers<[1], [0], [0], [1], [0, 0, 1, 1], [], []>} : vector<24x24xbf16>, vector<24x16xbf16>, vector<24x16xf32> -> vector<24x16xf32>
    %354 = vector.extract_strided_slice %312 {offsets = [0, 32], sizes = [24, 16], strides = [1, 1]} : vector<24x64xbf16> to vector<24x16xbf16>
    %355 = vector.extract_strided_slice %315 {offsets = [32, 0], sizes = [16, 24], strides = [1, 1]} : vector<64x24xbf16> to vector<16x24xbf16>
    %cst_121 = arith.constant dense<0.000000e+00> : vector<24x24xf32>
    %356 = tpu.matmul %354, %355, %cst_121 {dimension_numbers = #tpu.dot_dimension_numbers<[1], [0], [0], [1], [0, 0, 1, 1], [], []>} : vector<24x16xbf16>, vector<16x24xbf16>, vector<24x24xf32> -> vector<24x24xf32>
    %357 = vector.broadcast %5 : vector<1x24xf32> to vector<24x24xf32>
    %358 = arith.addf %356, %357 : vector<24x24xf32>
    %cst_122 = arith.constant dense<0xFF800000> : vector<24xf32>
    %359 = vector.multi_reduction <maximumf>, %358, %cst_122 [1] : vector<24x24xf32> to vector<24xf32>
    %360 = vector.shape_cast %359 : vector<24xf32> to vector<24x1xf32>
    %361 = vector.broadcast %360 : vector<24x1xf32> to vector<24x24xf32>
    %362 = arith.subf %358, %361 : vector<24x24xf32>
    %363 = math.exp %362 : vector<24x24xf32>
    %cst_123 = arith.constant dense<0.000000e+00> : vector<24xf32>
    %364 = vector.multi_reduction <add>, %363, %cst_123 [1] : vector<24x24xf32> to vector<24xf32>
    %365 = vector.shape_cast %364 : vector<24xf32> to vector<24x1xf32>
    %366 = tpu.reciprocal %365 {approx = true} : vector<24x1xf32> -> vector<24x1xf32>
    %367 = vector.broadcast %366 : vector<24x1xf32> to vector<24x24xf32>
    %368 = arith.mulf %363, %367 : vector<24x24xf32>
    %369 = arith.truncf %368 : vector<24x24xf32> to vector<24x24xbf16>
    %370 = vector.extract_strided_slice %317 {offsets = [0, 32], sizes = [24, 16], strides = [1, 1]} : vector<24x64xbf16> to vector<24x16xbf16>
    %cst_124 = arith.constant dense<0.000000e+00> : vector<24x16xf32>
    %371 = tpu.matmul %369, %370, %cst_124 {dimension_numbers = #tpu.dot_dimension_numbers<[1], [0], [0], [1], [0, 0, 1, 1], [], []>} : vector<24x24xbf16>, vector<24x16xbf16>, vector<24x16xf32> -> vector<24x16xf32>
    %372 = vector.extract_strided_slice %312 {offsets = [0, 48], sizes = [24, 16], strides = [1, 1]} : vector<24x64xbf16> to vector<24x16xbf16>
    %373 = vector.extract_strided_slice %315 {offsets = [48, 0], sizes = [16, 24], strides = [1, 1]} : vector<64x24xbf16> to vector<16x24xbf16>
    %cst_125 = arith.constant dense<0.000000e+00> : vector<24x24xf32>
    %374 = tpu.matmul %372, %373, %cst_125 {dimension_numbers = #tpu.dot_dimension_numbers<[1], [0], [0], [1], [0, 0, 1, 1], [], []>} : vector<24x16xbf16>, vector<16x24xbf16>, vector<24x24xf32> -> vector<24x24xf32>
    %375 = vector.broadcast %5 : vector<1x24xf32> to vector<24x24xf32>
    %376 = arith.addf %374, %375 : vector<24x24xf32>
    %cst_126 = arith.constant dense<0xFF800000> : vector<24xf32>
    %377 = vector.multi_reduction <maximumf>, %376, %cst_126 [1] : vector<24x24xf32> to vector<24xf32>
    %378 = vector.shape_cast %377 : vector<24xf32> to vector<24x1xf32>
    %379 = vector.broadcast %378 : vector<24x1xf32> to vector<24x24xf32>
    %380 = arith.subf %376, %379 : vector<24x24xf32>
    %381 = math.exp %380 : vector<24x24xf32>
    %cst_127 = arith.constant dense<0.000000e+00> : vector<24xf32>
    %382 = vector.multi_reduction <add>, %381, %cst_127 [1] : vector<24x24xf32> to vector<24xf32>
    %383 = vector.shape_cast %382 : vector<24xf32> to vector<24x1xf32>
    %384 = tpu.reciprocal %383 {approx = true} : vector<24x1xf32> -> vector<24x1xf32>
    %385 = vector.broadcast %384 : vector<24x1xf32> to vector<24x24xf32>
    %386 = arith.mulf %381, %385 : vector<24x24xf32>
    %387 = arith.truncf %386 : vector<24x24xf32> to vector<24x24xbf16>
    %388 = vector.extract_strided_slice %317 {offsets = [0, 48], sizes = [24, 16], strides = [1, 1]} : vector<24x64xbf16> to vector<24x16xbf16>
    %cst_128 = arith.constant dense<0.000000e+00> : vector<24x16xf32>
    %389 = tpu.matmul %387, %388, %cst_128 {dimension_numbers = #tpu.dot_dimension_numbers<[1], [0], [0], [1], [0, 0, 1, 1], [], []>} : vector<24x24xbf16>, vector<24x16xbf16>, vector<24x16xf32> -> vector<24x16xf32>
    %390 = tpu.concatenate %335, %353, %371, %389 in 1 : vector<24x16xf32>, vector<24x16xf32>, vector<24x16xf32>, vector<24x16xf32> -> vector<24x64xf32>
    %391 = vector.extract_strided_slice %310 {offsets = [24, 0], sizes = [24, 64], strides = [1, 1]} : vector<48x192xf32> to vector<24x64xf32>
    %392 = arith.truncf %391 : vector<24x64xf32> to vector<24x64xbf16>
    %393 = vector.extract_strided_slice %310 {offsets = [24, 64], sizes = [24, 64], strides = [1, 1]} : vector<48x192xf32> to vector<24x64xf32>
    %394 = tpu.transpose %393, [1, 0] : vector<24x64xf32> -> vector<64x24xf32>
    %395 = arith.truncf %394 : vector<64x24xf32> to vector<64x24xbf16>
    %396 = vector.extract_strided_slice %310 {offsets = [24, 128], sizes = [24, 64], strides = [1, 1]} : vector<48x192xf32> to vector<24x64xf32>
    %397 = arith.truncf %396 : vector<24x64xf32> to vector<24x64xbf16>
    %398 = vector.extract_strided_slice %392 {offsets = [0, 0], sizes = [24, 16], strides = [1, 1]} : vector<24x64xbf16> to vector<24x16xbf16>
    %399 = vector.extract_strided_slice %395 {offsets = [0, 0], sizes = [16, 24], strides = [1, 1]} : vector<64x24xbf16> to vector<16x24xbf16>
    %cst_129 = arith.constant dense<0.000000e+00> : vector<24x24xf32>
    %400 = tpu.matmul %398, %399, %cst_129 {dimension_numbers = #tpu.dot_dimension_numbers<[1], [0], [0], [1], [0, 0, 1, 1], [], []>} : vector<24x16xbf16>, vector<16x24xbf16>, vector<24x24xf32> -> vector<24x24xf32>
    %401 = vector.broadcast %5 : vector<1x24xf32> to vector<24x24xf32>
    %402 = arith.addf %400, %401 : vector<24x24xf32>
    %cst_130 = arith.constant dense<0xFF800000> : vector<24xf32>
    %403 = vector.multi_reduction <maximumf>, %402, %cst_130 [1] : vector<24x24xf32> to vector<24xf32>
    %404 = vector.shape_cast %403 : vector<24xf32> to vector<24x1xf32>
    %405 = vector.broadcast %404 : vector<24x1xf32> to vector<24x24xf32>
    %406 = arith.subf %402, %405 : vector<24x24xf32>
    %407 = math.exp %406 : vector<24x24xf32>
    %cst_131 = arith.constant dense<0.000000e+00> : vector<24xf32>
    %408 = vector.multi_reduction <add>, %407, %cst_131 [1] : vector<24x24xf32> to vector<24xf32>
    %409 = vector.shape_cast %408 : vector<24xf32> to vector<24x1xf32>
    %410 = tpu.reciprocal %409 {approx = true} : vector<24x1xf32> -> vector<24x1xf32>
    %411 = vector.broadcast %410 : vector<24x1xf32> to vector<24x24xf32>
    %412 = arith.mulf %407, %411 : vector<24x24xf32>
    %413 = arith.truncf %412 : vector<24x24xf32> to vector<24x24xbf16>
    %414 = vector.extract_strided_slice %397 {offsets = [0, 0], sizes = [24, 16], strides = [1, 1]} : vector<24x64xbf16> to vector<24x16xbf16>
    %cst_132 = arith.constant dense<0.000000e+00> : vector<24x16xf32>
    %415 = tpu.matmul %413, %414, %cst_132 {dimension_numbers = #tpu.dot_dimension_numbers<[1], [0], [0], [1], [0, 0, 1, 1], [], []>} : vector<24x24xbf16>, vector<24x16xbf16>, vector<24x16xf32> -> vector<24x16xf32>
    %416 = vector.extract_strided_slice %392 {offsets = [0, 16], sizes = [24, 16], strides = [1, 1]} : vector<24x64xbf16> to vector<24x16xbf16>
    %417 = vector.extract_strided_slice %395 {offsets = [16, 0], sizes = [16, 24], strides = [1, 1]} : vector<64x24xbf16> to vector<16x24xbf16>
    %cst_133 = arith.constant dense<0.000000e+00> : vector<24x24xf32>
    %418 = tpu.matmul %416, %417, %cst_133 {dimension_numbers = #tpu.dot_dimension_numbers<[1], [0], [0], [1], [0, 0, 1, 1], [], []>} : vector<24x16xbf16>, vector<16x24xbf16>, vector<24x24xf32> -> vector<24x24xf32>
    %419 = vector.broadcast %5 : vector<1x24xf32> to vector<24x24xf32>
    %420 = arith.addf %418, %419 : vector<24x24xf32>
    %cst_134 = arith.constant dense<0xFF800000> : vector<24xf32>
    %421 = vector.multi_reduction <maximumf>, %420, %cst_134 [1] : vector<24x24xf32> to vector<24xf32>
    %422 = vector.shape_cast %421 : vector<24xf32> to vector<24x1xf32>
    %423 = vector.broadcast %422 : vector<24x1xf32> to vector<24x24xf32>
    %424 = arith.subf %420, %423 : vector<24x24xf32>
    %425 = math.exp %424 : vector<24x24xf32>
    %cst_135 = arith.constant dense<0.000000e+00> : vector<24xf32>
    %426 = vector.multi_reduction <add>, %425, %cst_135 [1] : vector<24x24xf32> to vector<24xf32>
    %427 = vector.shape_cast %426 : vector<24xf32> to vector<24x1xf32>
    %428 = tpu.reciprocal %427 {approx = true} : vector<24x1xf32> -> vector<24x1xf32>
    %429 = vector.broadcast %428 : vector<24x1xf32> to vector<24x24xf32>
    %430 = arith.mulf %425, %429 : vector<24x24xf32>
    %431 = arith.truncf %430 : vector<24x24xf32> to vector<24x24xbf16>
    %432 = vector.extract_strided_slice %397 {offsets = [0, 16], sizes = [24, 16], strides = [1, 1]} : vector<24x64xbf16> to vector<24x16xbf16>
    %cst_136 = arith.constant dense<0.000000e+00> : vector<24x16xf32>
    %433 = tpu.matmul %431, %432, %cst_136 {dimension_numbers = #tpu.dot_dimension_numbers<[1], [0], [0], [1], [0, 0, 1, 1], [], []>} : vector<24x24xbf16>, vector<24x16xbf16>, vector<24x16xf32> -> vector<24x16xf32>
    %434 = vector.extract_strided_slice %392 {offsets = [0, 32], sizes = [24, 16], strides = [1, 1]} : vector<24x64xbf16> to vector<24x16xbf16>
    %435 = vector.extract_strided_slice %395 {offsets = [32, 0], sizes = [16, 24], strides = [1, 1]} : vector<64x24xbf16> to vector<16x24xbf16>
    %cst_137 = arith.constant dense<0.000000e+00> : vector<24x24xf32>
    %436 = tpu.matmul %434, %435, %cst_137 {dimension_numbers = #tpu.dot_dimension_numbers<[1], [0], [0], [1], [0, 0, 1, 1], [], []>} : vector<24x16xbf16>, vector<16x24xbf16>, vector<24x24xf32> -> vector<24x24xf32>
    %437 = vector.broadcast %5 : vector<1x24xf32> to vector<24x24xf32>
    %438 = arith.addf %436, %437 : vector<24x24xf32>
    %cst_138 = arith.constant dense<0xFF800000> : vector<24xf32>
    %439 = vector.multi_reduction <maximumf>, %438, %cst_138 [1] : vector<24x24xf32> to vector<24xf32>
    %440 = vector.shape_cast %439 : vector<24xf32> to vector<24x1xf32>
    %441 = vector.broadcast %440 : vector<24x1xf32> to vector<24x24xf32>
    %442 = arith.subf %438, %441 : vector<24x24xf32>
    %443 = math.exp %442 : vector<24x24xf32>
    %cst_139 = arith.constant dense<0.000000e+00> : vector<24xf32>
    %444 = vector.multi_reduction <add>, %443, %cst_139 [1] : vector<24x24xf32> to vector<24xf32>
    %445 = vector.shape_cast %444 : vector<24xf32> to vector<24x1xf32>
    %446 = tpu.reciprocal %445 {approx = true} : vector<24x1xf32> -> vector<24x1xf32>
    %447 = vector.broadcast %446 : vector<24x1xf32> to vector<24x24xf32>
    %448 = arith.mulf %443, %447 : vector<24x24xf32>
    %449 = arith.truncf %448 : vector<24x24xf32> to vector<24x24xbf16>
    %450 = vector.extract_strided_slice %397 {offsets = [0, 32], sizes = [24, 16], strides = [1, 1]} : vector<24x64xbf16> to vector<24x16xbf16>
    %cst_140 = arith.constant dense<0.000000e+00> : vector<24x16xf32>
    %451 = tpu.matmul %449, %450, %cst_140 {dimension_numbers = #tpu.dot_dimension_numbers<[1], [0], [0], [1], [0, 0, 1, 1], [], []>} : vector<24x24xbf16>, vector<24x16xbf16>, vector<24x16xf32> -> vector<24x16xf32>
    %452 = vector.extract_strided_slice %392 {offsets = [0, 48], sizes = [24, 16], strides = [1, 1]} : vector<24x64xbf16> to vector<24x16xbf16>
    %453 = vector.extract_strided_slice %395 {offsets = [48, 0], sizes = [16, 24], strides = [1, 1]} : vector<64x24xbf16> to vector<16x24xbf16>
    %cst_141 = arith.constant dense<0.000000e+00> : vector<24x24xf32>
    %454 = tpu.matmul %452, %453, %cst_141 {dimension_numbers = #tpu.dot_dimension_numbers<[1], [0], [0], [1], [0, 0, 1, 1], [], []>} : vector<24x16xbf16>, vector<16x24xbf16>, vector<24x24xf32> -> vector<24x24xf32>
    %455 = vector.broadcast %5 : vector<1x24xf32> to vector<24x24xf32>
    %456 = arith.addf %454, %455 : vector<24x24xf32>
    %cst_142 = arith.constant dense<0xFF800000> : vector<24xf32>
    %457 = vector.multi_reduction <maximumf>, %456, %cst_142 [1] : vector<24x24xf32> to vector<24xf32>
    %458 = vector.shape_cast %457 : vector<24xf32> to vector<24x1xf32>
    %459 = vector.broadcast %458 : vector<24x1xf32> to vector<24x24xf32>
    %460 = arith.subf %456, %459 : vector<24x24xf32>
    %461 = math.exp %460 : vector<24x24xf32>
    %cst_143 = arith.constant dense<0.000000e+00> : vector<24xf32>
    %462 = vector.multi_reduction <add>, %461, %cst_143 [1] : vector<24x24xf32> to vector<24xf32>
    %463 = vector.shape_cast %462 : vector<24xf32> to vector<24x1xf32>
    %464 = tpu.reciprocal %463 {approx = true} : vector<24x1xf32> -> vector<24x1xf32>
    %465 = vector.broadcast %464 : vector<24x1xf32> to vector<24x24xf32>
    %466 = arith.mulf %461, %465 : vector<24x24xf32>
    %467 = arith.truncf %466 : vector<24x24xf32> to vector<24x24xbf16>
    %468 = vector.extract_strided_slice %397 {offsets = [0, 48], sizes = [24, 16], strides = [1, 1]} : vector<24x64xbf16> to vector<24x16xbf16>
    %cst_144 = arith.constant dense<0.000000e+00> : vector<24x16xf32>
    %469 = tpu.matmul %467, %468, %cst_144 {dimension_numbers = #tpu.dot_dimension_numbers<[1], [0], [0], [1], [0, 0, 1, 1], [], []>} : vector<24x24xbf16>, vector<24x16xbf16>, vector<24x16xf32> -> vector<24x16xf32>
    %470 = tpu.concatenate %415, %433, %451, %469 in 1 : vector<24x16xf32>, vector<24x16xf32>, vector<24x16xf32>, vector<24x16xf32> -> vector<24x64xf32>
    %471 = tpu.concatenate %390, %470 in 0 : vector<24x64xf32>, vector<24x64xf32> -> vector<48x64xf32>
    %472 = arith.truncf %471 : vector<48x64xf32> to vector<48x64xbf16>
    %c1_145 = arith.constant 1 : index
    %c0_146 = arith.constant 0 : index
    %c0_147 = arith.constant 0 : index
    %473 = vector.load %arg7[%c1_145, %c0_146, %c0_147] : memref<2x64x64xbf16, #tpu.memory_space<vmem>>, vector<1x64x64xbf16>
    %474 = vector.shape_cast %473 : vector<1x64x64xbf16> to vector<64x64xbf16>
    %cst_148 = arith.constant dense<0.000000e+00> : vector<48x64xf32>
    %475 = tpu.matmul %472, %474, %cst_148 {dimension_numbers = #tpu.dot_dimension_numbers<[1], [0], [0], [1], [0, 0, 1, 1], [], []>} : vector<48x64xbf16>, vector<64x64xbf16>, vector<48x64xf32> -> vector<48x64xf32>
    %476 = arith.addf %274, %475 : vector<48x64xf32>
    %c1_149 = arith.constant 1 : index
    %c0_150 = arith.constant 0 : index
    %c0_151 = arith.constant 0 : index
    %477 = vector.load %arg8[%c1_149, %c0_150, %c0_151] : memref<2x1x64xf32, #tpu.memory_space<vmem>>, vector<1x1x64xf32>
    %478 = vector.shape_cast %477 : vector<1x1x64xf32> to vector<1x64xf32>
    %479 = vector.broadcast %478 : vector<1x64xf32> to vector<48x64xf32>
    %480 = arith.addf %476, %479 : vector<48x64xf32>
    %c1_152 = arith.constant 1 : index
    %c0_153 = arith.constant 0 : index
    %c0_154 = arith.constant 0 : index
    %481 = vector.load %arg9[%c1_152, %c0_153, %c0_154] : memref<2x1x64xf32, #tpu.memory_space<vmem>>, vector<1x1x64xf32>
    %482 = vector.shape_cast %481 : vector<1x1x64xf32> to vector<1x64xf32>
    %c1_155 = arith.constant 1 : index
    %c0_156 = arith.constant 0 : index
    %c0_157 = arith.constant 0 : index
    %483 = vector.load %arg10[%c1_155, %c0_156, %c0_157] : memref<2x1x64xf32, #tpu.memory_space<vmem>>, vector<1x1x64xf32>
    %484 = vector.shape_cast %483 : vector<1x1x64xf32> to vector<1x64xf32>
    %cst_158 = arith.constant dense<0.000000e+00> : vector<48xf32>
    %485 = vector.multi_reduction <add>, %480, %cst_158 [1] : vector<48x64xf32> to vector<48xf32>
    %486 = vector.shape_cast %485 : vector<48xf32> to vector<48x1xf32>
    %cst_159 = arith.constant 6.400000e+01 : f32
    %487 = vector.broadcast %cst_159 : f32 to vector<48x1xf32>
    %488 = arith.divf %486, %487 : vector<48x1xf32>
    %489 = arith.mulf %480, %480 : vector<48x64xf32>
    %cst_160 = arith.constant dense<0.000000e+00> : vector<48xf32>
    %490 = vector.multi_reduction <add>, %489, %cst_160 [1] : vector<48x64xf32> to vector<48xf32>
    %491 = vector.shape_cast %490 : vector<48xf32> to vector<48x1xf32>
    %cst_161 = arith.constant 6.400000e+01 : f32
    %492 = vector.broadcast %cst_161 : f32 to vector<48x1xf32>
    %493 = arith.divf %491, %492 : vector<48x1xf32>
    %494 = arith.mulf %488, %488 : vector<48x1xf32>
    %495 = arith.subf %493, %494 : vector<48x1xf32>
    %cst_162 = arith.constant 0.000000e+00 : f32
    %496 = vector.broadcast %cst_162 : f32 to vector<48x1xf32>
    %497 = arith.maximumf %495, %496 : vector<48x1xf32>
    %498 = vector.broadcast %488 : vector<48x1xf32> to vector<48x64xf32>
    %499 = arith.subf %480, %498 : vector<48x64xf32>
    %cst_163 = arith.constant 9.99999997E-7 : f32
    %500 = vector.broadcast %cst_163 : f32 to vector<48x1xf32>
    %501 = arith.addf %497, %500 : vector<48x1xf32>
    %502 = math.rsqrt %501 : vector<48x1xf32>
    %503 = vector.broadcast %502 : vector<48x1xf32> to vector<48x64xf32>
    %504 = arith.mulf %499, %503 : vector<48x64xf32>
    %505 = vector.broadcast %482 : vector<1x64xf32> to vector<48x64xf32>
    %506 = arith.mulf %504, %505 : vector<48x64xf32>
    %507 = vector.broadcast %484 : vector<1x64xf32> to vector<48x64xf32>
    %508 = arith.addf %506, %507 : vector<48x64xf32>
    %509 = arith.truncf %508 : vector<48x64xf32> to vector<48x64xbf16>
    %c1_164 = arith.constant 1 : index
    %c0_165 = arith.constant 0 : index
    %c0_166 = arith.constant 0 : index
    %510 = vector.load %arg11[%c1_164, %c0_165, %c0_166] : memref<2x64x256xbf16, #tpu.memory_space<vmem>>, vector<1x64x256xbf16>
    %511 = vector.shape_cast %510 : vector<1x64x256xbf16> to vector<64x256xbf16>
    %cst_167 = arith.constant dense<0.000000e+00> : vector<48x256xf32>
    %512 = tpu.matmul %509, %511, %cst_167 {dimension_numbers = #tpu.dot_dimension_numbers<[1], [0], [0], [1], [0, 0, 1, 1], [], []>} : vector<48x64xbf16>, vector<64x256xbf16>, vector<48x256xf32> -> vector<48x256xf32>
    %c1_168 = arith.constant 1 : index
    %c0_169 = arith.constant 0 : index
    %c0_170 = arith.constant 0 : index
    %513 = vector.load %arg12[%c1_168, %c0_169, %c0_170] : memref<2x1x256xf32, #tpu.memory_space<vmem>>, vector<1x1x256xf32>
    %514 = vector.shape_cast %513 : vector<1x1x256xf32> to vector<1x256xf32>
    %515 = vector.broadcast %514 : vector<1x256xf32> to vector<48x256xf32>
    %516 = arith.addf %512, %515 : vector<48x256xf32>
    %cst_171 = arith.constant 5.000000e-01 : f32
    %517 = vector.broadcast %cst_171 : f32 to vector<48x256xf32>
    %518 = arith.mulf %517, %516 : vector<48x256xf32>
    %cst_172 = arith.constant 4.471500e-02 : f32
    %519 = vector.broadcast %cst_172 : f32 to vector<48x256xf32>
    %520 = arith.mulf %519, %516 : vector<48x256xf32>
    %521 = arith.mulf %520, %516 : vector<48x256xf32>
    %522 = arith.mulf %521, %516 : vector<48x256xf32>
    %523 = arith.addf %516, %522 : vector<48x256xf32>
    %cst_173 = arith.constant 0.797884583 : f32
    %524 = vector.broadcast %cst_173 : f32 to vector<48x256xf32>
    %525 = arith.mulf %524, %523 : vector<48x256xf32>
    %526 = math.tanh %525 : vector<48x256xf32>
    %cst_174 = arith.constant 1.000000e+00 : f32
    %527 = vector.broadcast %cst_174 : f32 to vector<48x256xf32>
    %528 = arith.addf %527, %526 : vector<48x256xf32>
    %529 = arith.mulf %518, %528 : vector<48x256xf32>
    %530 = arith.truncf %529 : vector<48x256xf32> to vector<48x256xbf16>
    %c1_175 = arith.constant 1 : index
    %c0_176 = arith.constant 0 : index
    %c0_177 = arith.constant 0 : index
    %531 = vector.load %arg13[%c1_175, %c0_176, %c0_177] : memref<2x256x64xbf16, #tpu.memory_space<vmem>>, vector<1x256x64xbf16>
    %532 = vector.shape_cast %531 : vector<1x256x64xbf16> to vector<256x64xbf16>
    %cst_178 = arith.constant dense<0.000000e+00> : vector<48x64xf32>
    %533 = tpu.matmul %530, %532, %cst_178 {dimension_numbers = #tpu.dot_dimension_numbers<[1], [0], [0], [1], [0, 0, 1, 1], [], []>} : vector<48x256xbf16>, vector<256x64xbf16>, vector<48x64xf32> -> vector<48x64xf32>
    %534 = arith.addf %480, %533 : vector<48x64xf32>
    %c1_179 = arith.constant 1 : index
    %c0_180 = arith.constant 0 : index
    %c0_181 = arith.constant 0 : index
    %535 = vector.load %arg14[%c1_179, %c0_180, %c0_181] : memref<2x1x64xf32, #tpu.memory_space<vmem>>, vector<1x1x64xf32>
    %536 = vector.shape_cast %535 : vector<1x1x64xf32> to vector<1x64xf32>
    %537 = vector.broadcast %536 : vector<1x64xf32> to vector<48x64xf32>
    %538 = arith.addf %534, %537 : vector<48x64xf32>
    %539 = vector.extract_strided_slice %538 {offsets = [0, 0], sizes = [1, 64], strides = [1, 1]} : vector<48x64xf32> to vector<1x64xf32>
    %540 = vector.extract_strided_slice %538 {offsets = [24, 0], sizes = [1, 64], strides = [1, 1]} : vector<48x64xf32> to vector<1x64xf32>
    %541 = tpu.concatenate %539, %540 in 0 : vector<1x64xf32>, vector<1x64xf32> -> vector<2x64xf32>
    %c0_182 = arith.constant 0 : index
    %c0_183 = arith.constant 0 : index
    %542 = vector.load %arg15[%c0_182, %c0_183] : memref<1x64xf32, #tpu.memory_space<vmem>>, vector<1x64xf32>
    %c0_184 = arith.constant 0 : index
    %c0_185 = arith.constant 0 : index
    %543 = vector.load %arg16[%c0_184, %c0_185] : memref<1x64xf32, #tpu.memory_space<vmem>>, vector<1x64xf32>
    %cst_186 = arith.constant dense<0.000000e+00> : vector<2xf32>
    %544 = vector.multi_reduction <add>, %541, %cst_186 [1] : vector<2x64xf32> to vector<2xf32>
    %545 = vector.shape_cast %544 : vector<2xf32> to vector<2x1xf32>
    %cst_187 = arith.constant 6.400000e+01 : f32
    %546 = vector.broadcast %cst_187 : f32 to vector<2x1xf32>
    %547 = arith.divf %545, %546 : vector<2x1xf32>
    %548 = arith.mulf %541, %541 : vector<2x64xf32>
    %cst_188 = arith.constant dense<0.000000e+00> : vector<2xf32>
    %549 = vector.multi_reduction <add>, %548, %cst_188 [1] : vector<2x64xf32> to vector<2xf32>
    %550 = vector.shape_cast %549 : vector<2xf32> to vector<2x1xf32>
    %cst_189 = arith.constant 6.400000e+01 : f32
    %551 = vector.broadcast %cst_189 : f32 to vector<2x1xf32>
    %552 = arith.divf %550, %551 : vector<2x1xf32>
    %553 = arith.mulf %547, %547 : vector<2x1xf32>
    %554 = arith.subf %552, %553 : vector<2x1xf32>
    %cst_190 = arith.constant 0.000000e+00 : f32
    %555 = vector.broadcast %cst_190 : f32 to vector<2x1xf32>
    %556 = arith.maximumf %554, %555 : vector<2x1xf32>
    %557 = vector.broadcast %547 : vector<2x1xf32> to vector<2x64xf32>
    %558 = arith.subf %541, %557 : vector<2x64xf32>
    %cst_191 = arith.constant 9.99999997E-7 : f32
    %559 = vector.broadcast %cst_191 : f32 to vector<2x1xf32>
    %560 = arith.addf %556, %559 : vector<2x1xf32>
    %561 = math.rsqrt %560 : vector<2x1xf32>
    %562 = vector.broadcast %561 : vector<2x1xf32> to vector<2x64xf32>
    %563 = arith.mulf %558, %562 : vector<2x64xf32>
    %564 = vector.broadcast %542 : vector<1x64xf32> to vector<2x64xf32>
    %565 = arith.mulf %563, %564 : vector<2x64xf32>
    %566 = vector.broadcast %543 : vector<1x64xf32> to vector<2x64xf32>
    %567 = arith.addf %565, %566 : vector<2x64xf32>
    %c0_192 = arith.constant 0 : index
    %c0_193 = arith.constant 0 : index
    %568 = vector.load %arg20[%c0_192, %c0_193] : memref<2x64xf32, #tpu.memory_space<vmem>>, vector<2x64xf32>
    tpu.vector_store %arg20[%c0_192, %c0_193], %567 {strides = array<i32>} : memref<2x64xf32, #tpu.memory_space<vmem>>, vector<2x64xf32>,
    %569 = arith.truncf %567 : vector<2x64xf32> to vector<2x64xbf16>
    %c0_194 = arith.constant 0 : index
    %c0_195 = arith.constant 0 : index
    %570 = vector.load %arg17[%c0_194, %c0_195] : memref<64x128xbf16, #tpu.memory_space<vmem>>, vector<64x128xbf16>
    %cst_196 = arith.constant dense<0.000000e+00> : vector<2x128xf32>
    %571 = tpu.matmul %569, %570, %cst_196 {dimension_numbers = #tpu.dot_dimension_numbers<[1], [0], [0], [1], [0, 0, 1, 1], [], []>} : vector<2x64xbf16>, vector<64x128xbf16>, vector<2x128xf32> -> vector<2x128xf32>
    %c0_197 = arith.constant 0 : index
    %c0_198 = arith.constant 0 : index
    %572 = vector.load %arg18[%c0_197, %c0_198] : memref<1x128xf32, #tpu.memory_space<vmem>>, vector<1x128xf32>
    %573 = vector.broadcast %572 : vector<1x128xf32> to vector<2x128xf32>
    %574 = arith.addf %571, %573 : vector<2x128xf32>
    %c0_199 = arith.constant 0 : index
    %c0_200 = arith.constant 0 : index
    %575 = vector.load %arg19[%c0_199, %c0_200] : memref<2x128xf32, #tpu.memory_space<vmem>>, vector<2x128xf32>
    tpu.vector_store %arg19[%c0_199, %c0_200], %574 {strides = array<i32>} : memref<2x128xf32, #tpu.memory_space<vmem>>, vector<2x128xf32>,
    return
  }
}

</mosaic_0001>

<bundles_post_ra>
// kernel: vitzoo_forward.1
= control target key start
LH: loop header
LB: loop body
LE: loop exit
PB: predicated region body
PF: predicated region fallthrough
CT: control target
= control target key end

     0   :  { %s8365_s0 = inlined_call_operand.vmem [shape: bf16[48,48], index: 0, kind: input, shape index: {}]   ;;  %s8366_s1 = inlined_call_operand.vmem [shape: bf16[48,64], index: 1, kind: input, shape index: {}]   ;;  %s8367_s2 = inlined_call_operand.vmem [shape: f32[48,64], index: 2, kind: input, shape index: {}]   ;;  %s8368_s3 = inlined_call_operand.vmem [shape: f32[2,1,64], index: 3, kind: input, shape index: {}]   ;;  %s8369_s4 = inlined_call_operand.vmem [shape: f32[2,1,64], index: 4, kind: input, shape index: {}]   ;;  %s8370_s5 = inlined_call_operand.vmem [shape: bf16[2,64,192], index: 5, kind: input, shape index: {}]   ;;  %s8371_s6 = inlined_call_operand.vmem [shape: f32[2,1,192], index: 6, kind: input, shape index: {}]   ;;  %s8372_s7 = inlined_call_operand.vmem [shape: bf16[2,64,64], index: 7, kind: input, shape index: {}]   ;;  %s8373_s8 = inlined_call_operand.vmem [shape: f32[2,1,64], index: 8, kind: input, shape index: {}]   ;;  %s8374_s9 = inlined_call_operand.vmem [shape: f32[2,1,64], index: 9, kind: input, shape index: {}]   ;;  %s8375_s10 = inlined_call_operand.vmem [shape: f32[2,1,64], index: 10, kind: input, shape index: {}]   ;;  %s8376_s11 = inlined_call_operand.vmem [shape: bf16[2,64,256], index: 11, kind: input, shape index: {}]   ;;  %s8377_s12 = inlined_call_operand.vmem [shape: f32[2,1,256], index: 12, kind: input, shape index: {}]   ;;  %s8378_s13 = inlined_call_operand.vmem [shape: bf16[2,256,64], index: 13, kind: input, shape index: {}]   ;;  %s8379_s14 = inlined_call_operand.vmem [shape: f32[2,1,64], index: 14, kind: input, shape index: {}]   ;;  %s8380_s15 = inlined_call_operand.vmem [shape: f32[1,64], index: 15, kind: input, shape index: {}]   ;;  %s8381_s16 = inlined_call_operand.vmem [shape: f32[1,64], index: 16, kind: input, shape index: {}]   ;;  %s8382_s17 = inlined_call_operand.vmem [shape: bf16[64,128], index: 17, kind: input, shape index: {}]   ;;  %s8383_s18 = inlined_call_operand.vmem [shape: f32[1,128], index: 18, kind: input, shape index: {}]   ;;  %s8384_s19 = inlined_call_operand.hbm [shape: f32[2,128], index: 19, kind: output, shape index: {0}]   ;;  %s8385_s20 = inlined_call_operand.hbm [shape: f32[2,64], index: 20, kind: output, shape index: {1}]  }
   0x1   :  { %8399 = sst [smem:[#allocation8_spill]] %s8365_s0 }
   0x2   :  { %8400 = sst [smem:[#allocation9_spill]] %s8366_s1 }
   0x3   :  { %8401 = sst [smem:[#allocation10_spill]] %s8367_s2 }
   0x4   :  { %8402 = sst [smem:[#allocation11_spill]] %s8368_s3 }
   0x5   :  { %8403 = sst [smem:[#allocation12_spill]] %s8369_s4 }
   0x6   :  { %26 = vsyncpa [#allocation3], 0  ;;  %s8404_s23 = sld [smem:[#allocation9_spill]]  ;;  %v6529_v1 = vmov 0.0   ;;  %vm6530_vm0 = vmmov 0   ;;  %s8405_s28 = sld [smem:[#allocation8_spill]] }
   0x7   :  { %5550 = vmatprep.subr.bf16.mxu0 %v6529_v1  ;;  %5556 = vmatprep.mubr.msk.bf16.mxu0 %vm6530_vm0, %v6529_v1  ;;  %vm122_vm1 = vcmask 392192  }
   0xc   :  { %v6093_v0 = vld [vmem:[%s8404_s23] sm:$0xff]   ;;  %v6094_v2 = vld [vmem:[%s8404_s23 + $0x8] sm:$0xff]   ;;  %v6095_v3 = vld [vmem:[%s8404_s23 + $0x10] sm:$0xff]  }
   0xd   :  { %5551 = vmatpush3.bf16.msra.mxu0 %v6093_v0  ;;  %v6096_v4 = vld [vmem:[%s8405_s28] sm:$0xff]   ;;  %v6097_v5 = vld [vmem:[%s8405_s28 + $0x8] sm:$0xff]   ;;  %v6098_v6 = vld [vmem:[%s8405_s28 + $0x10] sm:$0xff]  }
   0xe   :  { %5552 = vmatprep.subr.bf16.mxu0 %v6529_v1 }
  0x11   :  { %5553 = vmatpush3.bf16.msra.mxu0 %v6094_v2 }
  0x12   :  { %5554 = vmatprep.subr.bf16.mxu0 %v6529_v1 }
  0x15   :  { %5555 = vmatpush3.bf16.msra.mxu0 %v6095_v3 }
  0x18   :  { %5557 = vmatmul.mubr.msk.bf16.vlgmr.msra.gmra.mrb[0].mxu0 %vm122_vm1, %v6096_v4 }
  0x19   :  { %5560 = vmatprep.mubr.msk.bf16.mxu0 %vm6530_vm0, %v6529_v1 }
  0x20   :  { %5561 = vmatmul.mubr.msk.bf16.gmra.mrb[4].mxu0 %vm122_vm1, %v6097_v5 }
  0x21   :  { %5564 = vmatprep.mubr.msk.bf16.mxu0 %vm6530_vm0, %v6529_v1 }
  0x28   :  { %5565 = vmatmul.mubr.msk.bf16.gmra.mrb[8].mxu0 %vm122_vm1, %v6098_v6 }
  0x29   :  { %27 = vsyncpa [#allocation5], 0  ;;  %s8406_s22 = sld [smem:[#allocation10_spill]]  ;;  %vm191_vm2 = vcmask 523264   ;;  %v6101_v49 = vld [vmem:[%s8370_s5 + $0x4] ss:$8 sps:$4 sm:$0xff]  }
  0x2a   :  { %v6099_v50 = vld [vmem:[%s8370_s5] ss:$8 sps:$4 sm:$0xff]   ;;  %385 = vmatprep.subr.bf16.mxu0 %v6101_v49  ;;  %5844 = vmatprep.subr.bf16.mxu1 %v6101_v49  ;;  %v6104_v51 = vld [vmem:[%s8370_s5 + $0x14] ss:$8 sps:$4 sm:$0xff]   ;;  %v6102_v52 = vld [vmem:[%s8370_s5 + $0x10] ss:$8 sps:$4 sm:$0xff]  }
  0x2b   :  { %386 = vmatpush1.bf16.msra.mxu0 %v6099_v50  ;;  %5848 = vmatpush1.bf16.msra.mxu1 %v6099_v50  ;;  %v6107_v53 = vld [vmem:[%s8370_s5 + $0x24] ss:$8 sps:$4 sm:$0xff]   ;;  %v6105_v54 = vld [vmem:[%s8370_s5 + $0x20] ss:$8 sps:$4 sm:$0xff]   ;;  %v6110_v55 = vld [vmem:[%s8370_s5 + $0x34] ss:$8 sps:$4 sm:$0xff]  }
  0x2c   :  { %387 = vmatprep.subr.bf16.mxu0 %v6104_v51  ;;  %5845 = vmatprep.subr.bf16.mxu1 %v6104_v51  ;;  %v6108_v56 = vld [vmem:[%s8370_s5 + $0x30] ss:$8 sps:$4 sm:$0xff]   ;;  %v6531_v57 = vmov 0   ;;  %s8407_s1 = sld [smem:[#allocation11_spill]]  ;;  %s8408_s24 = sld [smem:[#allocation12_spill]]  ;;  %vm500_vm3 = vcmask 130048  }
  0x2d   :  { %417 = vmatprep.mubr.bf16.mxu0 %v6531_v57  ;;  %427 = vmatprep.mubr.bf16.mxu1 %v6531_v57  ;;  %s6532_s3 = smov 64   ;;  %vm597_vm4 = vcmask 1043456   ;;  %s6533_s26 = smov 112   ;;  %vm555_vm6 = vcmask 195584   ;;  %vm1157_vm7 = vcmask 261120   ;;  %vm4950_vm8 = vcmask 1040384  }
  0x2e   :  { %s6534_s27 = smov 96   ;;  %s8397_s28 = smov 80   ;;  %vm4954_vm9 = vcmask 517120  }
  0x2f   :  { %v83_v7 = vld [vmem:[%s8406_s22] sm:$0xff]  ;;  %v84_v9 = vld [vmem:[%s8406_s22 + $0x8] sm:$0xff]  ;;  %v85_v19 = vld [vmem:[%s8406_s22 + $0x10] sm:$0xff]  ;;  %388 = vmatpush1.bf16.msra.mxu0 %v6102_v52  ;;  %5849 = vmatpush1.bf16.msra.mxu1 %v6102_v52  ;;  %s8395_s4 = smov 16   ;;  %s8393_s2 = smov 32  }
  0x30   :  { %v86_v22 = vld [vmem:[%s8406_s22 + $0x18] sm:$0xff]  ;;  %v87_v33 = vld [vmem:[%s8406_s22 + $0x20] sm:$0xff]  ;;  %v88_v36 = vld [vmem:[%s8406_s22 + $0x28] sm:$0xff]  ;;  %389 = vmatprep.subr.bf16.mxu0 %v6107_v53  ;;  %5846 = vmatprep.subr.bf16.mxu1 %v6107_v53  ;;  %s8391_s30 = smov 48  }
  0x33   :  { %390 = vmatpush1.bf16.msra.mxu0 %v6105_v54  ;;  %5850 = vmatpush1.bf16.msra.mxu1 %v6105_v54 }
  0x34   :  { %391 = vmatprep.subr.bf16.mxu0 %v6110_v55  ;;  %5847 = vmatprep.subr.bf16.mxu1 %v6110_v55 }
  0x37   :  { %392 = vmatpush1.bf16.msra.mxu0 %v6108_v56  ;;  %5851 = vmatpush1.bf16.msra.mxu1 %v6108_v56  ;;  %v5108_v56 = vld [vmem:[%s8408_s24] ss:$0 sm:$0xff] }
  0xeb   :  { %v166_v8 = vpop.f32.mrb[0].mxu0 }
  0xec   :  { %v6683_v10 = vadd.f32 %v166_v8, %v83_v7  ;;  %v5558_v11 = vpop.f32.mrb[1].mxu0 }
  0xed   :  { %v169_v12 = vpop.f32.mrb[2].mxu0 }
  0xee   :  { %v6685_v13 = vadd.f32 %v169_v12, %v84_v9  ;;  %v5559_v14 = vpop.f32.mrb[3].mxu0  ;;  %v192_v15 = vsel %vm191_vm2, %v6683_v10, 0.0  ;;  %v217_v16 = vmul.f32 %v6683_v10, %v6683_v10 }
  0xef   :  { %193 = vadd.xlane.f32.xlu0 %v192_v15 }
  0xf0   :  { %v223_v17 = vsel %vm191_vm2, %v217_v16, 0.0  ;;  %v218_v18 = vmul.f32 %v6685_v13, %v6685_v13  ;;  %v195_v20 = vsel %vm191_vm2, %v6685_v13, 0.0 }
  0xf1   :  { %224 = vadd.xlane.f32.xlu1 %v223_v17 }
  0xf2   :  { %v226_v25 = vsel %vm191_vm2, %v218_v18, 0.0 }
  0xf3   :  { %196 = vadd.xlane.f32.xlu0 %v195_v20  ;;  %v174_v21 = vpop.f32.mrb[4].mxu0 }
  0xf4   :  { %v6702_v23 = vadd.f32 %v174_v21, %v85_v19  ;;  %v5562_v24 = vpop.f32.mrb[5].mxu0 }
  0xf5   :  { %227 = vadd.xlane.f32.xlu1 %v226_v25  ;;  %v177_v26 = vpop.f32.mrb[6].mxu0 }
  0xf6   :  { %v6705_v27 = vadd.f32 %v177_v26, %v86_v22  ;;  %v5563_v28 = vpop.f32.mrb[7].mxu0  ;;  %v198_v29 = vsel %vm191_vm2, %v6702_v23, 0.0  ;;  %v219_v30 = vmul.f32 %v6702_v23, %v6702_v23 }
  0xf7   :  { %199 = vadd.xlane.f32.xlu0 %v198_v29 }
  0xf8   :  { %v201_v31 = vsel %vm191_vm2, %v6705_v27, 0.0  ;;  %v220_v32 = vmul.f32 %v6705_v27, %v6705_v27  ;;  %v229_v34 = vsel %vm191_vm2, %v219_v30, 0.0 }
  0xf9   :  { %202 = vadd.xlane.f32.xlu1 %v201_v31 }
  0xfa   :  { %v232_v39 = vsel %vm191_vm2, %v220_v32, 0.0 }
  0xfb   :  { %230 = vadd.xlane.f32.xlu0 %v229_v34  ;;  %v182_v35 = vpop.f32.mrb[8].mxu0 }
  0xfc   :  { %v6722_v37 = vadd.f32 %v182_v35, %v87_v33  ;;  %v5566_v38 = vpop.f32.mrb[9].mxu0 }
  0xfd   :  { %233 = vadd.xlane.f32.xlu1 %v232_v39  ;;  %v185_v40 = vpop.f32.mrb[10].mxu0 }
  0xfe   :  { %v6725_v41 = vadd.f32 %v185_v40, %v88_v36  ;;  %v5567_v42 = vpop.f32.mrb[11].mxu0  ;;  %v204_v43 = vsel %vm191_vm2, %v6722_v37, 0.0  ;;  %v221_v44 = vmul.f32 %v6722_v37, %v6722_v37 }
  0xff   :  { %205 = vadd.xlane.f32.xlu0 %v204_v43 }
 0x100   :  { %v207_v45 = vsel %vm191_vm2, %v6725_v41, 0.0  ;;  %v222_v46 = vmul.f32 %v6725_v41, %v6725_v41  ;;  %v235_v47 = vsel %vm191_vm2, %v221_v44, 0.0  ;;  %v5107_v44 = vld [vmem:[%s8407_s1] ss:$0 sm:$0xff] }
 0x101   :  { %208 = vadd.xlane.f32.xlu1 %v207_v45 }
 0x102   :  { %v238_v48 = vsel %vm191_vm2, %v222_v46, 0.0 }
 0x103   :  { %236 = vadd.xlane.f32.xlu0 %v235_v47 }
 0x105   :  { %239 = vadd.xlane.f32.xlu1 %v238_v48 }
 0x17c   :  { %v194_v58 = vpop.xlane.xlu0 %193 }
 0x17d   :  { %v211_v59 = vmul.f32 0.015625, %v194_v58 }
 0x17e   :  { %v225_v60 = vpop.xlane.xlu1 %224 }
 0x17f   :  { %v247_v61 = vmul.f32 %v211_v59, %v211_v59  ;;  %v241_v62 = vmul.f32 0.015625, %v225_v60  ;;  %v265_v33 = vsub.f32 %v6683_v10, %v211_v59 }
 0x180   :  { %v197_v63 = vpop.xlane.xlu0 %196 }
 0x181   :  { %v253_v0 = vsub.f32 %v241_v62, %v247_v61  ;;  %v212_v2 = vmul.f32 0.015625, %v197_v63 }
 0x182   :  { %v228_v3 = vpop.xlane.xlu1 %227 }
 0x183   :  { %v259_v4 = vmax.f32 %v253_v0, 0.0  ;;  %v248_v5 = vmul.f32 %v212_v2, %v212_v2  ;;  %v242_v6 = vmul.f32 0.015625, %v228_v3  ;;  %v266_v48 = vsub.f32 %v6685_v13, %v212_v2 }
 0x184   :  { %v200_v7 = vpop.xlane.xlu0 %199 }
 0x185   :  { %v271_v8 = vadd.f32 1e-06, %v259_v4  ;;  %v254_v9 = vsub.f32 %v242_v6, %v248_v5  ;;  %v213_v11 = vmul.f32 0.015625, %v200_v7 }
 0x186   :  { %v203_v12 = vpop.xlane.xlu1 %202 }
 0x187   :  { %6191 = vrsqrt.f32 %v271_v8  ;;  %v260_v14 = vmax.f32 %v254_v9, 0.0  ;;  %v214_v15 = vmul.f32 0.015625, %v203_v12  ;;  %v249_v18 = vmul.f32 %v213_v11, %v213_v11 }
 0x188   :  { %v231_v16 = vpop.xlane.xlu0 %230  ;;  %v267_v60 = vsub.f32 %v6702_v23, %v213_v11 }
 0x189   :  { %v272_v17 = vadd.f32 1e-06, %v260_v14  ;;  %v243_v19 = vmul.f32 0.015625, %v231_v16  ;;  %v250_v21 = vmul.f32 %v214_v15, %v214_v15  ;;  %v268_v0 = vsub.f32 %v6705_v27, %v214_v15 }
 0x18a   :  { %v234_v20 = vpop.xlane.xlu1 %233 }
 0x18b   :  { %6193 = vrsqrt.f32 %v272_v17  ;;  %v255_v22 = vsub.f32 %v243_v19, %v249_v18  ;;  %v244_v24 = vmul.f32 0.015625, %v234_v20 }
 0x18c   :  { %v206_v25 = vpop.xlane.xlu0 %205 }
 0x18d   :  { %v261_v26 = vmax.f32 %v255_v22, 0.0  ;;  %v256_v28 = vsub.f32 %v244_v24, %v250_v21  ;;  %v215_v29 = vmul.f32 0.015625, %v206_v25  ;;  %v67_v25 = vlaneseq }
 0x18e   :  { %v209_v30 = vpop.xlane.xlu1 %208 }
 0x18f   :  { %v273_v31 = vadd.f32 1e-06, %v261_v26  ;;  %v262_v32 = vmax.f32 %v256_v28, 0.0  ;;  %v216_v34 = vmul.f32 0.015625, %v209_v30  ;;  %v251_v39 = vmul.f32 %v215_v29, %v215_v29 }
 0x190   :  { %v237_v35 = vpop.xlane.xlu0 %236  ;;  %v269_v8 = vsub.f32 %v6722_v37, %v215_v29  ;;  %v327_v26 = vshrl.u32 %v67_v25, 7  ;;  %v324_v29 = vld [vmem:[%s8371_s6] sm:$0x3] }
 0x191   :  { %v6192_v36 = vpop.eup %6191  ;;  %6195 = vrsqrt.f32 %v273_v31  ;;  %v274_v38 = vadd.f32 1e-06, %v262_v32  ;;  %v245_v40 = vmul.f32 0.015625, %v237_v35  ;;  %v252_v45 = vmul.f32 %v216_v34, %v216_v34 }
 0x192   :  { %v283_v42 = vmul.f32 %v6192_v36, %v265_v33  ;;  %v240_v43 = vpop.xlane.xlu1 %239  ;;  %v270_v11 = vsub.f32 %v6725_v41, %v216_v34  ;;  %v6780_v28 = vsub.s32 0, %v327_v26  ;;  %v6785_v30 = vsub.s32 1, %v327_v26 }
 0x193   :  { %6197 = vrsqrt.f32 %v274_v38  ;;  %v257_v46 = vsub.f32 %v245_v40, %v251_v39  ;;  %v246_v47 = vmul.f32 0.015625, %v240_v43 }
 0x194   :  { %v295_v52 = vmul.f32 %v5107_v44, %v283_v42  ;;  %v329_v31 = vrot.slane %v324_v29, %v6780_v28  ;;  %v333_v33 = vrot.slane %v324_v29, %v6785_v30 }
 0x195   :  { %v6194_v49 = vpop.eup %6193  ;;  %v263_v50 = vmax.f32 %v257_v46, 0.0  ;;  %v258_v51 = vsub.f32 %v246_v47, %v252_v45 }
 0x196   :  { %v284_v53 = vmul.f32 %v6194_v49, %v266_v48  ;;  %v307_v61 = vadd.f32 %v5108_v56, %v295_v52 }
 0x197   :  { %v275_v54 = vadd.f32 1e-06, %v263_v50  ;;  %v264_v55 = vmax.f32 %v258_v51, 0.0 }
 0x198   :  { %v296_v58 = vmul.f32 %v5107_v44, %v284_v53 }
 0x199   :  { %6199 = vrsqrt.f32 %v275_v54  ;;  %v276_v59 = vadd.f32 1e-06, %v264_v55 }
 0x19a   :  { %v308_v62 = vadd.f32 %v5108_v56, %v296_v58 }
 0x19b   :  { %v6196_v63 = vpop.eup %6195  ;;  %6201 = vrsqrt.f32 %v276_v59 }
 0x19c   :  { %v313_v2 = vpack.c.bf16 %v308_v62, %v307_v61  ;;  %v285_v3 = vmul.f32 %v6196_v63, %v267_v60 }
 0x19d   :  { %v6198_v4 = vpop.eup %6197 }
 0x19e   :  { %5117 = vmatmul.mubr.msk.bf16.vlgmr.msra.gmra.mrb[12].mxu0 %vm191_vm2, %v313_v2  ;;  %v286_v5 = vmul.f32 %v6198_v4, %v268_v0  ;;  %v297_v6 = vmul.f32 %v5107_v44, %v285_v3 }
 0x1a0   :  { %v298_v7 = vmul.f32 %v5107_v44, %v286_v5  ;;  %v309_v9 = vadd.f32 %v5108_v56, %v297_v6 }
 0x1a2   :  { %v310_v12 = vadd.f32 %v5108_v56, %v298_v7 }
 0x1a3   :  { %v6200_v14 = vpop.eup %6199 }
 0x1a4   :  { %v314_v16 = vpack.c.bf16 %v310_v12, %v309_v9  ;;  %v287_v17 = vmul.f32 %v6200_v14, %v269_v8 }
 0x1a5   :  { %v6202_v18 = vpop.eup %6201 }
 0x1a6   :  { %5118 = vmatmul.mubr.msk.bf16.vlgmr.msra.gmra.mrb[0].mxu1 %vm191_vm2, %v314_v16  ;;  %v288_v15 = vmul.f32 %v6202_v18, %v270_v11  ;;  %v299_v19 = vmul.f32 %v5107_v44, %v287_v17 }
 0x1a7   :  { %437 = vmatprep.mubr.bf16.mxu1 %v6531_v57 }
 0x1a8   :  { %v300_v20 = vmul.f32 %v5107_v44, %v288_v15  ;;  %v311_v21 = vadd.f32 %v5108_v56, %v299_v19 }
 0x1aa   :  { %v312_v22 = vadd.f32 %v5108_v56, %v300_v20 }
 0x1ac   :  { %v315_v24 = vpack.c.bf16 %v312_v22, %v311_v21 }
 0x1ae   :  { %5119 = vmatmul.mubr.msk.bf16.gmra.mrb[4].mxu1 %vm191_vm2, %v315_v24 }
 0x271   :  { %v419_v32 = vpop.f32.mrb[12].mxu0 }
 0x272   :  { %v421_v34 = vpop.f32.mrb[13].mxu0  ;;  %v420_v36 = vadd.f32 %v419_v32, %v329_v31 }
 0x273   :  { %v423_v35 = vpop.f32.mrb[14].mxu0  ;;  %v422_v40 = vadd.f32 %v421_v34, %v333_v33 }
 0x274   :  { %v424_v38 = vadd.f32 %v423_v35, %v329_v31  ;;  %v425_v39 = vpop.f32.mrb[15].mxu0 }
 0x275   :  { %v426_v42 = vadd.f32 %v425_v39, %v333_v33 }
 0x276   :  { %v5881_v43 = vpack.i.bf16 %v424_v38, %v420_v36  ;;  %v448_v44 = vpack.c.bf16 %v424_v38, %v420_v36 }
 0x277   :  { %v6789_v45 = vpack.c.bf16 %v426_v42, %v422_v40 }
 0x278   :  { %5882 = vrot.lane.b32.xlu0 %v5881_v43, %s6532_s3  ;;  %5570 = vmatprep.mubr.msk.bf16.mxu0 %vm500_vm3, %v448_v44 }
 0x279   :  { %v429_v46 = vpop.f32.mrb[0].mxu1  ;;  %5574 = vmatprep.subr.bf16.mxu1 %v6789_v45 }
 0x27a   :  { %v430_v47 = vadd.f32 %v429_v46, %v329_v31  ;;  %v431_v48 = vpop.f32.mrb[1].mxu1  ;;  %5575 = vmatpush3.bf16.msra.mxu1 %v6789_v45 }
 0x27b   :  { %v432_v49 = vadd.f32 %v431_v48, %v333_v33  ;;  %v433_v50 = vpop.f32.mrb[2].mxu1 }
 0x27c   :  { %v6795_v51 = vpack.c.bf16 %v430_v47, %v430_v47  ;;  %v434_v52 = vadd.f32 %v433_v50, %v329_v31  ;;  %v435_v53 = vpop.f32.mrb[3].mxu1 }
 0x27d   :  { %v6797_v54 = vpack.c.bf16 %v432_v49, %v432_v49  ;;  %v436_v55 = vadd.f32 %v435_v53, %v333_v33 }
 0x27e   :  { %v5886_v56 = vpack.i.bf16 %v434_v52, %v430_v47  ;;  %653 = vrot.lane.b32.xlu0 %v6795_v51, %s6533_s26 }
 0x27f   :  { %5852 = vmatprep.subr.msk.bf16.mxu1 %vm597_vm4, %v6797_v54  ;;  %v599_v58 = vsel %vm597_vm4, %v6797_v54, 0 }
 0x280   :  { %5577 = vmatpush3.bf16.msra.mxu1 %v599_v58  ;;  %5887 = vrot.lane.b32.xlu1 %v5886_v56, %s6532_s3 }
 0x281   :  { %v439_v59 = vpop.f32.mrb[4].mxu1 }
 0x282   :  { %v440_v60 = vadd.f32 %v439_v59, %v329_v31  ;;  %v441_v61 = vpop.f32.mrb[5].mxu1  ;;  %808 = vrot.lane.b32.xlu0 %v448_v44, %s6534_s27 }
 0x283   :  { %v442_v62 = vadd.f32 %v441_v61, %v333_v33  ;;  %v443_v63 = vpop.f32.mrb[6].mxu1 }
 0x284   :  { %v6807_v0 = vpack.c.bf16 %v440_v60, %v434_v52  ;;  %v444_v2 = vadd.f32 %v443_v63, %v329_v31  ;;  %v445_v3 = vpop.f32.mrb[7].mxu1  ;;  %651 = vrot.lane.b32.xlu1 %v448_v44, %s6533_s26 }
 0x285   :  { %v6810_v4 = vpack.c.bf16 %v442_v62, %v436_v55  ;;  %v6812_v5 = vadd.f32 %v445_v3, %v333_v33 }
 0x286   :  { %v5891_v6 = vpack.i.bf16 %v444_v2, %v440_v60  ;;  %810 = vrot.lane.b32.xlu0 %v6795_v51, %s6534_s27  ;;  %v6822_v7 = vpack.c.bf16 %v444_v2, %v444_v2 }
 0x288   :  { %5892 = vrot.lane.b32.xlu1 %v5891_v6, %s6532_s3 }
 0x28a   :  { %963 = vrot.lane.b32.xlu0 %v448_v44, %s8397_s28 }
 0x28e   :  { %965 = vrot.lane.b32.xlu0 %v6795_v51, %s8397_s28 }
 0x292   :  { %1364 = vrot.lane.b32.xlu0 %v6807_v0, %s6533_s26 }
 0x296   :  { %1366 = vrot.lane.b32.xlu0 %v6822_v7, %s6533_s26 }
 0x29a   :  { %1521 = vrot.lane.b32.xlu0 %v6807_v0, %s6534_s27 }
 0x29e   :  { %1523 = vrot.lane.b32.xlu0 %v6822_v7, %s6534_s27 }
 0x2a2   :  { %1676 = vrot.lane.b32.xlu0 %v6807_v0, %s8397_s28 }
 0x2a6   :  { %1678 = vrot.lane.b32.xlu0 %v6822_v7, %s8397_s28 }
 0x2aa   :  { %748 = vrot.lane.b32.xlu0 %v6797_v54, %s6533_s26 }
 0x2ea   :  { %v5883_v8 = vpop.permute.xlu0 %5882 }
 0x2eb   :  { %v5884_v14 = vunpack.i.l.bf16 %v5883_v8  ;;  %v5885_v18 = vunpack.i.h.bf16 %v5883_v8 }
 0x2f0   :  { %v654_v32 = vpop.permute.xlu0 %653 }
 0x2f2   :  { %v5888_v9 = vpop.permute.xlu1 %5887 }
 0x2f3   :  { %v5890_v12 = vunpack.i.h.bf16 %v5888_v9  ;;  %v5889_v21 = vunpack.i.l.bf16 %v5888_v9 }
 0x2f4   :  { %v809_v38 = vpop.permute.xlu0 %808 }
 0x2f5   :  { %v5896_v11 = vpack.i.bf16 %v5890_v12, %v5884_v14 }
 0x2f6   :  { %v652_v16 = vpop.permute.xlu1 %651 }
 0x2f7   :  { %5897 = vxpose.xlu1.b32.start [1/3] (short) (narrow) %v5896_v11, 64 }
 0x2f8   :  { %v811_v43 = vpop.permute.xlu0 %810 }
 0x2fa   :  { %v5893_v17 = vpop.permute.xlu1 %5892 }
 0x2fb   :  { %v5894_v15 = vunpack.i.l.bf16 %v5893_v17  ;;  %v5895_v19 = vunpack.i.h.bf16 %v5893_v17 }
 0x2fc   :  { %v964_v50 = vpop.permute.xlu0 %963 }
 0x2fd   :  { %v5898_v20 = vpack.i.bf16 %v5894_v15, %v5885_v18  ;;  %v5900_v22 = vpack.i.bf16 %v5895_v19, %v5889_v21  ;;  %v68_v15 = vand.u32 127, %v67_v25  ;;  %v6536_v19 = vmov -1e+30  }
 0x2ff   :  { %5899 = vxpose.xlu1.b32.cont [2/3] (short) (narrow) %v5898_v20, 64  ;;  %vm69_vm5 = vcmp.lt.s32.totalorder %v68_v15, 17 }
 0x300   :  { %v966_v56 = vpop.permute.xlu0 %965  ;;  %v6865_v20 = vsel %vm69_vm5, 0.0, %v6536_v19 }
 0x303   :  { %5901 = vxpose.xlu1.b32.end [3/3] (short) (narrow) %v5900_v22, 64 }
 0x304   :  { %v1365_v63 = vpop.permute.xlu0 %1364 }
 0x308   :  { %v1367_v8 = vpop.permute.xlu0 %1366 }
 0x30c   :  { %v1522_v14 = vpop.permute.xlu0 %1521 }
 0x310   :  { %v1524_v17 = vpop.permute.xlu0 %1523 }
 0x314   :  { %v1677_v18 = vpop.permute.xlu0 %1676 }
 0x335   :  { %746 = vrot.lane.b32.xlu1 %v6789_v45, %s6533_s26 }
 0x339   :  { %901 = vrot.lane.b32.xlu1 %v6789_v45, %s6534_s27 }
 0x37b   :  { %v5902_v24 = vpop.trf.xlu1 }
 0x37c   :  { %v5903_v31 = vunpack.i.l.bf16 %v5902_v24  ;;  %v5906_v59 = vunpack.i.h.bf16 %v5902_v24 }
 0x37f   :  { %v5907_v26 = vpop.trf.xlu1 }
 0x380   :  { %v5908_v29 = vunpack.i.l.bf16 %v5907_v26  ;;  %v5911_v55 = vunpack.i.h.bf16 %v5907_v26 }
 0x382   :  { %v494_v33 = vpack.c.bf16 %v5908_v29, %v5903_v31  ;;  %v1210_v60 = vpack.c.bf16 %v5911_v55, %v5906_v59 }
 0x383   :  { %v5912_v34 = vpop.trf.xlu1 }
 0x384   :  { %5568 = vmatprep.subr.bf16.mxu0 %v494_v33  ;;  %v5913_v35 = vunpack.i.l.bf16 %v5912_v34  ;;  %v5916_v62 = vunpack.i.h.bf16 %v5912_v34 }
 0x385   :  { %5569 = vmatpush3.bf16.msra.mxu0 %v494_v33 }
 0x387   :  { %v5917_v36 = vpop.trf.xlu1 }
 0x388   :  { %5571 = vmatmul.mubr.msk.bf16.vlgmr.msra.gmra.mrb[16].mxu0 %vm500_vm3, %v6795_v51  ;;  %v5918_v39 = vunpack.i.l.bf16 %v5917_v36  ;;  %v5921_v61 = vunpack.i.h.bf16 %v5917_v36 }
 0x389   :  { %5584 = vmatprep.mubr.msk.bf16.mxu0 %vm500_vm3, %v652_v16 }
 0x38a   :  { %v495_v40 = vpack.c.bf16 %v5918_v39, %v5913_v35  ;;  %v1211_v2 = vpack.c.bf16 %v5921_v61, %v5916_v62 }
 0x38b   :  { %v5922_v42 = vpop.trf.xlu1 }
 0x38c   :  { %5582 = vmatprep.subr.bf16.mxu0 %v495_v40  ;;  %v5923_v44 = vunpack.i.l.bf16 %v5922_v42  ;;  %v5926_v3 = vunpack.i.h.bf16 %v5922_v42 }
 0x38d   :  { %5583 = vmatpush3.bf16.msra.mxu0 %v495_v40 }
 0x38f   :  { %v5927_v46 = vpop.trf.xlu1 }
 0x390   :  { %v5928_v47 = vunpack.i.l.bf16 %v5927_v46  ;;  %5585 = vmatmul.mubr.msk.bf16.vlgmr.msra.gmra.mrb[20].mxu0 %vm500_vm3, %v654_v32  ;;  %v5931_v6 = vunpack.i.h.bf16 %v5927_v46 }
 0x391   :  { %5598 = vmatprep.mubr.msk.bf16.mxu0 %vm500_vm3, %v809_v38 }
 0x392   :  { %v496_v48 = vpack.c.bf16 %v5928_v47, %v5923_v44  ;;  %v1212_v12 = vpack.c.bf16 %v5931_v6, %v5926_v3 }
 0x393   :  { %v5932_v49 = vpop.trf.xlu1 }
 0x394   :  { %5596 = vmatprep.subr.bf16.mxu0 %v496_v48  ;;  %v5933_v51 = vunpack.i.l.bf16 %v5932_v49  ;;  %v5936_v11 = vunpack.i.h.bf16 %v5932_v49 }
 0x395   :  { %5597 = vmatpush3.bf16.msra.mxu0 %v496_v48 }
 0x397   :  { %v5937_v52 = vpop.trf.xlu1 }
 0x398   :  { %v5938_v53 = vunpack.i.l.bf16 %v5937_v52  ;;  %5599 = vmatmul.mubr.msk.bf16.vlgmr.msra.gmra.mrb[24].mxu0 %vm500_vm3, %v811_v43  ;;  %v5941_v16 = vunpack.i.h.bf16 %v5937_v52 }
 0x399   :  { %5612 = vmatprep.mubr.msk.bf16.mxu0 %vm500_vm3, %v964_v50 }
 0x39a   :  { %v497_v58 = vpack.c.bf16 %v5938_v53, %v5933_v51 }
 0x39c   :  { %5610 = vmatprep.subr.bf16.mxu0 %v497_v58 }
 0x39d   :  { %5611 = vmatpush3.bf16.msra.mxu0 %v497_v58 }
 0x39e   :  { %5624 = vmatprep.subr.bf16.mxu0 %v1210_v60 }
 0x3a0   :  { %5613 = vmatmul.mubr.msk.bf16.vlgmr.msra.gmra.mrb[28].mxu0 %vm500_vm3, %v966_v56 }
 0x3a1   :  { %5625 = vmatpush3.bf16.msra.mxu0 %v1210_v60  ;;  %5626 = vmatprep.mubr.msk.bf16.mxu0 %vm500_vm3, %v6807_v0  ;;  %v1213_v0 = vpack.c.bf16 %v5941_v16, %v5936_v11 }
 0x3a2   :  { %5638 = vmatprep.subr.bf16.mxu0 %v1211_v2 }
 0x3a7   :  { %v6850_v9 = vpop.permute.xlu1 %746 }
 0x3a8   :  { %5588 = vmatprep.subr.bf16.mxu1 %v6850_v9  ;;  %5627 = vmatmul.mubr.msk.bf16.vlgmr.msra.gmra.mrb[32].mxu0 %vm500_vm3, %v6822_v7  ;;  %v1679_v7 = vpop.permute.xlu0 %1678 }
 0x3a9   :  { %5639 = vmatpush3.bf16.msra.mxu0 %v1211_v2  ;;  %5640 = vmatprep.mubr.msk.bf16.mxu0 %vm500_vm3, %v1365_v63 }
 0x3aa   :  { %5652 = vmatprep.subr.bf16.mxu0 %v1212_v12 }
 0x3b0   :  { %5641 = vmatmul.mubr.msk.bf16.vlgmr.msra.gmra.mrb[36].mxu0 %vm500_vm3, %v1367_v8 }
 0x3b1   :  { %5653 = vmatpush3.bf16.msra.mxu0 %v1212_v12  ;;  %5654 = vmatprep.mubr.msk.bf16.mxu0 %vm500_vm3, %v1522_v14 }
 0x3b2   :  { %5666 = vmatprep.subr.bf16.mxu0 %v1213_v0 }
 0x3b8   :  { %5655 = vmatmul.mubr.msk.bf16.vlgmr.msra.gmra.mrb[40].mxu0 %vm500_vm3, %v1524_v17 }
 0x3b9   :  { %5667 = vmatpush3.bf16.msra.mxu0 %v1213_v0  ;;  %5668 = vmatprep.mubr.msk.bf16.mxu0 %vm500_vm3, %v1677_v18 }
 0x3ba   :  { %5680 = vmatprep.subr.bf16.mxu0 %v6529_v1 }
 0x3c0   :  { %5669 = vmatmul.mubr.msk.bf16.vlgmr.msra.gmra.mrb[44].mxu0 %vm500_vm3, %v1679_v7 }
 0x3c1   :  { %5688 = vmatprep.mubr.msk.bf16.mxu0 %vm6530_vm0, %v6529_v1 }
 0x45b   :  { %v5572_v21 = vpop.f32.mrb[16].mxu0 }
 0x45c   :  { %v6868_v22 = vadd.f32 %v5572_v21, %v6865_v20  ;;  %v541_v24 = vpop.f32.mrb[17].mxu0 }
 0x45d   :  { %v5573_v26 = vpop.f32.mrb[18].mxu0  ;;  %v6871_v29 = vadd.f32 %v541_v24, %v6865_v20 }
 0x45e   :  { %v544_v31 = vpop.f32.mrb[19].mxu0  ;;  %v562_v32 = vsel %vm555_vm6, %v6868_v22, -inf }
 0x45f   :  { %v6876_v25 = vadd.f32 %v544_v31, %v6865_v20  ;;  %563 = vmax.xlane.f32.xlu0 %v562_v32  ;;  %v556_v34 = vsel %vm555_vm6, %v6871_v29, -inf }
 0x461   :  { %v559_v33 = vsel %vm555_vm6, %v6876_v25, -inf }
 0x462   :  { %560 = vmax.xlane.f32.xlu1 %v559_v33 }
 0x463   :  { %v5586_v35 = vpop.f32.mrb[20].mxu0  ;;  %557 = vmax.xlane.f32.xlu0 %v556_v34 }
 0x464   :  { %v6883_v36 = vadd.f32 %v5586_v35, %v6865_v20  ;;  %v695_v38 = vpop.f32.mrb[21].mxu0 }
 0x465   :  { %v5587_v39 = vpop.f32.mrb[22].mxu0  ;;  %v6886_v40 = vadd.f32 %v695_v38, %v6865_v20 }
 0x466   :  { %v698_v42 = vpop.f32.mrb[23].mxu0  ;;  %v715_v43 = vsel %vm555_vm6, %v6883_v36, -inf }
 0x467   :  { %716 = vmax.xlane.f32.xlu0 %v715_v43  ;;  %v6891_v44 = vadd.f32 %v698_v42, %v6865_v20  ;;  %v709_v46 = vsel %vm555_vm6, %v6886_v40, -inf }
 0x469   :  { %v712_v52 = vsel %vm555_vm6, %v6891_v44, -inf }
 0x46b   :  { %v5600_v47 = vpop.f32.mrb[24].mxu0  ;;  %710 = vmax.xlane.f32.xlu0 %v709_v46 }
 0x46c   :  { %v852_v48 = vpop.f32.mrb[25].mxu0  ;;  %v6896_v50 = vadd.f32 %v5600_v47, %v6865_v20 }
 0x46d   :  { %v5601_v49 = vpop.f32.mrb[26].mxu0  ;;  %v6901_v53 = vadd.f32 %v852_v48, %v6865_v20 }
 0x46e   :  { %v855_v51 = vpop.f32.mrb[27].mxu0  ;;  %v872_v55 = vsel %vm555_vm6, %v6896_v50, -inf }
 0x46f   :  { %713 = vmax.xlane.f32.xlu0 %v712_v52  ;;  %v6908_v60 = vadd.f32 %v855_v51, %v6865_v20  ;;  %v866_v62 = vsel %vm555_vm6, %v6901_v53, -inf }
 0x471   :  { %v869_v2 = vsel %vm555_vm6, %v6908_v60, -inf }
 0x473   :  { %v5614_v56 = vpop.f32.mrb[28].mxu0  ;;  %903 = vrot.lane.b32.xlu1 %v6797_v54, %s6534_s27  ;;  %873 = vmax.xlane.f32.xlu0 %v872_v55 }
 0x474   :  { %v1007_v58 = vpop.f32.mrb[29].mxu0  ;;  %v6913_v63 = vadd.f32 %v5614_v56, %v6865_v20 }
 0x475   :  { %v5615_v59 = vpop.f32.mrb[30].mxu0  ;;  %v6918_v12 = vadd.f32 %v1007_v58, %v6865_v20 }
 0x476   :  { %v1010_v61 = vpop.f32.mrb[31].mxu0  ;;  %v1027_v11 = vsel %vm555_vm6, %v6913_v63, -inf }
 0x477   :  { %867 = vmax.xlane.f32.xlu0 %v866_v62  ;;  %v6923_v16 = vadd.f32 %v1010_v61, %v6865_v20  ;;  %v1021_v0 = vsel %vm555_vm6, %v6918_v12, -inf }
 0x479   :  { %v1024_v21 = vsel %vm555_vm6, %v6923_v16, -inf }
 0x47b   :  { %v5628_v3 = vpop.f32.mrb[32].mxu0  ;;  %870 = vmax.xlane.f32.xlu0 %v869_v2 }
 0x47c   :  { %v1256_v6 = vpop.f32.mrb[33].mxu0  ;;  %v6943_v39 = vadd.f32 %v5628_v3, %v6865_v20 }
 0x47d   :  { %v5629_v8 = vpop.f32.mrb[34].mxu0  ;;  %v6951_v49 = vadd.f32 %v1256_v6, %v6865_v20 }
 0x47e   :  { %v1259_v14 = vpop.f32.mrb[35].mxu0  ;;  %v1276_v55 = vsel %vm555_vm6, %v6943_v39, -inf }
 0x47f   :  { %1028 = vmax.xlane.f32.xlu0 %v1027_v11  ;;  %v6928_v15 = vadd.f32 %v1259_v14, %v6865_v20  ;;  %v1270_v61 = vsel %vm555_vm6, %v6951_v49, -inf }
 0x481   :  { %v1273_v26 = vsel %vm555_vm6, %v6928_v15, -inf }
 0x483   :  { %v5642_v17 = vpop.f32.mrb[36].mxu0  ;;  %1022 = vmax.xlane.f32.xlu0 %v1021_v0 }
 0x484   :  { %v1408_v18 = vpop.f32.mrb[37].mxu0  ;;  %v6933_v24 = vadd.f32 %v5642_v17, %v6865_v20 }
 0x485   :  { %v5643_v7 = vpop.f32.mrb[38].mxu0  ;;  %v6938_v34 = vadd.f32 %v1408_v18, %v6865_v20  ;;  %v6993_v18 = vpop.permute.xlu0 %748 }
 0x486   :  { %v1411_v19 = vpop.f32.mrb[39].mxu0  ;;  %v1428_v38 = vsel %vm555_vm6, %v6933_v24, -inf  ;;  %v6995_v7 = vpop.permute.xlu1 %901 }
 0x487   :  { %1025 = vmax.xlane.f32.xlu0 %v1024_v21  ;;  %v1422_v43 = vsel %vm555_vm6, %v6938_v34, -inf  ;;  %v6961_v58 = vadd.f32 %v1411_v19, %v6865_v20 }
 0x489   :  { %v1425_v3 = vsel %vm555_vm6, %v6961_v58, -inf }
 0x48b   :  { %v5656_v31 = vpop.f32.mrb[40].mxu0  ;;  %1274 = vmax.xlane.f32.xlu0 %v1273_v26 }
 0x48c   :  { %v1565_v32 = vpop.f32.mrb[41].mxu0  ;;  %v6971_v2 = vadd.f32 %v5656_v31, %v6865_v20 }
 0x48d   :  { %v5657_v33 = vpop.f32.mrb[42].mxu0  ;;  %v6978_v8 = vadd.f32 %v1565_v32, %v6865_v20 }
 0x48e   :  { %v1568_v35 = vpop.f32.mrb[43].mxu0  ;;  %v1585_v14 = vsel %vm555_vm6, %v6971_v2, -inf }
 0x48f   :  { %1429 = vmax.xlane.f32.xlu0 %v1428_v38  ;;  %v6946_v42 = vadd.f32 %v1568_v35, %v6865_v20  ;;  %v1579_v0 = vsel %vm555_vm6, %v6978_v8, -inf }
 0x491   :  { %v1582_v56 = vsel %vm555_vm6, %v6946_v42, -inf }
 0x493   :  { %v5670_v46 = vpop.f32.mrb[44].mxu0  ;;  %1423 = vmax.xlane.f32.xlu0 %v1422_v43 }
 0x494   :  { %v1720_v47 = vpop.f32.mrb[45].mxu0  ;;  %v6954_v51 = vadd.f32 %v5670_v46, %v6865_v20 }
 0x495   :  { %v5671_v48 = vpop.f32.mrb[46].mxu0  ;;  %v6964_v59 = vadd.f32 %v1720_v47, %v6865_v20 }
 0x496   :  { %v1723_v52 = vpop.f32.mrb[47].mxu0  ;;  %v1740_v62 = vsel %vm555_vm6, %v6954_v51, -inf }
 0x497   :  { %1277 = vmax.xlane.f32.xlu1 %v1276_v55  ;;  %1583 = vmax.xlane.f32.xlu0 %v1582_v56  ;;  %v1734_v6 = vsel %vm555_vm6, %v6964_v59, -inf  ;;  %v6983_v11 = vadd.f32 %v1723_v52, %v6865_v20 }
 0x499   :  { %v1737_v17 = vsel %vm555_vm6, %v6983_v11, -inf }
 0x49b   :  { %1271 = vmax.xlane.f32.xlu1 %v1270_v61  ;;  %1741 = vmax.xlane.f32.xlu0 %v1740_v62 }
 0x49f   :  { %1426 = vmax.xlane.f32.xlu1 %v1425_v3  ;;  %1735 = vmax.xlane.f32.xlu0 %v1734_v6 }
 0x4a3   :  { %1586 = vmax.xlane.f32.xlu1 %v1585_v14 }
 0x4a7   :  { %1580 = vmax.xlane.f32.xlu1 %v1579_v0 }
 0x4ab   :  { %1738 = vmax.xlane.f32.xlu1 %v1737_v17 }
 0x4b5   :  { %1056 = vrot.lane.b32.xlu0 %v6789_v45, %s8397_s28 }
 0x4bc   :  { %1058 = vrot.lane.b32.xlu1 %v6797_v54, %s8397_s28 }
 0x4ec   :  { %v564_v19 = vpop.xlane.xlu0 %563 }
 0x4ed   :  { %v567_v21 = vsub.f32 %v6868_v22, %v564_v19 }
 0x4ef   :  { %v572_v26 = vmul.f32 1.442695, %v567_v21  ;;  %v561_v31 = vpop.xlane.xlu1 %560 }
 0x4f0   :  { %v566_v32 = vsub.f32 %v6876_v25, %v561_v31  ;;  %v558_v33 = vpop.xlane.xlu0 %557 }
 0x4f1   :  { %6203 = vpow2.f32 %v572_v26  ;;  %v565_v35 = vsub.f32 %v6871_v29, %v558_v33 }
 0x4f2   :  { %v570_v38 = vmul.f32 1.442695, %v566_v32 }
 0x4f3   :  { %v568_v45 = vmul.f32 1.442695, %v565_v35 }
 0x4f4   :  { %6205 = vpow2.f32 %v570_v38  ;;  %v717_v43 = vpop.xlane.xlu0 %716 }
 0x4f5   :  { %6207 = vpow2.f32 %v568_v45  ;;  %v720_v54 = vsub.f32 %v6883_v36, %v717_v43 }
 0x4f7   :  { %v725_v46 = vmul.f32 1.442695, %v720_v54 }
 0x4f8   :  { %v711_v47 = vpop.xlane.xlu0 %710 }
 0x4f9   :  { %6209 = vpow2.f32 %v725_v46  ;;  %v718_v22 = vsub.f32 %v6886_v40, %v711_v47 }
 0x4fb   :  { %v7002_v48 = vpop.eup %6203  ;;  %v721_v52 = vmul.f32 1.442695, %v718_v22 }
 0x4fc   :  { %v714_v25 = vpop.xlane.xlu0 %713  ;;  %v580_v55 = vsel %vm555_vm6, %v7002_v48, 0.0 }
 0x4fd   :  { %6211 = vpow2.f32 %v721_v52  ;;  %v719_v29 = vsub.f32 %v6891_v44, %v714_v25  ;;  %581 = vadd.xlane.f32.xlu1 %v580_v55 }
 0x4fe   :  { %v7007_v56 = vpop.eup %6205 }
 0x4ff   :  { %v7009_v61 = vpop.eup %6207  ;;  %v723_v36 = vmul.f32 1.442695, %v719_v29  ;;  %v577_v62 = vsel %vm555_vm6, %v7007_v56, 0.0 }
 0x500   :  { %578 = vadd.xlane.f32.xlu0 %v577_v62  ;;  %v874_v40 = vpop.xlane.xlu0 %873  ;;  %v574_v3 = vsel %vm555_vm6, %v7009_v61, 0.0 }
 0x501   :  { %6213 = vpow2.f32 %v723_v36  ;;  %v877_v6 = vsub.f32 %v6896_v50, %v874_v40  ;;  %575 = vadd.xlane.f32.xlu1 %v574_v3 }
 0x503   :  { %v7016_v14 = vpop.eup %6209  ;;  %v882_v44 = vmul.f32 1.442695, %v877_v6 }
 0x504   :  { %v868_v0 = vpop.xlane.xlu0 %867  ;;  %v733_v17 = vsel %vm555_vm6, %v7016_v14, 0.0 }
 0x505   :  { %6215 = vpow2.f32 %v882_v44  ;;  %v875_v19 = vsub.f32 %v6901_v53, %v868_v0  ;;  %734 = vadd.xlane.f32.xlu0 %v733_v17  ;;  %v7052_v17 = vpop.permute.xlu1 %903 }
 0x507   :  { %v7021_v21 = vpop.eup %6211  ;;  %v878_v26 = vmul.f32 1.442695, %v875_v19 }
 0x508   :  { %v871_v31 = vpop.xlane.xlu0 %870  ;;  %v727_v32 = vsel %vm555_vm6, %v7021_v21, 0.0 }
 0x509   :  { %6217 = vpow2.f32 %v878_v26  ;;  %v876_v50 = vsub.f32 %v6908_v60, %v871_v31  ;;  %728 = vadd.xlane.f32.xlu0 %v727_v32 }
 0x50b   :  { %v7026_v33 = vpop.eup %6213  ;;  %v880_v35 = vmul.f32 1.442695, %v876_v50 }
 0x50c   :  { %v1029_v38 = vpop.xlane.xlu0 %1028  ;;  %v730_v45 = vsel %vm555_vm6, %v7026_v33, 0.0 }
 0x50d   :  { %6219 = vpow2.f32 %v880_v35  ;;  %v1032_v53 = vsub.f32 %v6913_v63, %v1029_v38  ;;  %731 = vadd.xlane.f32.xlu1 %v730_v45 }
 0x50f   :  { %v7031_v43 = vpop.eup %6215  ;;  %v1037_v54 = vmul.f32 1.442695, %v1032_v53 }
 0x510   :  { %v1023_v46 = vpop.xlane.xlu0 %1022  ;;  %v890_v47 = vsel %vm555_vm6, %v7031_v43, 0.0 }
 0x511   :  { %6221 = vpow2.f32 %v1037_v54  ;;  %v1030_v60 = vsub.f32 %v6918_v12, %v1023_v46  ;;  %891 = vadd.xlane.f32.xlu1 %v890_v47 }
 0x513   :  { %v7036_v22 = vpop.eup %6217  ;;  %v1033_v52 = vmul.f32 1.442695, %v1030_v60 }
 0x514   :  { %v1026_v25 = vpop.xlane.xlu0 %1025  ;;  %v884_v55 = vsel %vm555_vm6, %v7036_v22, 0.0 }
 0x515   :  { %6223 = vpow2.f32 %v1033_v52  ;;  %v1031_v63 = vsub.f32 %v6923_v16, %v1026_v25  ;;  %885 = vadd.xlane.f32.xlu1 %v884_v55 }
 0x517   :  { %v7041_v29 = vpop.eup %6219  ;;  %v1035_v36 = vmul.f32 1.442695, %v1031_v63 }
 0x518   :  { %v1275_v62 = vpop.xlane.xlu0 %1274  ;;  %v887_v40 = vsel %vm555_vm6, %v7041_v29, 0.0 }
 0x519   :  { %6225 = vpow2.f32 %v1035_v36  ;;  %888 = vadd.xlane.f32.xlu0 %v887_v40  ;;  %v1280_v45 = vsub.f32 %v6928_v15, %v1275_v62 }
 0x51b   :  { %v7045_v12 = vpop.eup %6221  ;;  %v1284_v60 = vmul.f32 1.442695, %v1280_v45 }
 0x51c   :  { %v1430_v3 = vpop.xlane.xlu0 %1429  ;;  %v1045_v6 = vsel %vm555_vm6, %v7045_v12, 0.0 }
 0x51d   :  { %v1433_v44 = vsub.f32 %v6933_v24, %v1430_v3  ;;  %1046 = vadd.xlane.f32.xlu0 %v1045_v6 }
 0x51f   :  { %v7050_v16 = vpop.eup %6223  ;;  %v1438_v0 = vmul.f32 1.442695, %v1433_v44 }
 0x520   :  { %v1424_v19 = vpop.xlane.xlu0 %1423  ;;  %v1039_v26 = vsel %vm555_vm6, %v7050_v16, 0.0 }
 0x521   :  { %6227 = vpow2.f32 %v1438_v0  ;;  %v1431_v31 = vsub.f32 %v6938_v34, %v1424_v19  ;;  %1040 = vadd.xlane.f32.xlu0 %v1039_v26 }
 0x523   :  { %v7057_v32 = vpop.eup %6225  ;;  %v1434_v50 = vmul.f32 1.442695, %v1431_v31 }
 0x524   :  { %v1278_v35 = vpop.xlane.xlu1 %1277  ;;  %v1042_v24 = vsel %vm555_vm6, %v7057_v32, 0.0  ;;  %v1584_v54 = vpop.xlane.xlu0 %1583 }
 0x525   :  { %6229 = vpow2.f32 %v1434_v50  ;;  %v1281_v38 = vsub.f32 %v6943_v39, %v1278_v35  ;;  %1043 = vadd.xlane.f32.xlu1 %v1042_v24  ;;  %v1589_v36 = vsub.f32 %v6946_v42, %v1584_v54 }
 0x527   :  { %v1286_v53 = vmul.f32 1.442695, %v1281_v38  ;;  %v1593_v44 = vmul.f32 1.442695, %v1589_v36 }
 0x528   :  { %v1272_v46 = vpop.xlane.xlu1 %1271  ;;  %v1742_v63 = vpop.xlane.xlu0 %1741 }
 0x529   :  { %6231 = vpow2.f32 %v1286_v53  ;;  %v1279_v34 = vsub.f32 %v6951_v49, %v1272_v46 }
 0x52b   :  { %v7064_v47 = vpop.eup %6227  ;;  %v1282_v52 = vmul.f32 1.442695, %v1279_v34 }
 0x52c   :  { %v1427_v25 = vpop.xlane.xlu1 %1426  ;;  %v1446_v55 = vsel %vm555_vm6, %v7064_v47, 0.0  ;;  %v1736_v19 = vpop.xlane.xlu0 %1735 }
 0x52d   :  { %6233 = vpow2.f32 %v1282_v52  ;;  %v1432_v39 = vsub.f32 %v6961_v58, %v1427_v25  ;;  %1447 = vadd.xlane.f32.xlu1 %v1446_v55  ;;  %v1745_v58 = vsub.f32 %v6954_v51, %v1742_v63  ;;  %v1743_v35 = vsub.f32 %v6964_v59, %v1736_v19 }
 0x52e   :  { %6235 = vpow2.f32 %v1284_v60 }
 0x52f   :  { %v7069_v15 = vpop.eup %6229  ;;  %v1436_v62 = vmul.f32 1.442695, %v1432_v39  ;;  %v1746_v53 = vmul.f32 1.442695, %v1743_v35 }
 0x530   :  { %v1587_v49 = vpop.xlane.xlu1 %1586  ;;  %v1440_v40 = vsel %vm555_vm6, %v7069_v15, 0.0 }
 0x531   :  { %v1590_v3 = vsub.f32 %v6971_v2, %v1587_v49  ;;  %1441 = vadd.xlane.f32.xlu1 %v1440_v40  ;;  %6237 = vpow2.f32 %v1436_v62  ;;  %v1750_v2 = vmul.f32 1.442695, %v1745_v58  ;;  %v7137_v58 = vpop.permute.xlu0 %1056 }
 0x533   :  { %v7075_v6 = vpop.eup %6231  ;;  %v1595_v0 = vmul.f32 1.442695, %v1590_v3 }
 0x534   :  { %v1581_v26 = vpop.xlane.xlu1 %1580  ;;  %v1294_v42 = vsel %vm555_vm6, %v7075_v6, 0.0 }
 0x535   :  { %6239 = vpow2.f32 %v1595_v0  ;;  %v1588_v31 = vsub.f32 %v6978_v8, %v1581_v26  ;;  %1295 = vadd.xlane.f32.xlu0 %v1294_v42 }
 0x536   :  { %6241 = vpow2.f32 %v1593_v44  ;;  %v7121_v44 = vpack.c.bf16 %v6812_v5, %v6812_v5 }
 0x537   :  { %v7081_v50 = vpop.eup %6233  ;;  %v1591_v24 = vmul.f32 1.442695, %v1588_v31 }
 0x538   :  { %v1739_v38 = vpop.xlane.xlu1 %1738  ;;  %v1288_v51 = vsel %vm555_vm6, %v7081_v50, 0.0  ;;  %v7086_v45 = vpop.eup %6235 }
 0x539   :  { %6243 = vpow2.f32 %v1591_v24  ;;  %1289 = vadd.xlane.f32.xlu0 %v1288_v51  ;;  %v1744_v8 = vsub.f32 %v6983_v11, %v1739_v38  ;;  %v1291_v54 = vsel %vm555_vm6, %v7086_v45, 0.0 }
 0x53a   :  { %6245 = vpow2.f32 %v1750_v2 }
 0x53b   :  { %v7091_v46 = vpop.eup %6237  ;;  %6247 = vpow2.f32 %v1746_v53  ;;  %v1748_v34 = vmul.f32 1.442695, %v1744_v8 }
 0x53c   :  { %v1443_v60 = vsel %vm555_vm6, %v7091_v46, 0.0  ;;  %v7135_v5 = vpop.permute.xlu1 %1058 }
 0x53d   :  { %1292 = vadd.xlane.f32.xlu0 %v1291_v54  ;;  %6249 = vpow2.f32 %v1748_v34 }
 0x53f   :  { %v7093_v59 = vpop.eup %6239 }
 0x540   :  { %v1603_v52 = vsel %vm555_vm6, %v7093_v59, 0.0  ;;  %v7099_v25 = vpop.eup %6241 }
 0x541   :  { %1444 = vadd.xlane.f32.xlu0 %v1443_v60  ;;  %1604 = vadd.xlane.f32.xlu1 %v1603_v52  ;;  %v1600_v39 = vsel %vm555_vm6, %v7099_v25, 0.0 }
 0x543   :  { %v7101_v11 = vpop.eup %6243 }
 0x544   :  { %v1597_v55 = vsel %vm555_vm6, %v7101_v11, 0.0  ;;  %v7107_v63 = vpop.eup %6245 }
 0x545   :  { %1598 = vadd.xlane.f32.xlu1 %v1597_v55  ;;  %1601 = vadd.xlane.f32.xlu0 %v1600_v39  ;;  %v1758_v36 = vsel %vm555_vm6, %v7107_v63, 0.0  ;;  %v7111_v62 = vpop.eup %6247 }
 0x546   :  { %v1752_v49 = vsel %vm555_vm6, %v7111_v62, 0.0 }
 0x547   :  { %v7115_v40 = vpop.eup %6249 }
 0x548   :  { %v1755_v3 = vsel %vm555_vm6, %v7115_v40, 0.0 }
 0x549   :  { %1759 = vadd.xlane.f32.xlu0 %v1758_v36 }
 0x54d   :  { %1753 = vadd.xlane.f32.xlu0 %v1752_v49 }
 0x551   :  { %1756 = vadd.xlane.f32.xlu0 %v1755_v3 }
 0x556   :  { %1461 = vrot.lane.b32.xlu1 %v7121_v44, %s6533_s26 }
 0x55a   :  { %1614 = vrot.lane.b32.xlu1 %v6810_v4, %s6534_s27 }
 0x55e   :  { %1616 = vrot.lane.b32.xlu1 %v7121_v44, %s6534_s27 }
 0x562   :  { %1769 = vrot.lane.b32.xlu1 %v6810_v4, %s8397_s28 }
 0x566   :  { %1771 = vrot.lane.b32.xlu1 %v7121_v44, %s8397_s28 }
 0x567   :  { %1459 = vrot.lane.b32.xlu0 %v6810_v4, %s6533_s26 }
 0x58a   :  { %v582_v0 = vpop.xlane.xlu1 %581 }
 0x58b   :  { %6251 = vrcp.f32 %v582_v0 }
 0x58d   :  { %v579_v19 = vpop.xlane.xlu0 %578 }
 0x58e   :  { %6253 = vrcp.f32 %v579_v19  ;;  %v576_v26 = vpop.xlane.xlu1 %575 }
 0x58f   :  { %6255 = vrcp.f32 %v576_v26 }
 0x592   :  { %v735_v42 = vpop.xlane.xlu0 %734 }
 0x593   :  { %6257 = vrcp.f32 %v735_v42 }
 0x595   :  { %v6252_v31 = vpop.eup %6251 }
 0x596   :  { %v729_v2 = vpop.xlane.xlu0 %728  ;;  %v588_v38 = vmul.f32 %v6252_v31, %v7002_v48 }
 0x597   :  { %6259 = vrcp.f32 %v729_v2 }
 0x598   :  { %v6254_v35 = vpop.eup %6253  ;;  %v590_v34 = vpack.c.bf16 %v588_v38, %v588_v38 }
 0x599   :  { %v6256_v24 = vpop.eup %6255  ;;  %v587_v51 = vmul.f32 %v6254_v35, %v7007_v56  ;;  %v758_v56 = vsel %vm597_vm4, %v6993_v18, 0 }
 0x59a   :  { %v732_v53 = vpop.xlane.xlu1 %731  ;;  %v586_v8 = vmul.f32 %v6256_v24, %v7009_v61 }
 0x59b   :  { %6261 = vrcp.f32 %v732_v53 }
 0x59c   :  { %v589_v54 = vpack.c.bf16 %v587_v51, %v586_v8 }
 0x59d   :  { %v6258_v48 = vpop.eup %6257 }
 0x59e   :  { %v892_v60 = vpop.xlane.xlu1 %891  ;;  %5578 = vmatprep.mubr.msk.bf16.mxu1 %vm555_vm6, %v589_v54  ;;  %v741_v39 = vmul.f32 %v6258_v48, %v7016_v14 }
 0x59f   :  { %5579 = vmatmul.mubr.msk.bf16.vlgmr.msra.gmra.mrb[8].mxu1 %vm555_vm6, %v590_v34  ;;  %6263 = vrcp.f32 %v892_v60 }
 0x5a0   :  { %5589 = vmatpush3.bf16.msra.mxu1 %v6850_v9  ;;  %v743_v0 = vpack.c.bf16 %v741_v39, %v741_v39 }
 0x5a1   :  { %5853 = vmatprep.subr.msk.bf16.mxu1 %vm597_vm4, %v6993_v18  ;;  %v6260_v55 = vpop.eup %6259 }
 0x5a2   :  { %v886_v52 = vpop.xlane.xlu1 %885  ;;  %v739_v9 = vmul.f32 %v6260_v55, %v7021_v21  ;;  %v913_v21 = vsel %vm597_vm4, %v7052_v17, 0 }
 0x5a3   :  { %6265 = vrcp.f32 %v886_v52 }
 0x5a4   :  { %5591 = vmatpush3.bf16.msra.mxu1 %v758_v56 }
 0x5a5   :  { %v6262_v61 = vpop.eup %6261  ;;  %5602 = vmatprep.subr.bf16.mxu1 %v6995_v7 }
 0x5a6   :  { %v889_v36 = vpop.xlane.xlu0 %888  ;;  %v740_v49 = vmul.f32 %v6262_v61, %v7026_v33 }
 0x5a7   :  { %6267 = vrcp.f32 %v889_v36 }
 0x5a8   :  { %v742_v3 = vpack.c.bf16 %v740_v49, %v739_v9 }
 0x5a9   :  { %v6264_v18 = vpop.eup %6263 }
 0x5aa   :  { %5592 = vmatprep.mubr.msk.bf16.mxu1 %vm555_vm6, %v742_v3  ;;  %v1047_v19 = vpop.xlane.xlu0 %1046  ;;  %v898_v42 = vmul.f32 %v6264_v18, %v7031_v43  ;;  %v1068_v43 = vsel %vm597_vm4, %v7135_v5, 0 }
 0x5ab   :  { %5593 = vmatmul.mubr.msk.bf16.vlgmr.msra.gmra.mrb[12].mxu1 %vm555_vm6, %v743_v0  ;;  %6269 = vrcp.f32 %v1047_v19 }
 0x5ac   :  { %5603 = vmatpush3.bf16.msra.mxu1 %v6995_v7  ;;  %v900_v24 = vpack.c.bf16 %v898_v42, %v898_v42 }
 0x5ad   :  { %5854 = vmatprep.subr.msk.bf16.mxu1 %vm597_vm4, %v7052_v17  ;;  %v6266_v26 = vpop.eup %6265 }
 0x5ae   :  { %v1041_v14 = vpop.xlane.xlu0 %1040  ;;  %v896_v7 = vmul.f32 %v6266_v26, %v7036_v22 }
 0x5af   :  { %6271 = vrcp.f32 %v1041_v14 }
 0x5b0   :  { %5605 = vmatpush3.bf16.msra.mxu1 %v913_v21 }
 0x5b1   :  { %v6268_v33 = vpop.eup %6267  ;;  %5616 = vmatprep.subr.bf16.mxu1 %v7137_v58 }
 0x5b2   :  { %v1044_v31 = vpop.xlane.xlu1 %1043  ;;  %v897_v2 = vmul.f32 %v6268_v33, %v7041_v29 }
 0x5b3   :  { %6273 = vrcp.f32 %v1044_v31 }
 0x5b4   :  { %v899_v35 = vpack.c.bf16 %v897_v2, %v896_v7 }
 0x5b5   :  { %v6270_v17 = vpop.eup %6269 }
 0x5b6   :  { %5606 = vmatprep.mubr.msk.bf16.mxu1 %vm555_vm6, %v899_v35  ;;  %v1053_v29 = vmul.f32 %v6270_v17, %v7045_v12  ;;  %v1312_v12 = vsel %vm597_vm4, %v7121_v44, 0 }
 0x5b7   :  { %5607 = vmatmul.mubr.msk.bf16.vlgmr.msra.gmra.mrb[16].mxu1 %vm555_vm6, %v900_v24 }
 0x5b8   :  { %5617 = vmatpush3.bf16.msra.mxu1 %v7137_v58  ;;  %v1055_v58 = vpack.c.bf16 %v1053_v29, %v1053_v29 }
 0x5b9   :  { %5855 = vmatprep.subr.msk.bf16.mxu1 %vm597_vm4, %v7135_v5  ;;  %v6272_v38 = vpop.eup %6271 }
 0x5ba   :  { %v1051_v51 = vmul.f32 %v6272_v38, %v7050_v16  ;;  %v1448_v5 = vpop.xlane.xlu1 %1447 }
 0x5bc   :  { %5619 = vmatpush3.bf16.msra.mxu1 %v1068_v43 }
 0x5bd   :  { %v6274_v22 = vpop.eup %6273  ;;  %5630 = vmatprep.subr.bf16.mxu1 %v6810_v4 }
 0x5be   :  { %v1052_v53 = vmul.f32 %v6274_v22, %v7057_v32  ;;  %v1442_v32 = vpop.xlane.xlu1 %1441 }
 0x5c0   :  { %v1054_v8 = vpack.c.bf16 %v1052_v53, %v1051_v51 }
 0x5c2   :  { %5620 = vmatprep.mubr.msk.bf16.mxu1 %vm555_vm6, %v1054_v8  ;;  %v1296_v54 = vpop.xlane.xlu0 %1295 }
 0x5c3   :  { %5621 = vmatmul.mubr.msk.bf16.vlgmr.msra.gmra.mrb[20].mxu1 %vm555_vm6, %v1055_v58  ;;  %6275 = vrcp.f32 %v1296_v54 }
 0x5c4   :  { %5631 = vmatpush3.bf16.msra.mxu1 %v6810_v4 }
 0x5c5   :  { %5856 = vmatprep.subr.msk.bf16.mxu1 %vm597_vm4, %v7121_v44 }
 0x5c6   :  { %v1290_v34 = vpop.xlane.xlu0 %1289 }
 0x5c7   :  { %6277 = vrcp.f32 %v1290_v34 }
 0x5c8   :  { %5633 = vmatpush3.bf16.msra.mxu1 %v1312_v12 }
 0x5ca   :  { %v1293_v16 = vpop.xlane.xlu0 %1292 }
 0x5cb   :  { %6279 = vrcp.f32 %v1293_v16 }
 0x5cc   :  { %6281 = vrcp.f32 %v1442_v32 }
 0x5cd   :  { %v6276_v52 = vpop.eup %6275 }
 0x5ce   :  { %v1445_v60 = vpop.xlane.xlu0 %1444  ;;  %v1605_v48 = vpop.xlane.xlu1 %1604  ;;  %v1302_v39 = vmul.f32 %v6276_v52, %v7075_v6 }
 0x5cf   :  { %6283 = vrcp.f32 %v1445_v60 }
 0x5d0   :  { %6285 = vrcp.f32 %v1448_v5  ;;  %v1304_v0 = vpack.c.bf16 %v1302_v39, %v1302_v39  ;;  %v6113_v39 = vld [vmem:[%s8372_s7 + $0x10] sm:$0xff]  }
 0x5d1   :  { %v6278_v55 = vpop.eup %6277 }
 0x5d2   :  { %v1602_v4 = vpop.xlane.xlu0 %1601  ;;  %v1599_v61 = vpop.xlane.xlu1 %1598  ;;  %v1300_v44 = vmul.f32 %v6278_v55, %v7081_v50  ;;  %v6111_v55 = vld [vmem:[%s8372_s7] sm:$0xff]  }
 0x5d3   :  { %6287 = vrcp.f32 %v1599_v61  ;;  %5681 = vmatpush3.bf16.msra.mxu0 %v6111_v55 }
 0x5d4   :  { %6289 = vrcp.f32 %v1602_v4  ;;  %5682 = vmatprep.subr.bf16.mxu0 %v6529_v1 }
 0x5d5   :  { %v6280_v56 = vpop.eup %6279  ;;  %6291 = vrcp.f32 %v1605_v48 }
 0x5d6   :  { %v1760_v36 = vpop.xlane.xlu0 %1759  ;;  %v1301_v9 = vmul.f32 %v6280_v56, %v7086_v45  ;;  %v6282_v49 = vpop.eup %6281  ;;  %v6112_v56 = vld [vmem:[%s8372_s7 + $0x8] sm:$0xff]  }
 0x5d7   :  { %v1452_v14 = vmul.f32 %v6282_v49, %v7069_v15  ;;  %v1462_v26 = vpop.permute.xlu1 %1461  ;;  %5683 = vmatpush3.bf16.msra.mxu0 %v6112_v56 }
 0x5d8   :  { %v1303_v3 = vpack.c.bf16 %v1301_v9, %v1300_v44  ;;  %v1471_v35 = vsel %vm597_vm4, %v1462_v26, 0  ;;  %5684 = vmatprep.subr.bf16.mxu0 %v6529_v1 }
 0x5d9   :  { %v6284_v19 = vpop.eup %6283 }
 0x5da   :  { %5634 = vmatprep.mubr.msk.bf16.mxu1 %vm555_vm6, %v1303_v3  ;;  %v1754_v18 = vpop.xlane.xlu0 %1753  ;;  %v1453_v6 = vmul.f32 %v6284_v19, %v7091_v46  ;;  %v6286_v45 = vpop.eup %6285  ;;  %v6114_v3 = vld [vmem:[%s8372_s7 + $0x18] sm:$0xff]  }
 0x5db   :  { %5635 = vmatmul.mubr.msk.bf16.vlgmr.msra.gmra.mrb[24].mxu1 %vm555_vm6, %v1304_v0  ;;  %v1615_v42 = vpop.permute.xlu1 %1614  ;;  %v1454_v15 = vmul.f32 %v6286_v45, %v7064_v47  ;;  %5685 = vmatpush3.bf16.msra.mxu0 %v6113_v39 }
 0x5dc   :  { %v1455_v50 = vpack.c.bf16 %v1453_v6, %v1452_v14  ;;  %5686 = vmatprep.subr.bf16.mxu0 %v6529_v1 }
 0x5dd   :  { %v6288_v33 = vpop.eup %6287  ;;  %v1456_v17 = vpack.c.bf16 %v1454_v15, %v1454_v15 }
 0x5de   :  { %v1757_v21 = vpop.xlane.xlu0 %1756  ;;  %5648 = vmatprep.mubr.msk.bf16.mxu1 %vm555_vm6, %v1455_v50  ;;  %v6290_v7 = vpop.eup %6289  ;;  %v1609_v46 = vmul.f32 %v6288_v33, %v7101_v11 }
 0x5df   :  { %6293 = vrcp.f32 %v1757_v21  ;;  %v1610_v2 = vmul.f32 %v6290_v7, %v7099_v25  ;;  %v1617_v24 = vpop.permute.xlu1 %1616  ;;  %v6292_v38 = vpop.eup %6291  ;;  %5687 = vmatpush3.bf16.msra.mxu0 %v6114_v3 }
 0x5e0   :  { %6295 = vrcp.f32 %v1754_v18  ;;  %v1611_v25 = vmul.f32 %v6292_v38, %v7093_v59  ;;  %v1626_v51 = vsel %vm597_vm4, %v1617_v24, 0 }
 0x5e1   :  { %6297 = vrcp.f32 %v1760_v36  ;;  %v1612_v43 = vpack.c.bf16 %v1610_v2, %v1609_v46 }
 0x5e2   :  { %v1460_v31 = vpop.permute.xlu0 %1459  ;;  %v1613_v8 = vpack.c.bf16 %v1611_v25, %v1611_v25 }
 0x5e3   :  { %5644 = vmatprep.subr.bf16.mxu1 %v1460_v31  ;;  %v1770_v11 = vpop.permute.xlu1 %1769 }
 0x5e4   :  { %5645 = vmatpush3.bf16.msra.mxu1 %v1460_v31 }
 0x5e5   :  { %5857 = vmatprep.subr.msk.bf16.mxu1 %vm597_vm4, %v1462_v26 }
 0x5e7   :  { %v1772_v5 = vpop.permute.xlu1 %1771 }
 0x5e8   :  { %5647 = vmatpush3.bf16.msra.mxu1 %v1471_v35 }
 0x5e9   :  { %5658 = vmatprep.subr.bf16.mxu1 %v1615_v42  ;;  %v6294_v22 = vpop.eup %6293 }
 0x5ea   :  { %v6296_v47 = vpop.eup %6295  ;;  %v1765_v29 = vmul.f32 %v6294_v22, %v7115_v40  ;;  %v1781_v40 = vsel %vm597_vm4, %v1772_v5, 0 }
 0x5eb   :  { %5649 = vmatmul.mubr.msk.bf16.vlgmr.msra.gmra.mrb[28].mxu1 %vm555_vm6, %v1456_v17  ;;  %v1764_v53 = vmul.f32 %v6296_v47, %v7111_v62  ;;  %v6298_v58 = vpop.eup %6297 }
 0x5ec   :  { %5659 = vmatpush3.bf16.msra.mxu1 %v1615_v42  ;;  %5662 = vmatprep.mubr.msk.bf16.mxu1 %vm555_vm6, %v1612_v43  ;;  %v1766_v59 = vmul.f32 %v6298_v58, %v7107_v63 }
 0x5ed   :  { %5858 = vmatprep.subr.msk.bf16.mxu1 %vm597_vm4, %v1617_v24  ;;  %v1767_v54 = vpack.c.bf16 %v1765_v29, %v1764_v53 }
 0x5ee   :  { %v1768_v34 = vpack.c.bf16 %v1766_v59, %v1766_v59 }
 0x5f0   :  { %5661 = vmatpush3.bf16.msra.mxu1 %v1626_v51 }
 0x5f1   :  { %5672 = vmatprep.subr.bf16.mxu1 %v1770_v11 }
 0x5f3   :  { %5663 = vmatmul.mubr.msk.bf16.vlgmr.msra.gmra.mrb[32].mxu1 %vm555_vm6, %v1613_v8 }
 0x5f4   :  { %5673 = vmatpush3.bf16.msra.mxu1 %v1770_v11  ;;  %5676 = vmatprep.mubr.msk.bf16.mxu1 %vm555_vm6, %v1767_v54 }
 0x5f5   :  { %5859 = vmatprep.subr.msk.bf16.mxu1 %vm597_vm4, %v1772_v5 }
 0x5f8   :  { %5675 = vmatpush3.bf16.msra.mxu1 %v1781_v40 }
 0x5fb   :  { %5677 = vmatmul.mubr.msk.bf16.vlgmr.msra.gmra.mrb[36].mxu1 %vm555_vm6, %v1768_v34 }
 0x5fc   :  { %2222 = vmatprep.mubr.bf16.mxu1 %v6531_v57 }
 0x672   :  { %v7209_v62 = vpop.f32.mrb[8].mxu1 }
 0x673   :  { %v7211_v12 = vpop.f32.mrb[9].mxu1 }
 0x674   :  { %v5581_v16 = vpop.f32.mrb[10].mxu1 }
 0x675   :  { %v7213_v32 = vpop.f32.mrb[11].mxu1 }
 0x67e   :  { %v5594_v60 = vpop.f32.mrb[12].mxu1 }
 0x67f   :  { %v794_v48 = vpop.f32.mrb[13].mxu1 }
 0x680   :  { %v5595_v52 = vpop.f32.mrb[14].mxu1 }
 0x681   :  { %v797_v4 = vpop.f32.mrb[15].mxu1 }
 0x682   :  { %v5942_v63 = vpack.i.bf16 %v797_v4, %v794_v48 }
 0x684   :  { %5943 = vrot.lane.b32.xlu1 %v5942_v63, %s8395_s4 }
 0x68a   :  { %v5608_v61 = vpop.f32.mrb[16].mxu1 }
 0x68b   :  { %v949_v36 = vpop.f32.mrb[17].mxu1 }
 0x68c   :  { %v5609_v44 = vpop.f32.mrb[18].mxu1 }
 0x68d   :  { %v952_v9 = vpop.f32.mrb[19].mxu1 }
 0x68e   :  { %v5947_v49 = vpack.i.bf16 %v952_v9, %v949_v36 }
 0x690   :  { %5948 = vrot.lane.b32.xlu0 %v5947_v49, %s8393_s2 }
 0x696   :  { %v5622_v0 = vpop.f32.mrb[20].mxu1 }
 0x697   :  { %v1104_v19 = vpop.f32.mrb[21].mxu1 }
 0x698   :  { %v5623_v18 = vpop.f32.mrb[22].mxu1 }
 0x699   :  { %v1107_v14 = vpop.f32.mrb[23].mxu1 }
 0x69a   :  { %v5952_v6 = vpack.i.bf16 %v1107_v14, %v1104_v19 }
 0x69c   :  { %5953 = vrot.lane.b32.xlu1 %v5952_v6, %s8391_s30 }
 0x6ae   :  { %v7233_v26 = vpop.f32.mrb[24].mxu1 }
 0x6af   :  { %v1348_v50 = vpop.f32.mrb[25].mxu1 }
 0x6b0   :  { %v5637_v21 = vpop.f32.mrb[26].mxu1 }
 0x6b1   :  { %v7235_v45 = vpop.f32.mrb[27].mxu1 }
 0x6be   :  { %v5650_v33 = vpop.f32.mrb[28].mxu1 }
 0x6bf   :  { %v1507_v42 = vpop.f32.mrb[29].mxu1 }
 0x6c0   :  { %v5957_v31 = vpack.i.bf16 %v1507_v42, %v5594_v60  ;;  %v5651_v7 = vpop.f32.mrb[30].mxu1 }
 0x6c1   :  { %v1510_v15 = vpop.f32.mrb[31].mxu1 }
 0x6c2   :  { %v5972_v46 = vpack.i.bf16 %v5650_v33, %v1510_v15  ;;  %5958 = vrot.lane.b32.xlu0 %v5957_v31, %s8395_s4 }
 0x6c6   :  { %v5664_v2 = vpop.f32.mrb[32].mxu1 }
 0x6c7   :  { %v1662_v35 = vpop.f32.mrb[33].mxu1 }
 0x6c8   :  { %v5962_v24 = vpack.i.bf16 %v1662_v35, %v5608_v61  ;;  %v5665_v17 = vpop.f32.mrb[34].mxu1 }
 0x6c9   :  { %v1665_v38 = vpop.f32.mrb[35].mxu1 }
 0x6ca   :  { %v5977_v43 = vpack.i.bf16 %v5664_v2, %v1665_v38  ;;  %5963 = vrot.lane.b32.xlu1 %v5962_v24, %s8393_s2 }
 0x6ce   :  { %5973 = vrot.lane.b32.xlu1 %v5972_v46, %s8395_s4  ;;  %v5678_v22 = vpop.f32.mrb[36].mxu1 }
 0x6cf   :  { %v1817_v47 = vpop.f32.mrb[37].mxu1 }
 0x6d0   :  { %v5967_v25 = vpack.i.bf16 %v1817_v47, %v5622_v0  ;;  %v5679_v11 = vpop.f32.mrb[38].mxu1 }
 0x6d1   :  { %v1820_v29 = vpop.f32.mrb[39].mxu1 }
 0x6d2   :  { %v5982_v51 = vpack.i.bf16 %v5678_v22, %v1820_v29  ;;  %5968 = vrot.lane.b32.xlu0 %v5967_v25, %s8391_s30 }
 0x6d4   :  { %5983 = vrot.lane.b32.xlu1 %v5982_v51, %s8391_s30  ;;  %s8411_s30 = smov 32  }
 0x6d6   :  { %5978 = vrot.lane.b32.xlu0 %v5977_v43, %s8393_s2 }
 0x6f6   :  { %v5944_v53 = vpop.permute.xlu1 %5943 }
 0x6f7   :  { %v5946_v58 = vunpack.i.h.bf16 %v5944_v53  ;;  %v5945_v54 = vunpack.i.l.bf16 %v5944_v53 }
 0x6f9   :  { %v1155_v34 = vsel %vm500_vm3, %v7213_v32, %v5946_v58  ;;  %v1154_v16 = vsel %vm500_vm3, %v7211_v12, %v5945_v54 }
 0x702   :  { %v5949_v8 = vpop.permute.xlu0 %5948 }
 0x703   :  { %v5951_v5 = vunpack.i.h.bf16 %v5949_v8  ;;  %v5950_v59 = vunpack.i.l.bf16 %v5949_v8 }
 0x705   :  { %v1159_v52 = vsel %vm1157_vm7, %v1155_v34, %v5951_v5  ;;  %v1158_v4 = vsel %vm1157_vm7, %v1154_v16, %v5950_v59  ;;  %v6117_v16 = vld [vmem:[%s8376_s11 + $0x4] ss:$8 sps:$4 sm:$0xff]  }
 0x706   :  { %2190 = vmatprep.subr.bf16.mxu1 %v6117_v16 }
 0x70e   :  { %v5954_v40 = vpop.permute.xlu1 %5953 }
 0x70f   :  { %v5956_v60 = vunpack.i.h.bf16 %v5954_v40  ;;  %v5955_v48 = vunpack.i.l.bf16 %v5954_v40 }
 0x711   :  { %v1161_v63 = vsel %vm122_vm1, %v1158_v4, %v5955_v48  ;;  %v1162_v55 = vsel %vm122_vm1, %v1159_v52, %v5956_v60  ;;  %v6115_v60 = vld [vmem:[%s8376_s11] ss:$8 sps:$4 sm:$0xff]   ;;  %v6120_v48 = vld [vmem:[%s8376_s11 + $0x14] ss:$8 sps:$4 sm:$0xff]   ;;  %v6118_v52 = vld [vmem:[%s8376_s11 + $0x10] ss:$8 sps:$4 sm:$0xff]  }
 0x712   :  { %v1876_v56 = vpack.c.bf16 %v1162_v55, %v1161_v63  ;;  %2191 = vmatpush1.bf16.msra.mxu1 %v6115_v60  ;;  %v6123_v4 = vld [vmem:[%s8376_s11 + $0x24] ss:$8 sps:$4 sm:$0xff]   ;;  %v6121_v63 = vld [vmem:[%s8376_s11 + $0x20] ss:$8 sps:$4 sm:$0xff]   ;;  %v6126_v55 = vld [vmem:[%s8376_s11 + $0x34] ss:$8 sps:$4 sm:$0xff]  }
 0x713   :  { %2192 = vmatprep.subr.bf16.mxu1 %v6120_v48 }
 0x714   :  { %5689 = vmatmul.mubr.msk.bf16.vlgmr.msra.gmra.mrb[48].mxu0 %vm191_vm2, %v1876_v56  ;;  %v6124_v56 = vld [vmem:[%s8376_s11 + $0x30] ss:$8 sps:$4 sm:$0xff]  }
 0x715   :  { %5692 = vmatprep.mubr.msk.bf16.mxu0 %vm6530_vm0, %v6529_v1 }
 0x716   :  { %2193 = vmatpush1.bf16.msra.mxu1 %v6118_v52  ;;  %v7359_v52 = vld [vmem:[%s8375_s10] ss:$0 sm:$0xff] }
 0x717   :  { %2194 = vmatprep.subr.bf16.mxu1 %v6123_v4 }
 0x71a   :  { %2195 = vmatpush1.bf16.msra.mxu1 %v6121_v63 }
 0x71b   :  { %2196 = vmatprep.subr.bf16.mxu1 %v6126_v55 }
 0x71e   :  { %2197 = vmatpush1.bf16.msra.mxu1 %v6124_v56 }
 0x734   :  { %v5959_v61 = vpop.permute.xlu0 %5958 }
 0x735   :  { %v5961_v39 = vunpack.i.h.bf16 %v5959_v61  ;;  %v5960_v12 = vunpack.i.l.bf16 %v5959_v61 }
 0x737   :  { %v1867_v3 = vsel %vm500_vm3, %v1348_v50, %v5961_v39  ;;  %v1156_v0 = vsel %vm500_vm3, %v7209_v62, %v5960_v12 }
 0x73c   :  { %v5964_v32 = vpop.permute.xlu1 %5963 }
 0x73d   :  { %v5966_v36 = vunpack.i.h.bf16 %v5964_v32  ;;  %v5965_v44 = vunpack.i.l.bf16 %v5964_v32 }
 0x73f   :  { %v1160_v14 = vsel %vm1157_vm7, %v1156_v0, %v5965_v44  ;;  %v1870_v6 = vsel %vm1157_vm7, %v1867_v3, %v5966_v36 }
 0x740   :  { %v5974_v9 = vpop.permute.xlu1 %5973 }
 0x741   :  { %v5976_v21 = vunpack.i.h.bf16 %v5974_v9  ;;  %v5975_v33 = vunpack.i.l.bf16 %v5974_v9 }
 0x743   :  { %v1869_v62 = vsel %vm500_vm3, %v7233_v26, %v5976_v21  ;;  %v1868_v35 = vsel %vm500_vm3, %v7235_v45, %v5975_v33  ;;  %v5159_v45 = vld [vmem:[%s8373_s8] ss:$0 sm:$0xff] }
 0x744   :  { %v5969_v49 = vpop.permute.xlu0 %5968 }
 0x745   :  { %v5971_v19 = vunpack.i.h.bf16 %v5969_v49  ;;  %v5970_v18 = vunpack.i.l.bf16 %v5969_v49 }
 0x746   :  { %v5984_v7 = vpop.permute.xlu1 %5983 }
 0x747   :  { %v1163_v42 = vsel %vm122_vm1, %v1160_v14, %v5970_v18  ;;  %v1873_v31 = vsel %vm122_vm1, %v1870_v6, %v5971_v19  ;;  %v5986_v24 = vunpack.i.h.bf16 %v5984_v7  ;;  %v5985_v17 = vunpack.i.l.bf16 %v5984_v7 }
 0x748   :  { %v5979_v15 = vpop.permute.xlu0 %5978  ;;  %v1877_v46 = vpack.c.bf16 %v1873_v31, %v1163_v42 }
 0x749   :  { %v5981_v2 = vunpack.i.h.bf16 %v5979_v15  ;;  %v5980_v50 = vunpack.i.l.bf16 %v5979_v15 }
 0x74a   :  { %5693 = vmatmul.mubr.msk.bf16.gmra.mrb[52].mxu0 %vm191_vm2, %v1877_v46 }
 0x74b   :  { %v1872_v38 = vsel %vm1157_vm7, %v1869_v62, %v5981_v2  ;;  %v1871_v43 = vsel %vm1157_vm7, %v1868_v35, %v5980_v50  ;;  %5696 = vmatprep.mubr.msk.bf16.mxu0 %vm6530_vm0, %v6529_v1 }
 0x74c   :  { %v1874_v22 = vsel %vm122_vm1, %v1871_v43, %v5985_v17  ;;  %v1875_v47 = vsel %vm122_vm1, %v1872_v38, %v5986_v24 }
 0x74d   :  { %v1878_v25 = vpack.c.bf16 %v1875_v47, %v1874_v22 }
 0x752   :  { %5697 = vmatmul.mubr.msk.bf16.gmra.mrb[56].mxu0 %vm191_vm2, %v1878_v25 }
 0x7e7   :  { %v1954_v26 = vpop.f32.mrb[48].mxu0 }
 0x7e8   :  { %v1977_v11 = vadd.f32 %v1954_v26, %v6683_v10  ;;  %v5690_v29 = vpop.f32.mrb[49].mxu0 }
 0x7e9   :  { %v1957_v51 = vpop.f32.mrb[50].mxu0 }
 0x7ea   :  { %v7277_v53 = vadd.f32 %v5159_v45, %v1977_v11  ;;  %v1978_v8 = vadd.f32 %v1957_v51, %v6685_v13  ;;  %v5691_v58 = vpop.f32.mrb[51].mxu0 }
 0x7ec   :  { %v7280_v54 = vadd.f32 %v5159_v45, %v1978_v8  ;;  %v1998_v5 = vsel %vm191_vm2, %v7277_v53, 0.0  ;;  %v2022_v59 = vmul.f32 %v7277_v53, %v7277_v53 }
 0x7ed   :  { %1999 = vadd.xlane.f32.xlu0 %v1998_v5 }
 0x7ee   :  { %v2001_v40 = vsel %vm191_vm2, %v7280_v54, 0.0  ;;  %v2028_v10 = vsel %vm191_vm2, %v2022_v59, 0.0  ;;  %v2023_v34 = vmul.f32 %v7280_v54, %v7280_v54 }
 0x7ef   :  { %2002 = vadd.xlane.f32.xlu1 %v2001_v40 }
 0x7f0   :  { %v2031_v13 = vsel %vm191_vm2, %v2023_v34, 0.0  ;;  %v7352_v34 = vld [vmem:[%s8374_s9] ss:$0 sm:$0xff] }
 0x7f1   :  { %2029 = vadd.xlane.f32.xlu0 %v2028_v10 }
 0x7f5   :  { %2032 = vadd.xlane.f32.xlu0 %v2031_v13 }
 0x81d   :  { %v1962_v32 = vpop.f32.mrb[52].mxu0 }
 0x81e   :  { %v1979_v61 = vadd.f32 %v1962_v32, %v6702_v23  ;;  %v5694_v39 = vpop.f32.mrb[53].mxu0 }
 0x81f   :  { %v1965_v12 = vpop.f32.mrb[54].mxu0 }
 0x820   :  { %v7317_v36 = vadd.f32 %v5159_v45, %v1979_v61  ;;  %v1980_v44 = vadd.f32 %v1965_v12, %v6705_v27  ;;  %v5695_v9 = vpop.f32.mrb[55].mxu0 }
 0x822   :  { %v7320_v49 = vadd.f32 %v5159_v45, %v1980_v44  ;;  %v2004_v3 = vsel %vm191_vm2, %v7317_v36, 0.0  ;;  %v2024_v0 = vmul.f32 %v7317_v36, %v7317_v36 }
 0x823   :  { %2005 = vadd.xlane.f32.xlu0 %v2004_v3 }
 0x824   :  { %v2007_v19 = vsel %vm191_vm2, %v7320_v49, 0.0  ;;  %v2025_v23 = vmul.f32 %v7320_v49, %v7320_v49  ;;  %v2034_v6 = vsel %vm191_vm2, %v2024_v0, 0.0 }
 0x825   :  { %2008 = vadd.xlane.f32.xlu1 %v2007_v19  ;;  %v1970_v18 = vpop.f32.mrb[56].mxu0 }
 0x826   :  { %v1981_v27 = vadd.f32 %v1970_v18, %v6722_v37  ;;  %v5698_v14 = vpop.f32.mrb[57].mxu0  ;;  %v2037_v7 = vsel %vm191_vm2, %v2025_v23, 0.0 }
 0x827   :  { %2035 = vadd.xlane.f32.xlu0 %v2034_v6  ;;  %v1973_v21 = vpop.f32.mrb[58].mxu0 }
 0x828   :  { %v7332_v33 = vadd.f32 %v5159_v45, %v1981_v27  ;;  %v1982_v42 = vadd.f32 %v1973_v21, %v6725_v41  ;;  %v5699_v31 = vpop.f32.mrb[59].mxu0 }
 0x829   :  { %2038 = vadd.xlane.f32.xlu1 %v2037_v7 }
 0x82a   :  { %v7336_v15 = vadd.f32 %v5159_v45, %v1982_v42  ;;  %v2010_v46 = vsel %vm191_vm2, %v7332_v33, 0.0  ;;  %v2026_v37 = vmul.f32 %v7332_v33, %v7332_v33 }
 0x82b   :  { %2011 = vadd.xlane.f32.xlu0 %v2010_v46 }
 0x82c   :  { %v2013_v2 = vsel %vm191_vm2, %v7336_v15, 0.0  ;;  %v2027_v50 = vmul.f32 %v7336_v15, %v7336_v15  ;;  %v2040_v41 = vsel %vm191_vm2, %v2026_v37, 0.0 }
 0x82d   :  { %2014 = vadd.xlane.f32.xlu1 %v2013_v2 }
 0x82e   :  { %v2043_v62 = vsel %vm191_vm2, %v2027_v50, 0.0 }
 0x82f   :  { %2041 = vadd.xlane.f32.xlu0 %v2040_v41 }
 0x831   :  { %2044 = vadd.xlane.f32.xlu1 %v2043_v62 }
 0x87a   :  { %v2000_v35 = vpop.xlane.xlu0 %1999 }
 0x87b   :  { %v2016_v24 = vmul.f32 0.015625, %v2000_v35 }
 0x87c   :  { %v2003_v17 = vpop.xlane.xlu1 %2002 }
 0x87d   :  { %v2052_v43 = vmul.f32 %v2016_v24, %v2016_v24  ;;  %v2017_v22 = vmul.f32 0.015625, %v2003_v17  ;;  %v2070_v59 = vsub.f32 %v7277_v53, %v2016_v24 }
 0x87e   :  { %v2030_v38 = vpop.xlane.xlu0 %2029 }
 0x87f   :  { %v2046_v47 = vmul.f32 0.015625, %v2030_v38  ;;  %v2053_v45 = vmul.f32 %v2017_v22, %v2017_v22  ;;  %v2071_v13 = vsub.f32 %v7280_v54, %v2017_v22 }
 0x881   :  { %v2058_v25 = vsub.f32 %v2046_v47, %v2052_v43 }
 0x882   :  { %v2033_v26 = vpop.xlane.xlu0 %2032 }
 0x883   :  { %v2064_v11 = vmax.f32 %v2058_v25, 0.0  ;;  %v2047_v29 = vmul.f32 0.015625, %v2033_v26 }
 0x885   :  { %v2076_v51 = vadd.f32 1e-06, %v2064_v11  ;;  %v2059_v8 = vsub.f32 %v2047_v29, %v2053_v45 }
 0x887   :  { %6299 = vrsqrt.f32 %v2076_v51  ;;  %v2065_v58 = vmax.f32 %v2059_v8, 0.0 }
 0x889   :  { %v2077_v5 = vadd.f32 1e-06, %v2065_v58 }
 0x88b   :  { %6301 = vrsqrt.f32 %v2077_v5 }
 0x891   :  { %v6300_v40 = vpop.eup %6299 }
 0x892   :  { %v2088_v10 = vmul.f32 %v6300_v40, %v2070_v59 }
 0x894   :  { %v2100_v48 = vmul.f32 %v7352_v34, %v2088_v10 }
 0x895   :  { %v6302_v16 = vpop.eup %6301 }
 0x896   :  { %v2089_v60 = vmul.f32 %v6302_v16, %v2071_v13  ;;  %v2112_v63 = vadd.f32 %v7359_v52, %v2100_v48 }
 0x898   :  { %v2101_v4 = vmul.f32 %v7352_v34, %v2089_v60 }
 0x89a   :  { %v2113_v55 = vadd.f32 %v7359_v52, %v2101_v4 }
 0x89c   :  { %v2118_v56 = vpack.c.bf16 %v2113_v55, %v2112_v63 }
 0x89e   :  { %5170 = vmatmul.mubr.msk.bf16.vlgmr.msra.gmra.mrb[40].mxu1 %vm191_vm2, %v2118_v56 }
 0x89f   :  { %2232 = vmatprep.mubr.bf16.mxu1 %v6531_v57 }
 0x8b0   :  { %v2006_v32 = vpop.xlane.xlu0 %2005 }
 0x8b1   :  { %v2018_v61 = vmul.f32 0.015625, %v2006_v32 }
 0x8b2   :  { %v2009_v39 = vpop.xlane.xlu1 %2008 }
 0x8b3   :  { %v2019_v12 = vmul.f32 0.015625, %v2009_v39  ;;  %v2054_v9 = vmul.f32 %v2018_v61, %v2018_v61  ;;  %v2072_v26 = vsub.f32 %v7317_v36, %v2018_v61 }
 0x8b4   :  { %v2036_v44 = vpop.xlane.xlu0 %2035 }
 0x8b5   :  { %v2048_v3 = vmul.f32 0.015625, %v2036_v44  ;;  %v2055_v19 = vmul.f32 %v2019_v12, %v2019_v12  ;;  %v2073_v11 = vsub.f32 %v7320_v49, %v2019_v12  ;;  %v6127_v12 = vld [vmem:[%s8378_s13 + $0x40] sm:$0xff]  }
 0x8b6   :  { %v2039_v0 = vpop.xlane.xlu1 %2038  ;;  %v6128_v44 = vld [vmem:[%s8378_s13] sm:$0xff]   ;;  %5414 = vmatprep.subr.bf16.mxu0 %v6127_v12 }
 0x8b7   :  { %v2060_v23 = vsub.f32 %v2048_v3, %v2054_v9  ;;  %v2049_v18 = vmul.f32 0.015625, %v2039_v0  ;;  %5415 = vmatpush3.bf16.msra.mxu0 %v6128_v44  ;;  %v6131_v9 = vld [vmem:[%s8378_s13 + $0x50] sm:$0xff]   ;;  %v6133_v0 = vld [vmem:[%s8378_s13 + $0x58] sm:$0xff]  }
 0x8b8   :  { %v2012_v27 = vpop.xlane.xlu0 %2011  ;;  %v6132_v3 = vld [vmem:[%s8378_s13 + $0x10] sm:$0xff]  }
 0x8b9   :  { %v2066_v14 = vmax.f32 %v2060_v23, 0.0  ;;  %v2061_v6 = vsub.f32 %v2049_v18, %v2055_v19  ;;  %v2020_v21 = vmul.f32 0.015625, %v2012_v27  ;;  %v6134_v19 = vld [vmem:[%s8378_s13 + $0x18] sm:$0xff]   ;;  %v6135_v23 = vld [vmem:[%s8378_s13 + $0x60] sm:$0xff]   ;;  %v6137_v27 = vld [vmem:[%s8378_s13 + $0x68] sm:$0xff]  }
 0x8ba   :  { %v2015_v42 = vpop.xlane.xlu1 %2014  ;;  %v6136_v18 = vld [vmem:[%s8378_s13 + $0x20] sm:$0xff]  }
 0x8bb   :  { %v2078_v31 = vadd.f32 1e-06, %v2066_v14  ;;  %v2067_v7 = vmax.f32 %v2061_v6, 0.0  ;;  %v2021_v46 = vmul.f32 0.015625, %v2015_v42  ;;  %v2056_v50 = vmul.f32 %v2020_v21, %v2020_v21  ;;  %v6138_v14 = vld [vmem:[%s8378_s13 + $0x28] sm:$0xff]   ;;  %v6139_v6 = vld [vmem:[%s8378_s13 + $0x70] sm:$0xff]  }
 0x8bc   :  { %v2042_v37 = vpop.xlane.xlu0 %2041  ;;  %v2074_v59 = vsub.f32 %v7332_v33, %v2020_v21  ;;  %v6140_v21 = vld [vmem:[%s8378_s13 + $0x30] sm:$0xff]   ;;  %v6141_v42 = vld [vmem:[%s8378_s13 + $0x78] sm:$0xff]  }
 0x8bd   :  { %6303 = vrsqrt.f32 %v2078_v31  ;;  %v2079_v2 = vadd.f32 1e-06, %v2067_v7  ;;  %v2050_v41 = vmul.f32 0.015625, %v2042_v37  ;;  %v2057_v35 = vmul.f32 %v2021_v46, %v2021_v46  ;;  %v6142_v31 = vld [vmem:[%s8378_s13 + $0x38] sm:$0xff]   ;;  %v2129_v7 = vld [vmem:[%s8377_s12] sm:$0x3] }
 0x8be   :  { %v2045_v62 = vpop.xlane.xlu1 %2044  ;;  %v2075_v16 = vsub.f32 %v7336_v15, %v2021_v46  ;;  %v7434_v46 = vrot.slane %v2129_v7, %v6780_v28  ;;  %v7437_v37 = vrot.slane %v2129_v7, %v6785_v30 }
 0x8bf   :  { %6305 = vrsqrt.f32 %v2079_v2  ;;  %v2062_v24 = vsub.f32 %v2050_v41, %v2056_v50  ;;  %v2051_v17 = vmul.f32 0.015625, %v2045_v62 }
 0x8c1   :  { %v2068_v38 = vmax.f32 %v2062_v24, 0.0  ;;  %v2063_v43 = vsub.f32 %v2051_v17, %v2057_v35 }
 0x8c3   :  { %v2080_v22 = vadd.f32 1e-06, %v2068_v38  ;;  %v2069_v47 = vmax.f32 %v2063_v43, 0.0 }
 0x8c5   :  { %6307 = vrsqrt.f32 %v2080_v22  ;;  %v2081_v25 = vadd.f32 1e-06, %v2069_v47 }
 0x8c7   :  { %v6304_v45 = vpop.eup %6303  ;;  %6309 = vrsqrt.f32 %v2081_v25 }
 0x8c8   :  { %v2090_v29 = vmul.f32 %v6304_v45, %v2072_v26 }
 0x8c9   :  { %v6306_v51 = vpop.eup %6305 }
 0x8ca   :  { %v2091_v8 = vmul.f32 %v6306_v51, %v2073_v11  ;;  %v2102_v58 = vmul.f32 %v7352_v34, %v2090_v29 }
 0x8cc   :  { %v2103_v5 = vmul.f32 %v7352_v34, %v2091_v8  ;;  %v2114_v40 = vadd.f32 %v7359_v52, %v2102_v58 }
 0x8ce   :  { %v2115_v10 = vadd.f32 %v7359_v52, %v2103_v5 }
 0x8cf   :  { %v6308_v13 = vpop.eup %6307 }
 0x8d0   :  { %v2119_v60 = vpack.c.bf16 %v2115_v10, %v2114_v40  ;;  %v2092_v48 = vmul.f32 %v6308_v13, %v2074_v59 }
 0x8d1   :  { %v6310_v4 = vpop.eup %6309 }
 0x8d2   :  { %5171 = vmatmul.mubr.msk.bf16.gmra.mrb[44].mxu1 %vm191_vm2, %v2119_v60  ;;  %v2093_v63 = vmul.f32 %v6310_v4, %v2075_v16  ;;  %v2104_v55 = vmul.f32 %v7352_v34, %v2092_v48 }
 0x8d3   :  { %2242 = vmatprep.mubr.bf16.mxu1 %v6531_v57 }
 0x8d4   :  { %v2105_v56 = vmul.f32 %v7352_v34, %v2093_v63  ;;  %v2116_v32 = vadd.f32 %v7359_v52, %v2104_v55  ;;  %v6129_v34 = vld [vmem:[%s8378_s13 + $0x48] sm:$0xff]  }
 0x8d5   :  { %5416 = vmatprep.subr.bf16.mxu0 %v6129_v34 }
 0x8d6   :  { %v2117_v61 = vadd.f32 %v7359_v52, %v2105_v56  ;;  %v6130_v52 = vld [vmem:[%s8378_s13 + $0x8] sm:$0xff]  }
 0x8d7   :  { %5417 = vmatpush3.bf16.msra.mxu0 %v6130_v52 }
 0x8d8   :  { %v2120_v39 = vpack.c.bf16 %v2117_v61, %v2116_v32  ;;  %5418 = vmatprep.subr.bf16.mxu0 %v6131_v9 }
 0x8da   :  { %5172 = vmatmul.mubr.msk.bf16.gmra.mrb[48].mxu1 %vm191_vm2, %v2120_v39 }
 0x8db   :  { %2801 = vmatprep.mubr.bf16.mxu1 %v6531_v57  ;;  %5419 = vmatpush3.bf16.msra.mxu0 %v6132_v3 }
 0x8dc   :  { %5420 = vmatprep.subr.bf16.mxu0 %v6133_v0 }
 0x8df   :  { %5421 = vmatpush3.bf16.msra.mxu0 %v6134_v19 }
 0x8e0   :  { %5422 = vmatprep.subr.bf16.mxu0 %v6135_v23 }
 0x8e3   :  { %5423 = vmatpush3.bf16.msra.mxu0 %v6136_v18 }
 0x8e4   :  { %5424 = vmatprep.subr.bf16.mxu0 %v6137_v27 }
 0x8e7   :  { %5425 = vmatpush3.bf16.msra.mxu0 %v6138_v14 }
 0x8e8   :  { %5426 = vmatprep.subr.bf16.mxu0 %v6139_v6 }
 0x8eb   :  { %5427 = vmatpush3.bf16.msra.mxu0 %v6140_v21 }
 0x8ec   :  { %5428 = vmatprep.subr.bf16.mxu0 %v6141_v42 }
 0x8ef   :  { %5429 = vmatpush3.bf16.msra.mxu0 %v6142_v31 }
 0x971   :  { %v2224_v2 = vpop.f32.mrb[40].mxu1 }
 0x972   :  { %v2225_v50 = vadd.f32 %v2224_v2, %v7434_v46  ;;  %v2226_v41 = vpop.f32.mrb[41].mxu1 }
 0x973   :  { %v2227_v62 = vadd.f32 %v2226_v41, %v7437_v37  ;;  %v2228_v35 = vpop.f32.mrb[42].mxu1 }
 0x974   :  { %v2265_v24 = vmul.f32 0.044715, %v2225_v50  ;;  %v2229_v17 = vadd.f32 %v2228_v35, %v7434_v46  ;;  %v2230_v38 = vpop.f32.mrb[43].mxu1  ;;  %v2253_v12 = vmul.f32 0.5, %v2225_v50 }
 0x975   :  { %v2266_v43 = vmul.f32 0.044715, %v2227_v62  ;;  %v2231_v22 = vadd.f32 %v2230_v38, %v7437_v37  ;;  %v2254_v52 = vmul.f32 0.5, %v2227_v62 }
 0x976   :  { %v2277_v47 = vmul.f32 %v2265_v24, %v2225_v50  ;;  %v2267_v25 = vmul.f32 0.044715, %v2229_v17  ;;  %v2255_v44 = vmul.f32 0.5, %v2229_v17 }
 0x977   :  { %v2278_v26 = vmul.f32 %v2266_v43, %v2227_v62  ;;  %v2268_v45 = vmul.f32 0.044715, %v2231_v22  ;;  %v2256_v9 = vmul.f32 0.5, %v2231_v22 }
 0x978   :  { %v2289_v11 = vmul.f32 %v2277_v47, %v2225_v50  ;;  %v2279_v29 = vmul.f32 %v2267_v25, %v2229_v17 }
 0x979   :  { %v2290_v51 = vmul.f32 %v2278_v26, %v2227_v62  ;;  %v2280_v8 = vmul.f32 %v2268_v45, %v2231_v22 }
 0x97a   :  { %v2301_v58 = vadd.f32 %v2289_v11, %v2225_v50  ;;  %v2291_v5 = vmul.f32 %v2279_v29, %v2229_v17 }
 0x97b   :  { %v2292_v59 = vmul.f32 %v2280_v8, %v2231_v22  ;;  %v2302_v40 = vadd.f32 %v2290_v51, %v2227_v62 }
 0x97c   :  { %v2313_v10 = vmul.f32 0.7978846, %v2301_v58  ;;  %v2303_v13 = vadd.f32 %v2291_v5, %v2229_v17 }
 0x97d   :  { %v2304_v16 = vadd.f32 %v2292_v59, %v2231_v22  ;;  %v2314_v60 = vmul.f32 0.7978846, %v2302_v40 }
 0x97e   :  { %6311 = vtanh.f32 %v2313_v10  ;;  %v2315_v48 = vmul.f32 0.7978846, %v2303_v13 }
 0x97f   :  { %v2316_v4 = vmul.f32 0.7978846, %v2304_v16  ;;  %6313 = vtanh.f32 %v2314_v60 }
 0x980   :  { %6315 = vtanh.f32 %v2315_v48 }
 0x981   :  { %6317 = vtanh.f32 %v2316_v4 }
 0x988   :  { %v6312_v63 = vpop.eup %6311 }
 0x989   :  { %v6314_v55 = vpop.eup %6313  ;;  %v2337_v56 = vadd.f32 1.0, %v6312_v63 }
 0x98a   :  { %v6316_v32 = vpop.eup %6315  ;;  %v2338_v61 = vadd.f32 1.0, %v6314_v55 }
 0x98b   :  { %v6318_v39 = vpop.eup %6317  ;;  %v2339_v34 = vadd.f32 1.0, %v6316_v32  ;;  %v2349_v0 = vmul.f32 %v2337_v56, %v2253_v12 }
 0x98c   :  { %v2340_v3 = vadd.f32 1.0, %v6318_v39  ;;  %v2350_v23 = vmul.f32 %v2338_v61, %v2254_v52 }
 0x98d   :  { %v2351_v19 = vmul.f32 %v2339_v34, %v2255_v44 }
 0x98e   :  { %v2352_v18 = vmul.f32 %v2340_v3, %v2256_v9 }
 0x98f   :  { %v2361_v27 = vpack.c.bf16 %v2351_v19, %v2349_v0 }
 0x990   :  { %v2362_v14 = vpack.c.bf16 %v2352_v18, %v2350_v23 }
 0x992   :  { %2527 = vmatprep.mubr.bf16.mxu0 %v2362_v14 }
 0x993   :  { %2528 = vmatmul.mubr.bf16.vlgmr.msra.gmra.mrb[60].mxu0 %v2361_v27 }
 0x9a5   :  { %v2234_v6 = vpop.f32.mrb[44].mxu1 }
 0x9a6   :  { %v7444_v21 = vadd.f32 %v2234_v6, %v7434_v46  ;;  %v2236_v42 = vpop.f32.mrb[45].mxu1 }
 0x9a7   :  { %v7447_v31 = vadd.f32 %v2236_v42, %v7437_v37  ;;  %v2238_v7 = vpop.f32.mrb[46].mxu1 }
 0x9a8   :  { %v2269_v2 = vmul.f32 0.044715, %v7444_v21  ;;  %v7451_v50 = vadd.f32 %v2238_v7, %v7434_v46  ;;  %v2240_v41 = vpop.f32.mrb[47].mxu1 }
 0x9a9   :  { %v2270_v62 = vmul.f32 0.044715, %v7447_v31  ;;  %v7455_v35 = vadd.f32 %v2240_v41, %v7437_v37 }
 0x9aa   :  { %v2281_v24 = vmul.f32 %v2269_v2, %v7444_v21  ;;  %v2271_v17 = vmul.f32 0.044715, %v7451_v50 }
 0x9ab   :  { %v2282_v38 = vmul.f32 %v2270_v62, %v7447_v31  ;;  %v2272_v43 = vmul.f32 0.044715, %v7455_v35 }
 0x9ac   :  { %v2293_v22 = vmul.f32 %v2281_v24, %v7444_v21  ;;  %v2283_v47 = vmul.f32 %v2271_v17, %v7451_v50 }
 0x9ad   :  { %v2294_v25 = vmul.f32 %v2282_v38, %v7447_v31  ;;  %v2284_v26 = vmul.f32 %v2272_v43, %v7455_v35  ;;  %v2244_v45 = vpop.f32.mrb[48].mxu1  ;;  %v2257_v43 = vmul.f32 0.5, %v7444_v21 }
 0x9ae   :  { %v2295_v11 = vmul.f32 %v2283_v47, %v7451_v50  ;;  %v7467_v29 = vadd.f32 %v2244_v45, %v7434_v46  ;;  %v2246_v51 = vpop.f32.mrb[49].mxu1  ;;  %v2305_v8 = vadd.f32 %v2293_v22, %v7444_v21  ;;  %v2259_v22 = vmul.f32 0.5, %v7451_v50 }
 0x9af   :  { %v2296_v58 = vmul.f32 %v2284_v26, %v7455_v35  ;;  %v7472_v5 = vadd.f32 %v2246_v51, %v7437_v37  ;;  %v2248_v59 = vpop.f32.mrb[50].mxu1  ;;  %v2306_v40 = vadd.f32 %v2294_v25, %v7447_v31  ;;  %v2258_v25 = vmul.f32 0.5, %v7447_v31 }
 0x9b0   :  { %v2273_v10 = vmul.f32 0.044715, %v7467_v29  ;;  %v2249_v13 = vadd.f32 %v2248_v59, %v7434_v46  ;;  %v2250_v16 = vpop.f32.mrb[51].mxu1  ;;  %v2307_v60 = vadd.f32 %v2295_v11, %v7451_v50  ;;  %v2317_v48 = vmul.f32 0.7978846, %v2305_v8 }
 0x9b1   :  { %v2274_v4 = vmul.f32 0.044715, %v7472_v5  ;;  %v2251_v63 = vadd.f32 %v2250_v16, %v7437_v37  ;;  %v2308_v55 = vadd.f32 %v2296_v58, %v7455_v35  ;;  %v2318_v56 = vmul.f32 0.7978846, %v2306_v40 }
 0x9b2   :  { %v2285_v32 = vmul.f32 %v2273_v10, %v7467_v29  ;;  %v2275_v61 = vmul.f32 0.044715, %v2249_v13  ;;  %v2319_v39 = vmul.f32 0.7978846, %v2307_v60  ;;  %6319 = vtanh.f32 %v2317_v48 }
 0x9b3   :  { %v2286_v12 = vmul.f32 %v2274_v4, %v7472_v5  ;;  %v2276_v44 = vmul.f32 0.044715, %v2251_v63  ;;  %v2320_v46 = vmul.f32 0.7978846, %v2308_v55  ;;  %6321 = vtanh.f32 %v2318_v56 }
 0x9b4   :  { %v2297_v34 = vmul.f32 %v2285_v32, %v7467_v29  ;;  %v2287_v52 = vmul.f32 %v2275_v61, %v2249_v13  ;;  %6323 = vtanh.f32 %v2319_v39  ;;  %v2260_v26 = vmul.f32 0.5, %v7455_v35 }
 0x9b5   :  { %v2298_v9 = vmul.f32 %v2286_v12, %v7472_v5  ;;  %v2288_v37 = vmul.f32 %v2276_v44, %v2251_v63  ;;  %6325 = vtanh.f32 %v2320_v46  ;;  %v2261_v50 = vmul.f32 0.5, %v7467_v29 }
 0x9b6   :  { %v2299_v3 = vmul.f32 %v2287_v52, %v2249_v13  ;;  %v2309_v0 = vadd.f32 %v2297_v34, %v7467_v29  ;;  %v2263_v31 = vmul.f32 0.5, %v2249_v13  ;;  %v2262_v35 = vmul.f32 0.5, %v7472_v5  ;;  %v5189_v29 = vld [vmem:[%s8379_s14] ss:$0 sm:$0xff] }
 0x9b7   :  { %v2300_v19 = vmul.f32 %v2288_v37, %v2251_v63  ;;  %v2310_v23 = vadd.f32 %v2298_v9, %v7472_v5  ;;  %v2264_v56 = vmul.f32 0.5, %v2251_v63 }
 0x9b8   :  { %v2311_v18 = vadd.f32 %v2299_v3, %v2249_v13  ;;  %v2321_v27 = vmul.f32 0.7978846, %v2309_v0 }
 0x9b9   :  { %v2312_v14 = vadd.f32 %v2300_v19, %v2251_v63  ;;  %v2322_v6 = vmul.f32 0.7978846, %v2310_v23 }
 0x9ba   :  { %v2323_v42 = vmul.f32 0.7978846, %v2311_v18  ;;  %6327 = vtanh.f32 %v2321_v27 }
 0x9bb   :  { %v2324_v7 = vmul.f32 0.7978846, %v2312_v14  ;;  %6329 = vtanh.f32 %v2322_v6 }
 0x9bc   :  { %v6320_v2 = vpop.eup %6319  ;;  %6331 = vtanh.f32 %v2323_v42  ;;  %v6145_v42 = vld [vmem:[%s8370_s5 + $0x44] ss:$8 sps:$4 sm:$0xff]  }
 0x9bd   :  { %v6322_v41 = vpop.eup %6321  ;;  %v2341_v62 = vadd.f32 1.0, %v6320_v2  ;;  %6333 = vtanh.f32 %v2324_v7  ;;  %v6143_v7 = vld [vmem:[%s8370_s5 + $0x40] ss:$8 sps:$4 sm:$0xff]   ;;  %2769 = vmatprep.subr.bf16.mxu1 %v6145_v42  ;;  %v6148_v2 = vld [vmem:[%s8370_s5 + $0x54] ss:$8 sps:$4 sm:$0xff]  }
 0x9be   :  { %v6324_v24 = vpop.eup %6323  ;;  %v2342_v17 = vadd.f32 1.0, %v6322_v41  ;;  %2770 = vmatpush1.bf16.msra.mxu1 %v6143_v7  ;;  %v6146_v41 = vld [vmem:[%s8370_s5 + $0x50] ss:$8 sps:$4 sm:$0xff]   ;;  %v7572_v7 = vld [vmem:[%s8407_s1 + $0x1] ss:$0 sm:$0xff] }
 0x9bf   :  { %v6326_v38 = vpop.eup %6325  ;;  %v2343_v47 = vadd.f32 1.0, %v6324_v24  ;;  %v2353_v11 = vmul.f32 %v2341_v62, %v2257_v43  ;;  %2771 = vmatprep.subr.bf16.mxu1 %v6148_v2  ;;  %v6151_v62 = vld [vmem:[%s8370_s5 + $0x64] ss:$8 sps:$4 sm:$0xff]   ;;  %v6149_v24 = vld [vmem:[%s8370_s5 + $0x60] ss:$8 sps:$4 sm:$0xff]  }
 0x9c0   :  { %v2344_v45 = vadd.f32 1.0, %v6326_v38  ;;  %v2354_v8 = vmul.f32 %v2342_v17, %v2258_v25  ;;  %v6154_v38 = vld [vmem:[%s8370_s5 + $0x74] ss:$8 sps:$4 sm:$0xff]  }
 0x9c1   :  { %v2355_v51 = vmul.f32 %v2343_v47, %v2259_v22 }
 0x9c2   :  { %v2356_v58 = vmul.f32 %v2344_v45, %v2260_v26  ;;  %2772 = vmatpush1.bf16.msra.mxu1 %v6146_v41  ;;  %v6152_v26 = vld [vmem:[%s8370_s5 + $0x70] ss:$8 sps:$4 sm:$0xff]   ;;  %s8412_s5 = smov 48  }
 0x9c3   :  { %v2363_v59 = vpack.c.bf16 %v2355_v51, %v2353_v11  ;;  %2773 = vmatprep.subr.bf16.mxu1 %v6151_v62 }
 0x9c4   :  { %v6328_v40 = vpop.eup %6327  ;;  %v2364_v10 = vpack.c.bf16 %v2356_v58, %v2354_v8 }
 0x9c5   :  { %v6330_v16 = vpop.eup %6329  ;;  %v2345_v60 = vadd.f32 1.0, %v6328_v40 }
 0x9c6   :  { %v6332_v48 = vpop.eup %6331  ;;  %2535 = vmatprep.mubr.bf16.mxu0 %v2364_v10  ;;  %v2346_v21 = vadd.f32 1.0, %v6330_v16  ;;  %2774 = vmatpush1.bf16.msra.mxu1 %v6149_v24 }
 0x9c7   :  { %v6334_v4 = vpop.eup %6333  ;;  %2536 = vmatmul.mubr.bf16.gmra.mrb[64].mxu0 %v2363_v59  ;;  %v2347_v55 = vadd.f32 1.0, %v6332_v48  ;;  %v2357_v61 = vmul.f32 %v2345_v60, %v2261_v50  ;;  %2775 = vmatprep.subr.bf16.mxu1 %v6154_v38  ;;  %v7579_v38 = vld [vmem:[%s8408_s24 + $0x1] ss:$0 sm:$0xff] }
 0x9c8   :  { %v2348_v32 = vadd.f32 1.0, %v6334_v4  ;;  %v2358_v12 = vmul.f32 %v2346_v21, %v2262_v35 }
 0x9c9   :  { %v2359_v39 = vmul.f32 %v2347_v55, %v2263_v31 }
 0x9ca   :  { %v2360_v44 = vmul.f32 %v2348_v32, %v2264_v56  ;;  %2776 = vmatpush1.bf16.msra.mxu1 %v6152_v26 }
 0x9cb   :  { %v2365_v46 = vpack.c.bf16 %v2359_v39, %v2357_v61 }
 0x9cc   :  { %v2366_v34 = vpack.c.bf16 %v2360_v44, %v2358_v12 }
 0x9ce   :  { %2543 = vmatprep.mubr.bf16.mxu0 %v2366_v34 }
 0x9cf   :  { %2544 = vmatmul.mubr.bf16.gmra.mrb[68].mxu0 %v2365_v46 }
 0xa66   :  { %v5430_v52 = vpop.f32.mrb[60].mxu0 }
 0xa67   :  { %v5431_v9 = vpop.f32.mrb[61].mxu0 }
 0xa68   :  { %v5432_v37 = vadd.f32 %v5431_v9, %v5430_v52  ;;  %v5433_v3 = vpop.f32.mrb[62].mxu0 }
 0xa69   :  { %v5434_v13 = vpop.f32.mrb[63].mxu0 }
 0xa6a   :  { %v2552_v5 = vadd.f32 %v5432_v37, %v7277_v53  ;;  %v5435_v63 = vadd.f32 %v5434_v13, %v5433_v3 }
 0xa6c   :  { %v7497_v0 = vadd.f32 %v5189_v29, %v2552_v5  ;;  %v2553_v19 = vadd.f32 %v5435_v63, %v7280_v54 }
 0xa6e   :  { %v7500_v23 = vadd.f32 %v5189_v29, %v2553_v19  ;;  %v2575_v18 = vsel %vm191_vm2, %v7497_v0, 0.0  ;;  %v2599_v27 = vmul.f32 %v7497_v0, %v7497_v0 }
 0xa6f   :  { %2576 = vadd.xlane.f32.xlu0 %v2575_v18 }
 0xa70   :  { %v2578_v14 = vsel %vm191_vm2, %v7500_v23, 0.0  ;;  %v2600_v53 = vmul.f32 %v7500_v23, %v7500_v23  ;;  %v2605_v6 = vsel %vm191_vm2, %v2599_v27, 0.0 }
 0xa71   :  { %2579 = vadd.xlane.f32.xlu1 %v2578_v14 }
 0xa72   :  { %v2608_v54 = vsel %vm191_vm2, %v2600_v53, 0.0 }
 0xa73   :  { %2606 = vadd.xlane.f32.xlu0 %v2605_v6 }
 0xa75   :  { %2609 = vadd.xlane.f32.xlu1 %v2608_v54 }
 0xa9a   :  { %v5436_v17 = vpop.f32.mrb[64].mxu0 }
 0xa9b   :  { %v5437_v43 = vpop.f32.mrb[65].mxu0 }
 0xa9c   :  { %v5438_v22 = vadd.f32 %v5437_v43, %v5436_v17  ;;  %v5439_v47 = vpop.f32.mrb[66].mxu0 }
 0xa9d   :  { %v5440_v25 = vpop.f32.mrb[67].mxu0 }
 0xa9e   :  { %v2554_v45 = vadd.f32 %v5438_v22, %v7317_v36  ;;  %v5441_v11 = vadd.f32 %v5440_v25, %v5439_v47 }
 0xaa0   :  { %v7537_v51 = vadd.f32 %v5189_v29, %v2554_v45  ;;  %v2555_v8 = vadd.f32 %v5441_v11, %v7320_v49 }
 0xaa2   :  { %v7540_v58 = vadd.f32 %v5189_v29, %v2555_v8  ;;  %v5442_v59 = vpop.f32.mrb[68].mxu0  ;;  %v2581_v40 = vsel %vm191_vm2, %v7537_v51, 0.0  ;;  %v2601_v10 = vmul.f32 %v7537_v51, %v7537_v51 }
 0xaa3   :  { %v5443_v16 = vpop.f32.mrb[69].mxu0  ;;  %2582 = vadd.xlane.f32.xlu0 %v2581_v40 }
 0xaa4   :  { %v5444_v60 = vadd.f32 %v5443_v16, %v5442_v59  ;;  %v5445_v36 = vpop.f32.mrb[70].mxu0  ;;  %v2584_v48 = vsel %vm191_vm2, %v7540_v58, 0.0  ;;  %v2602_v49 = vmul.f32 %v7540_v58, %v7540_v58  ;;  %v2611_v31 = vsel %vm191_vm2, %v2601_v10, 0.0 }
 0xaa5   :  { %v5446_v21 = vpop.f32.mrb[71].mxu0  ;;  %2585 = vadd.xlane.f32.xlu1 %v2584_v48 }
 0xaa6   :  { %v2556_v4 = vadd.f32 %v5444_v60, %v7332_v33  ;;  %v5447_v50 = vadd.f32 %v5446_v21, %v5445_v36  ;;  %v2614_v56 = vsel %vm191_vm2, %v2602_v49, 0.0 }
 0xaa7   :  { %2612 = vadd.xlane.f32.xlu0 %v2611_v31 }
 0xaa8   :  { %v7552_v55 = vadd.f32 %v5189_v29, %v2556_v4  ;;  %v2557_v35 = vadd.f32 %v5447_v50, %v7336_v15 }
 0xaa9   :  { %2615 = vadd.xlane.f32.xlu1 %v2614_v56 }
 0xaaa   :  { %v7556_v32 = vadd.f32 %v5189_v29, %v2557_v35  ;;  %v2587_v61 = vsel %vm191_vm2, %v7552_v55, 0.0  ;;  %v2603_v39 = vmul.f32 %v7552_v55, %v7552_v55 }
 0xaab   :  { %2588 = vadd.xlane.f32.xlu0 %v2587_v61 }
 0xaac   :  { %v2590_v33 = vsel %vm191_vm2, %v7556_v32, 0.0  ;;  %v2604_v12 = vmul.f32 %v7556_v32, %v7556_v32  ;;  %v2617_v15 = vsel %vm191_vm2, %v2603_v39, 0.0 }
 0xaad   :  { %2591 = vadd.xlane.f32.xlu1 %v2590_v33 }
 0xaae   :  { %v2620_v44 = vsel %vm191_vm2, %v2604_v12, 0.0 }
 0xaaf   :  { %2618 = vadd.xlane.f32.xlu0 %v2617_v15 }
 0xab1   :  { %2621 = vadd.xlane.f32.xlu1 %v2620_v44 }
 0xafc   :  { %v2577_v46 = vpop.xlane.xlu0 %2576 }
 0xafd   :  { %v2593_v34 = vmul.f32 0.015625, %v2577_v46 }
 0xafe   :  { %v2580_v52 = vpop.xlane.xlu1 %2579 }
 0xaff   :  { %v2594_v9 = vmul.f32 0.015625, %v2580_v52  ;;  %v2629_v3 = vmul.f32 %v2593_v34, %v2593_v34  ;;  %v2647_v54 = vsub.f32 %v7497_v0, %v2593_v34 }
 0xb00   :  { %v2607_v37 = vpop.xlane.xlu0 %2606 }
 0xb01   :  { %v2623_v29 = vmul.f32 0.015625, %v2607_v37  ;;  %v2630_v5 = vmul.f32 %v2594_v9, %v2594_v9  ;;  %v2648_v2 = vsub.f32 %v7500_v23, %v2594_v9 }
 0xb02   :  { %v2610_v13 = vpop.xlane.xlu1 %2609 }
 0xb03   :  { %v2635_v63 = vsub.f32 %v2623_v29, %v2629_v3  ;;  %v2624_v19 = vmul.f32 0.015625, %v2610_v13 }
 0xb05   :  { %v2641_v18 = vmax.f32 %v2635_v63, 0.0  ;;  %v2636_v27 = vsub.f32 %v2624_v19, %v2630_v5 }
 0xb07   :  { %v2653_v14 = vadd.f32 1e-06, %v2641_v18  ;;  %v2642_v53 = vmax.f32 %v2636_v27, 0.0 }
 0xb09   :  { %6335 = vrsqrt.f32 %v2653_v14  ;;  %v2654_v6 = vadd.f32 1e-06, %v2642_v53 }
 0xb0b   :  { %6337 = vrsqrt.f32 %v2654_v6 }
 0xb13   :  { %v6336_v42 = vpop.eup %6335 }
 0xb14   :  { %v2665_v41 = vmul.f32 %v6336_v42, %v2647_v54 }
 0xb15   :  { %v6338_v62 = vpop.eup %6337 }
 0xb16   :  { %v2677_v24 = vmul.f32 %v7572_v7, %v2665_v41  ;;  %v2666_v17 = vmul.f32 %v6338_v62, %v2648_v2 }
 0xb18   :  { %v2678_v43 = vmul.f32 %v7572_v7, %v2666_v17  ;;  %v2689_v22 = vadd.f32 %v7579_v38, %v2677_v24 }
 0xb1a   :  { %v2690_v47 = vadd.f32 %v7579_v38, %v2678_v43 }
 0xb1c   :  { %v2695_v25 = vpack.c.bf16 %v2690_v47, %v2689_v22 }
 0xb1e   :  { %5211 = vmatmul.mubr.msk.bf16.vlgmr.msra.gmra.mrb[52].mxu1 %vm191_vm2, %v2695_v25 }
 0xb1f   :  { %2811 = vmatprep.mubr.bf16.mxu1 %v6531_v57 }
 0xb30   :  { %v2583_v26 = vpop.xlane.xlu0 %2582 }
 0xb31   :  { %v2595_v45 = vmul.f32 0.015625, %v2583_v26 }
 0xb32   :  { %v2586_v11 = vpop.xlane.xlu1 %2585 }
 0xb33   :  { %v2596_v8 = vmul.f32 0.015625, %v2586_v11  ;;  %v2631_v40 = vmul.f32 %v2595_v45, %v2595_v45  ;;  %v2649_v5 = vsub.f32 %v7537_v51, %v2595_v45 }
 0xb34   :  { %v2613_v59 = vpop.xlane.xlu0 %2612 }
 0xb35   :  { %v2625_v10 = vmul.f32 0.015625, %v2613_v59  ;;  %v2632_v60 = vmul.f32 %v2596_v8, %v2596_v8  ;;  %v2650_v19 = vsub.f32 %v7540_v58, %v2596_v8  ;;  %v5202_v8 = vld [vmem:[%s8371_s6 + $0x2] sm:$0x3]  ;;  %s8409_s6 = smov 80  }
 0xb36   :  { %v2616_v16 = vpop.xlane.xlu1 %2615  ;;  %v2713_v59 = vrot.slane %v5202_v8, %v6780_v28 }
 0xb37   :  { %v2637_v36 = vsub.f32 %v2625_v10, %v2631_v40  ;;  %v2626_v48 = vmul.f32 0.015625, %v2616_v16  ;;  %v2717_v10 = vrot.slane %v5202_v8, %v6785_v30 }
 0xb38   :  { %v2589_v49 = vpop.xlane.xlu0 %2588 }
 0xb39   :  { %v2643_v21 = vmax.f32 %v2637_v36, 0.0  ;;  %v2638_v4 = vsub.f32 %v2626_v48, %v2632_v60  ;;  %v2597_v50 = vmul.f32 0.015625, %v2589_v49 }
 0xb3a   :  { %v2592_v31 = vpop.xlane.xlu1 %2591 }
 0xb3b   :  { %v2655_v35 = vadd.f32 1e-06, %v2643_v21  ;;  %v2644_v56 = vmax.f32 %v2638_v4, 0.0  ;;  %v2598_v61 = vmul.f32 0.015625, %v2592_v31  ;;  %v2633_v12 = vmul.f32 %v2597_v50, %v2597_v50 }
 0xb3c   :  { %v2619_v39 = vpop.xlane.xlu0 %2618  ;;  %v2651_v54 = vsub.f32 %v7552_v55, %v2597_v50 }
 0xb3d   :  { %6339 = vrsqrt.f32 %v2655_v35  ;;  %v2656_v33 = vadd.f32 1e-06, %v2644_v56  ;;  %v2627_v15 = vmul.f32 0.015625, %v2619_v39  ;;  %v2634_v46 = vmul.f32 %v2598_v61, %v2598_v61 }
 0xb3e   :  { %v2622_v44 = vpop.xlane.xlu1 %2621  ;;  %v2652_v62 = vsub.f32 %v7556_v32, %v2598_v61 }
 0xb3f   :  { %6341 = vrsqrt.f32 %v2656_v33  ;;  %v2639_v34 = vsub.f32 %v2627_v15, %v2633_v12  ;;  %v2628_v52 = vmul.f32 0.015625, %v2622_v44 }
 0xb41   :  { %v2645_v9 = vmax.f32 %v2639_v34, 0.0  ;;  %v2640_v37 = vsub.f32 %v2628_v52, %v2634_v46 }
 0xb43   :  { %v2657_v3 = vadd.f32 1e-06, %v2645_v9  ;;  %v2646_v29 = vmax.f32 %v2640_v37, 0.0 }
 0xb45   :  { %6343 = vrsqrt.f32 %v2657_v3  ;;  %v2658_v13 = vadd.f32 1e-06, %v2646_v29 }
 0xb47   :  { %v6340_v63 = vpop.eup %6339  ;;  %6345 = vrsqrt.f32 %v2658_v13 }
 0xb48   :  { %v2667_v18 = vmul.f32 %v6340_v63, %v2649_v5 }
 0xb49   :  { %v6342_v27 = vpop.eup %6341 }
 0xb4a   :  { %v2668_v14 = vmul.f32 %v6342_v27, %v2650_v19  ;;  %v2679_v53 = vmul.f32 %v7572_v7, %v2667_v18 }
 0xb4c   :  { %v2680_v6 = vmul.f32 %v7572_v7, %v2668_v14  ;;  %v2691_v42 = vadd.f32 %v7579_v38, %v2679_v53 }
 0xb4e   :  { %v2692_v2 = vadd.f32 %v7579_v38, %v2680_v6 }
 0xb4f   :  { %v6344_v41 = vpop.eup %6343 }
 0xb50   :  { %v2696_v24 = vpack.c.bf16 %v2692_v2, %v2691_v42  ;;  %v2669_v17 = vmul.f32 %v6344_v41, %v2651_v54 }
 0xb51   :  { %v6346_v43 = vpop.eup %6345 }
 0xb52   :  { %5212 = vmatmul.mubr.msk.bf16.gmra.mrb[56].mxu1 %vm191_vm2, %v2696_v24  ;;  %v2670_v22 = vmul.f32 %v6346_v43, %v2652_v62  ;;  %v2681_v47 = vmul.f32 %v7572_v7, %v2669_v17 }
 0xb53   :  { %2821 = vmatprep.mubr.bf16.mxu1 %v6531_v57 }
 0xb54   :  { %v2682_v25 = vmul.f32 %v7572_v7, %v2670_v22  ;;  %v2693_v26 = vadd.f32 %v7579_v38, %v2681_v47 }
 0xb56   :  { %v2694_v45 = vadd.f32 %v7579_v38, %v2682_v25 }
 0xb58   :  { %v2697_v11 = vpack.c.bf16 %v2694_v45, %v2693_v26 }
 0xb5a   :  { %5213 = vmatmul.mubr.msk.bf16.gmra.mrb[60].mxu1 %vm191_vm2, %v2697_v11 }
 0xbf1   :  { %v2803_v40 = vpop.f32.mrb[52].mxu1 }
 0xbf2   :  { %v2805_v16 = vpop.f32.mrb[53].mxu1  ;;  %v2804_v36 = vadd.f32 %v2803_v40, %v2713_v59 }
 0xbf3   :  { %v2807_v60 = vpop.f32.mrb[54].mxu1  ;;  %v2806_v49 = vadd.f32 %v2805_v16, %v2717_v10 }
 0xbf4   :  { %v2808_v7 = vadd.f32 %v2807_v60, %v2713_v59  ;;  %v2809_v48 = vpop.f32.mrb[55].mxu1 }
 0xbf5   :  { %v2810_v21 = vadd.f32 %v2809_v48, %v2717_v10 }
 0xbf6   :  { %v5987_v38 = vpack.i.bf16 %v2808_v7, %v2804_v36  ;;  %v2832_v4 = vpack.c.bf16 %v2808_v7, %v2804_v36 }
 0xbf7   :  { %v7606_v50 = vpack.c.bf16 %v2810_v21, %v2806_v49 }
 0xbf8   :  { %5988 = vrot.lane.b32.xlu0 %v5987_v38, %s6532_s3  ;;  %5702 = vmatprep.mubr.msk.bf16.mxu1 %vm500_vm3, %v2832_v4 }
 0xbf9   :  { %5706 = vmatprep.subr.bf16.mxu0 %v7606_v50 }
 0xbfa   :  { %5707 = vmatpush3.bf16.msra.mxu0 %v7606_v50 }
 0xc25   :  { %v2813_v31 = vpop.f32.mrb[56].mxu1 }
 0xc26   :  { %v2814_v35 = vadd.f32 %v2813_v31, %v2713_v59  ;;  %v2815_v56 = vpop.f32.mrb[57].mxu1 }
 0xc27   :  { %v2816_v61 = vadd.f32 %v2815_v56, %v2717_v10  ;;  %v2817_v39 = vpop.f32.mrb[58].mxu1 }
 0xc28   :  { %v7612_v33 = vpack.c.bf16 %v2814_v35, %v2814_v35  ;;  %v2818_v12 = vadd.f32 %v2817_v39, %v2713_v59  ;;  %v2819_v15 = vpop.f32.mrb[59].mxu1 }
 0xc29   :  { %v7614_v44 = vpack.c.bf16 %v2816_v61, %v2816_v61  ;;  %v2820_v46 = vadd.f32 %v2819_v15, %v2717_v10 }
 0xc2a   :  { %v5992_v34 = vpack.i.bf16 %v2818_v12, %v2814_v35  ;;  %3034 = vrot.lane.b32.xlu0 %v7612_v33, %s6533_s26 }
 0xc2b   :  { %5860 = vmatprep.subr.msk.bf16.mxu0 %vm597_vm4, %v7614_v44  ;;  %v2980_v52 = vsel %vm597_vm4, %v7614_v44, 0 }
 0xc2c   :  { %5709 = vmatpush3.bf16.msra.mxu0 %v2980_v52  ;;  %5993 = vrot.lane.b32.xlu1 %v5992_v34, %s6532_s3 }
 0xc2d   :  { %v2823_v9 = vpop.f32.mrb[60].mxu1 }
 0xc2e   :  { %v2824_v37 = vadd.f32 %v2823_v9, %v2713_v59  ;;  %3189 = vrot.lane.b32.xlu0 %v2832_v4, %s6534_s27  ;;  %v2825_v3 = vpop.f32.mrb[61].mxu1 }
 0xc2f   :  { %v2826_v29 = vadd.f32 %v2825_v3, %v2717_v10  ;;  %v2827_v13 = vpop.f32.mrb[62].mxu1 }
 0xc30   :  { %v7624_v5 = vpack.c.bf16 %v2824_v37, %v2818_v12  ;;  %v2828_v63 = vadd.f32 %v2827_v13, %v2713_v59  ;;  %3032 = vrot.lane.b32.xlu1 %v2832_v4, %s6533_s26  ;;  %v2829_v19 = vpop.f32.mrb[63].mxu1 }
 0xc31   :  { %v7627_v18 = vpack.c.bf16 %v2826_v29, %v2820_v46  ;;  %v7629_v27 = vadd.f32 %v2829_v19, %v2717_v10 }
 0xc32   :  { %v5997_v14 = vpack.i.bf16 %v2828_v63, %v2824_v37  ;;  %3191 = vrot.lane.b32.xlu0 %v7612_v33, %s6534_s27  ;;  %v7639_v53 = vpack.c.bf16 %v2828_v63, %v2828_v63 }
 0xc34   :  { %5998 = vrot.lane.b32.xlu1 %v5997_v14, %s6532_s3  ;;  %s8410_s3 = smov 16  }
 0xc36   :  { %3344 = vrot.lane.b32.xlu0 %v2832_v4, %s8409_s6 }
 0xc3a   :  { %3346 = vrot.lane.b32.xlu0 %v7612_v33, %s8409_s6 }
 0xc3e   :  { %3744 = vrot.lane.b32.xlu0 %v7624_v5, %s6533_s26 }
 0xc42   :  { %3746 = vrot.lane.b32.xlu0 %v7639_v53, %s6533_s26 }
 0xc46   :  { %3901 = vrot.lane.b32.xlu0 %v7624_v5, %s6534_s27 }
 0xc4a   :  { %3903 = vrot.lane.b32.xlu0 %v7639_v53, %s6534_s27 }
 0xc4e   :  { %4056 = vrot.lane.b32.xlu0 %v7624_v5, %s8409_s6 }
 0xc52   :  { %4058 = vrot.lane.b32.xlu0 %v7639_v53, %s8409_s6 }
 0xc56   :  { %3129 = vrot.lane.b32.xlu0 %v7614_v44, %s6533_s26 }
 0xc6a   :  { %v5989_v6 = vpop.permute.xlu0 %5988 }
 0xc6b   :  { %v5990_v42 = vunpack.i.l.bf16 %v5989_v6  ;;  %v5991_v17 = vunpack.i.h.bf16 %v5989_v6 }
 0xc9c   :  { %v3035_v40 = vpop.permute.xlu0 %3034 }
 0xc9e   :  { %v5994_v54 = vpop.permute.xlu1 %5993 }
 0xc9f   :  { %v5996_v2 = vunpack.i.h.bf16 %v5994_v54  ;;  %v5995_v25 = vunpack.i.l.bf16 %v5994_v54 }
 0xca0   :  { %v3190_v7 = vpop.permute.xlu0 %3189 }
 0xca1   :  { %v6002_v41 = vpack.i.bf16 %v5996_v2, %v5990_v42 }
 0xca2   :  { %v3033_v62 = vpop.permute.xlu1 %3032 }
 0xca3   :  { %6003 = vxpose.xlu1.b32.start [1/3] (short) (narrow) %v6002_v41, 64 }
 0xca4   :  { %v3192_v38 = vpop.permute.xlu0 %3191 }
 0xca6   :  { %v5999_v24 = vpop.permute.xlu1 %5998 }
 0xca7   :  { %v6000_v43 = vunpack.i.l.bf16 %v5999_v24  ;;  %v6001_v22 = vunpack.i.h.bf16 %v5999_v24 }
 0xca8   :  { %v3345_v39 = vpop.permute.xlu0 %3344 }
 0xca9   :  { %v6004_v47 = vpack.i.bf16 %v6000_v43, %v5991_v17  ;;  %v6006_v26 = vpack.i.bf16 %v6001_v22, %v5995_v25 }
 0xcab   :  { %6005 = vxpose.xlu1.b32.cont [2/3] (short) (narrow) %v6004_v47, 64 }
 0xcac   :  { %v3347_v34 = vpop.permute.xlu0 %3346 }
 0xcaf   :  { %6007 = vxpose.xlu1.b32.end [3/3] (short) (narrow) %v6006_v26, 64 }
 0xcb0   :  { %v3745_v13 = vpop.permute.xlu0 %3744 }
 0xcb4   :  { %v3747_v6 = vpop.permute.xlu0 %3746 }
 0xcb8   :  { %v3902_v2 = vpop.permute.xlu0 %3901 }
 0xcbc   :  { %v3904_v24 = vpop.permute.xlu0 %3903 }
 0xcc0   :  { %v4057_v17 = vpop.permute.xlu0 %4056 }
 0xce1   :  { %3127 = vrot.lane.b32.xlu1 %v7606_v50, %s6533_s26 }
 0xce5   :  { %3282 = vrot.lane.b32.xlu1 %v7606_v50, %s6534_s27 }
 0xd27   :  { %v6008_v45 = vpop.trf.xlu1 }
 0xd28   :  { %v6009_v8 = vunpack.i.l.bf16 %v6008_v45  ;;  %v6012_v52 = vunpack.i.h.bf16 %v6008_v45 }
 0xd2b   :  { %v6013_v11 = vpop.trf.xlu1 }
 0xd2c   :  { %v6014_v59 = vunpack.i.l.bf16 %v6013_v11  ;;  %v6017_v15 = vunpack.i.h.bf16 %v6013_v11 }
 0xd2e   :  { %v2878_v10 = vpack.c.bf16 %v6014_v59, %v6009_v8  ;;  %v3590_v29 = vpack.c.bf16 %v6017_v15, %v6012_v52 }
 0xd2f   :  { %v6018_v16 = vpop.trf.xlu1 }
 0xd30   :  { %5700 = vmatprep.subr.bf16.mxu1 %v2878_v10  ;;  %v6019_v60 = vunpack.i.l.bf16 %v6018_v16  ;;  %v6022_v37 = vunpack.i.h.bf16 %v6018_v16 }
 0xd31   :  { %5701 = vmatpush3.bf16.msra.mxu1 %v2878_v10 }
 0xd33   :  { %v6023_v36 = vpop.trf.xlu1 }
 0xd34   :  { %v6024_v48 = vunpack.i.l.bf16 %v6023_v36  ;;  %5703 = vmatmul.mubr.msk.bf16.vlgmr.msra.gmra.mrb[64].mxu1 %vm500_vm3, %v7612_v33  ;;  %v6027_v3 = vunpack.i.h.bf16 %v6023_v36 }
 0xd35   :  { %5716 = vmatprep.mubr.msk.bf16.mxu1 %vm500_vm3, %v3033_v62 }
 0xd36   :  { %v2879_v49 = vpack.c.bf16 %v6024_v48, %v6019_v60  ;;  %v3591_v63 = vpack.c.bf16 %v6027_v3, %v6022_v37 }
 0xd37   :  { %v6028_v21 = vpop.trf.xlu1 }
 0xd38   :  { %5714 = vmatprep.subr.bf16.mxu1 %v2879_v49  ;;  %v6029_v4 = vunpack.i.l.bf16 %v6028_v21  ;;  %v6032_v19 = vunpack.i.h.bf16 %v6028_v21 }
 0xd39   :  { %5715 = vmatpush3.bf16.msra.mxu1 %v2879_v49 }
 0xd3b   :  { %v6033_v31 = vpop.trf.xlu1 }
 0xd3c   :  { %v6034_v35 = vunpack.i.l.bf16 %v6033_v31  ;;  %5717 = vmatmul.mubr.msk.bf16.vlgmr.msra.gmra.mrb[68].mxu1 %vm500_vm3, %v3035_v40  ;;  %v6037_v14 = vunpack.i.h.bf16 %v6033_v31 }
 0xd3d   :  { %5730 = vmatprep.mubr.msk.bf16.mxu1 %vm500_vm3, %v3190_v7 }
 0xd3e   :  { %v2880_v56 = vpack.c.bf16 %v6034_v35, %v6029_v4  ;;  %v3592_v42 = vpack.c.bf16 %v6037_v14, %v6032_v19 }
 0xd3f   :  { %v6038_v61 = vpop.trf.xlu1 }
 0xd40   :  { %5728 = vmatprep.subr.bf16.mxu1 %v2880_v56  ;;  %v6039_v33 = vunpack.i.l.bf16 %v6038_v61  ;;  %v6042_v41 = vunpack.i.h.bf16 %v6038_v61 }
 0xd41   :  { %5729 = vmatpush3.bf16.msra.mxu1 %v2880_v56 }
 0xd43   :  { %v6043_v12 = vpop.trf.xlu1 }
 0xd44   :  { %v6044_v46 = vunpack.i.l.bf16 %v6043_v12  ;;  %5731 = vmatmul.mubr.msk.bf16.vlgmr.msra.gmra.mrb[72].mxu1 %vm500_vm3, %v3192_v38  ;;  %v6047_v62 = vunpack.i.h.bf16 %v6043_v12 }
 0xd45   :  { %5744 = vmatprep.mubr.msk.bf16.mxu1 %vm500_vm3, %v3345_v39 }
 0xd46   :  { %v2881_v9 = vpack.c.bf16 %v6044_v46, %v6039_v33 }
 0xd48   :  { %5742 = vmatprep.subr.bf16.mxu1 %v2881_v9 }
 0xd49   :  { %5743 = vmatpush3.bf16.msra.mxu1 %v2881_v9 }
 0xd4a   :  { %5756 = vmatprep.subr.bf16.mxu1 %v3590_v29 }
 0xd4c   :  { %5745 = vmatmul.mubr.msk.bf16.vlgmr.msra.gmra.mrb[76].mxu1 %vm500_vm3, %v3347_v34 }
 0xd4d   :  { %5757 = vmatpush3.bf16.msra.mxu1 %v3590_v29  ;;  %5758 = vmatprep.mubr.msk.bf16.mxu1 %vm500_vm3, %v7624_v5  ;;  %v3593_v5 = vpack.c.bf16 %v6047_v62, %v6042_v41 }
 0xd4e   :  { %5770 = vmatprep.subr.bf16.mxu1 %v3591_v63 }
 0xd53   :  { %v7667_v54 = vpop.permute.xlu1 %3127 }
 0xd54   :  { %5720 = vmatprep.subr.bf16.mxu0 %v7667_v54  ;;  %5759 = vmatmul.mubr.msk.bf16.vlgmr.msra.gmra.mrb[80].mxu1 %vm500_vm3, %v7639_v53  ;;  %v4059_v53 = vpop.permute.xlu0 %4058 }
 0xd55   :  { %5771 = vmatpush3.bf16.msra.mxu1 %v3591_v63  ;;  %5772 = vmatprep.mubr.msk.bf16.mxu1 %vm500_vm3, %v3745_v13 }
 0xd56   :  { %5784 = vmatprep.subr.bf16.mxu1 %v3592_v42 }
 0xd5c   :  { %5773 = vmatmul.mubr.msk.bf16.vlgmr.msra.gmra.mrb[84].mxu1 %vm500_vm3, %v3747_v6 }
 0xd5d   :  { %5786 = vmatprep.mubr.msk.bf16.mxu1 %vm500_vm3, %v3902_v2  ;;  %5785 = vmatpush3.bf16.msra.mxu1 %v3592_v42 }
 0xd5e   :  { %5798 = vmatprep.subr.bf16.mxu1 %v3593_v5 }
 0xd64   :  { %5787 = vmatmul.mubr.msk.bf16.vlgmr.msra.gmra.mrb[88].mxu1 %vm500_vm3, %v3904_v24 }
 0xd65   :  { %5800 = vmatprep.mubr.msk.bf16.mxu1 %vm500_vm3, %v4057_v17  ;;  %5799 = vmatpush3.bf16.msra.mxu1 %v3593_v5 }
 0xd66   :  { %5812 = vmatprep.subr.bf16.mxu1 %v6529_v1 }
 0xd6c   :  { %5801 = vmatmul.mubr.msk.bf16.vlgmr.msra.gmra.mrb[92].mxu1 %vm500_vm3, %v4059_v53 }
 0xd6d   :  { %5820 = vmatprep.mubr.msk.bf16.mxu1 %vm6530_vm0, %v6529_v1 }
 0xe07   :  { %v5704_v43 = vpop.f32.mrb[64].mxu1 }
 0xe08   :  { %v7682_v22 = vadd.f32 %v5704_v43, %v6865_v20  ;;  %v2924_v47 = vpop.f32.mrb[65].mxu1 }
 0xe09   :  { %v5705_v25 = vpop.f32.mrb[66].mxu1  ;;  %v7685_v26 = vadd.f32 %v2924_v47, %v6865_v20 }
 0xe0a   :  { %v2927_v45 = vpop.f32.mrb[67].mxu1  ;;  %v2944_v11 = vsel %vm555_vm6, %v7682_v22, -inf }
 0xe0b   :  { %v7690_v8 = vadd.f32 %v2927_v45, %v6865_v20  ;;  %2945 = vmax.xlane.f32.xlu0 %v2944_v11  ;;  %v2938_v40 = vsel %vm555_vm6, %v7685_v26, -inf }
 0xe0d   :  { %v2941_v59 = vsel %vm555_vm6, %v7690_v8, -inf }
 0xe0e   :  { %2942 = vmax.xlane.f32.xlu1 %v2941_v59 }
 0xe0f   :  { %v5718_v10 = vpop.f32.mrb[68].mxu1  ;;  %2939 = vmax.xlane.f32.xlu0 %v2938_v40 }
 0xe10   :  { %v7697_v16 = vadd.f32 %v5718_v10, %v6865_v20  ;;  %v3076_v60 = vpop.f32.mrb[69].mxu1 }
 0xe11   :  { %v5719_v36 = vpop.f32.mrb[70].mxu1  ;;  %v7700_v7 = vadd.f32 %v3076_v60, %v6865_v20 }
 0xe12   :  { %v3079_v48 = vpop.f32.mrb[71].mxu1  ;;  %v3096_v49 = vsel %vm555_vm6, %v7697_v16, -inf }
 0xe13   :  { %3097 = vmax.xlane.f32.xlu0 %v3096_v49  ;;  %v7705_v21 = vadd.f32 %v3079_v48, %v6865_v20  ;;  %v3090_v38 = vsel %vm555_vm6, %v7700_v7, -inf }
 0xe15   :  { %v3093_v39 = vsel %vm555_vm6, %v7705_v21, -inf }
 0xe17   :  { %v5732_v4 = vpop.f32.mrb[72].mxu1  ;;  %3091 = vmax.xlane.f32.xlu0 %v3090_v38 }
 0xe18   :  { %v3233_v31 = vpop.f32.mrb[73].mxu1  ;;  %v7710_v56 = vadd.f32 %v5732_v4, %v6865_v20 }
 0xe19   :  { %v5733_v35 = vpop.f32.mrb[74].mxu1  ;;  %v7715_v33 = vadd.f32 %v3233_v31, %v6865_v20 }
 0xe1a   :  { %v3236_v61 = vpop.f32.mrb[75].mxu1  ;;  %v3253_v12 = vsel %vm555_vm6, %v7710_v56, -inf }
 0xe1b   :  { %3094 = vmax.xlane.f32.xlu0 %v3093_v39  ;;  %v7722_v52 = vadd.f32 %v3236_v61, %v6865_v20  ;;  %v3247_v37 = vsel %vm555_vm6, %v7715_v33, -inf }
 0xe1d   :  { %v3250_v29 = vsel %vm555_vm6, %v7722_v52, -inf }
 0xe1f   :  { %v5746_v15 = vpop.f32.mrb[76].mxu1  ;;  %3284 = vrot.lane.b32.xlu1 %v7614_v44, %s6534_s27  ;;  %3254 = vmax.xlane.f32.xlu0 %v3253_v12 }
 0xe20   :  { %v3388_v46 = vpop.f32.mrb[77].mxu1  ;;  %v7727_v3 = vadd.f32 %v5746_v15, %v6865_v20 }
 0xe21   :  { %v5747_v34 = vpop.f32.mrb[78].mxu1  ;;  %v7732_v14 = vadd.f32 %v3388_v46, %v6865_v20 }
 0xe22   :  { %v3391_v9 = vpop.f32.mrb[79].mxu1  ;;  %v3408_v42 = vsel %vm555_vm6, %v7727_v3, -inf }
 0xe23   :  { %3248 = vmax.xlane.f32.xlu0 %v3247_v37  ;;  %v7737_v2 = vadd.f32 %v3391_v9, %v6865_v20  ;;  %v3402_v41 = vsel %vm555_vm6, %v7732_v14, -inf }
 0xe25   :  { %v3405_v43 = vsel %vm555_vm6, %v7737_v2, -inf }
 0xe27   :  { %v5760_v13 = vpop.f32.mrb[80].mxu1  ;;  %3251 = vmax.xlane.f32.xlu0 %v3250_v29 }
 0xe28   :  { %v3636_v63 = vpop.f32.mrb[81].mxu1  ;;  %v7757_v36 = vadd.f32 %v5760_v13, %v6865_v20 }
 0xe29   :  { %v5761_v19 = vpop.f32.mrb[82].mxu1  ;;  %v7765_v35 = vadd.f32 %v3636_v63, %v6865_v20 }
 0xe2a   :  { %v3639_v6 = vpop.f32.mrb[83].mxu1  ;;  %v3656_v12 = vsel %vm555_vm6, %v7757_v36, -inf }
 0xe2b   :  { %3409 = vmax.xlane.f32.xlu0 %v3408_v42  ;;  %v7742_v17 = vadd.f32 %v3639_v6, %v6865_v20  ;;  %v3650_v9 = vsel %vm555_vm6, %v7765_v35, -inf }
 0xe2d   :  { %v3653_v25 = vsel %vm555_vm6, %v7742_v17, -inf }
 0xe2f   :  { %v5774_v62 = vpop.f32.mrb[84].mxu1  ;;  %3403 = vmax.xlane.f32.xlu0 %v3402_v41 }
 0xe30   :  { %v3788_v5 = vpop.f32.mrb[85].mxu1  ;;  %v7747_v47 = vadd.f32 %v5774_v62, %v6865_v20 }
 0xe31   :  { %v5775_v24 = vpop.f32.mrb[86].mxu1  ;;  %v7752_v40 = vadd.f32 %v3788_v5, %v6865_v20  ;;  %v7807_v5 = vpop.permute.xlu0 %3129 }
 0xe32   :  { %v3791_v53 = vpop.f32.mrb[87].mxu1  ;;  %v3808_v60 = vsel %vm555_vm6, %v7747_v47, -inf  ;;  %v7809_v24 = vpop.permute.xlu1 %3282 }
 0xe33   :  { %3406 = vmax.xlane.f32.xlu0 %v3405_v43  ;;  %v3802_v49 = vsel %vm555_vm6, %v7752_v40, -inf  ;;  %v7775_v46 = vadd.f32 %v3791_v53, %v6865_v20 }
 0xe35   :  { %v3805_v13 = vsel %vm555_vm6, %v7775_v46, -inf }
 0xe37   :  { %v5788_v45 = vpop.f32.mrb[88].mxu1  ;;  %3654 = vmax.xlane.f32.xlu0 %v3653_v25 }
 0xe38   :  { %v3945_v11 = vpop.f32.mrb[89].mxu1  ;;  %v7785_v29 = vadd.f32 %v5788_v45, %v6865_v20 }
 0xe39   :  { %v5789_v59 = vpop.f32.mrb[90].mxu1  ;;  %v7792_v19 = vadd.f32 %v3945_v11, %v6865_v20 }
 0xe3a   :  { %v3948_v10 = vpop.f32.mrb[91].mxu1  ;;  %v3965_v6 = vsel %vm555_vm6, %v7785_v29, -inf }
 0xe3b   :  { %3809 = vmax.xlane.f32.xlu0 %v3808_v60  ;;  %v7760_v48 = vadd.f32 %v3948_v10, %v6865_v20  ;;  %v3959_v41 = vsel %vm555_vm6, %v7792_v19, -inf }
 0xe3d   :  { %v3962_v15 = vsel %vm555_vm6, %v7760_v48, -inf }
 0xe3f   :  { %v5802_v38 = vpop.f32.mrb[92].mxu1  ;;  %3803 = vmax.xlane.f32.xlu0 %v3802_v49 }
 0xe40   :  { %v4100_v4 = vpop.f32.mrb[93].mxu1  ;;  %v7768_v61 = vadd.f32 %v5802_v38, %v6865_v20 }
 0xe41   :  { %v5803_v31 = vpop.f32.mrb[94].mxu1  ;;  %v7778_v34 = vadd.f32 %v4100_v4, %v6865_v20 }
 0xe42   :  { %v4103_v39 = vpop.f32.mrb[95].mxu1  ;;  %v4120_v37 = vsel %vm555_vm6, %v7768_v61, -inf }
 0xe43   :  { %3657 = vmax.xlane.f32.xlu1 %v3656_v12  ;;  %3963 = vmax.xlane.f32.xlu0 %v3962_v15  ;;  %v4114_v63 = vsel %vm555_vm6, %v7778_v34, -inf  ;;  %v7797_v42 = vadd.f32 %v4103_v39, %v6865_v20 }
 0xe45   :  { %v4117_v62 = vsel %vm555_vm6, %v7797_v42, -inf }
 0xe47   :  { %3651 = vmax.xlane.f32.xlu1 %v3650_v9  ;;  %4121 = vmax.xlane.f32.xlu0 %v4120_v37 }
 0xe4b   :  { %3806 = vmax.xlane.f32.xlu1 %v3805_v13  ;;  %4115 = vmax.xlane.f32.xlu0 %v4114_v63 }
 0xe4f   :  { %3966 = vmax.xlane.f32.xlu1 %v3965_v6 }
 0xe53   :  { %3960 = vmax.xlane.f32.xlu1 %v3959_v41 }
 0xe57   :  { %4118 = vmax.xlane.f32.xlu1 %v4117_v62 }
 0xe61   :  { %3437 = vrot.lane.b32.xlu0 %v7606_v50, %s8409_s6 }
 0xe68   :  { %3439 = vrot.lane.b32.xlu1 %v7614_v44, %s8409_s6 }
 0xe98   :  { %v2946_v20 = vpop.xlane.xlu0 %2945 }
 0xe99   :  { %v2949_v53 = vsub.f32 %v7682_v22, %v2946_v20 }
 0xe9b   :  { %v2954_v43 = vmul.f32 1.442695, %v2949_v53  ;;  %v2943_v25 = vpop.xlane.xlu1 %2942 }
 0xe9c   :  { %v2948_v45 = vsub.f32 %v7690_v8, %v2943_v25  ;;  %v2940_v11 = vpop.xlane.xlu0 %2939 }
 0xe9d   :  { %6347 = vpow2.f32 %v2954_v43  ;;  %v2947_v59 = vsub.f32 %v7685_v26, %v2940_v11 }
 0xe9e   :  { %v2952_v10 = vmul.f32 1.442695, %v2948_v45 }
 0xe9f   :  { %v2950_v50 = vmul.f32 1.442695, %v2947_v59 }
 0xea0   :  { %6349 = vpow2.f32 %v2952_v10  ;;  %v3098_v60 = vpop.xlane.xlu0 %3097 }
 0xea1   :  { %6351 = vpow2.f32 %v2950_v50  ;;  %v3101_v44 = vsub.f32 %v7697_v16, %v3098_v60 }
 0xea3   :  { %v3106_v49 = vmul.f32 1.442695, %v3101_v44 }
 0xea4   :  { %v3092_v38 = vpop.xlane.xlu0 %3091 }
 0xea5   :  { %6353 = vpow2.f32 %v3106_v49  ;;  %v3099_v22 = vsub.f32 %v7700_v7, %v3092_v38 }
 0xea7   :  { %v7816_v4 = vpop.eup %6347  ;;  %v3102_v31 = vmul.f32 1.442695, %v3099_v22 }
 0xea8   :  { %v3095_v8 = vpop.xlane.xlu0 %3094  ;;  %v2962_v39 = vsel %vm555_vm6, %v7816_v4, 0.0 }
 0xea9   :  { %6355 = vpow2.f32 %v3102_v31  ;;  %v3100_v26 = vsub.f32 %v7705_v21, %v3095_v8  ;;  %2963 = vadd.xlane.f32.xlu1 %v2962_v39 }
 0xeaa   :  { %v7821_v12 = vpop.eup %6349 }
 0xeab   :  { %v7823_v15 = vpop.eup %6351  ;;  %v3104_v16 = vmul.f32 1.442695, %v3100_v26  ;;  %v2959_v9 = vsel %vm555_vm6, %v7821_v12, 0.0 }
 0xeac   :  { %2960 = vadd.xlane.f32.xlu0 %v2959_v9  ;;  %v3255_v7 = vpop.xlane.xlu0 %3254  ;;  %v2956_v37 = vsel %vm555_vm6, %v7823_v15, 0.0 }
 0xead   :  { %6357 = vpow2.f32 %v3104_v16  ;;  %v3258_v13 = vsub.f32 %v7710_v56, %v3255_v7  ;;  %2957 = vadd.xlane.f32.xlu1 %v2956_v37 }
 0xeaf   :  { %v7830_v63 = vpop.eup %6353  ;;  %v3263_v21 = vmul.f32 1.442695, %v3258_v13 }
 0xeb0   :  { %v3249_v6 = vpop.xlane.xlu0 %3248  ;;  %v3114_v41 = vsel %vm555_vm6, %v7830_v63, 0.0 }
 0xeb1   :  { %6359 = vpow2.f32 %v3263_v21  ;;  %v3256_v62 = vsub.f32 %v7715_v33, %v3249_v6  ;;  %3115 = vadd.xlane.f32.xlu0 %v3114_v41  ;;  %v7866_v6 = vpop.permute.xlu1 %3284 }
 0xeb3   :  { %v7835_v20 = vpop.eup %6355  ;;  %v3259_v53 = vmul.f32 1.442695, %v3256_v62 }
 0xeb4   :  { %v3252_v43 = vpop.xlane.xlu0 %3251  ;;  %v3108_v25 = vsel %vm555_vm6, %v7835_v20, 0.0 }
 0xeb5   :  { %6361 = vpow2.f32 %v3259_v53  ;;  %v3257_v56 = vsub.f32 %v7722_v52, %v3252_v43  ;;  %3109 = vadd.xlane.f32.xlu0 %v3108_v25 }
 0xeb7   :  { %v7840_v45 = vpop.eup %6357  ;;  %v3261_v11 = vmul.f32 1.442695, %v3257_v56 }
 0xeb8   :  { %v3410_v59 = vpop.xlane.xlu0 %3409  ;;  %v3111_v10 = vsel %vm555_vm6, %v7840_v45, 0.0 }
 0xeb9   :  { %6363 = vpow2.f32 %v3261_v11  ;;  %v3413_v33 = vsub.f32 %v7727_v3, %v3410_v59  ;;  %3112 = vadd.xlane.f32.xlu1 %v3111_v10 }
 0xebb   :  { %v7845_v50 = vpop.eup %6359  ;;  %v3418_v60 = vmul.f32 1.442695, %v3413_v33 }
 0xebc   :  { %v3404_v44 = vpop.xlane.xlu0 %3403  ;;  %v3271_v49 = vsel %vm555_vm6, %v7845_v50, 0.0 }
 0xebd   :  { %6365 = vpow2.f32 %v3418_v60  ;;  %v3411_v52 = vsub.f32 %v7732_v14, %v3404_v44  ;;  %3272 = vadd.xlane.f32.xlu1 %v3271_v49 }
 0xebf   :  { %v7850_v38 = vpop.eup %6361  ;;  %v3414_v22 = vmul.f32 1.442695, %v3411_v52 }
 0xec0   :  { %v3407_v31 = vpop.xlane.xlu0 %3406  ;;  %v3265_v8 = vsel %vm555_vm6, %v7850_v38, 0.0 }
 0xec1   :  { %6367 = vpow2.f32 %v3414_v22  ;;  %v3412_v3 = vsub.f32 %v7737_v2, %v3407_v31  ;;  %3266 = vadd.xlane.f32.xlu1 %v3265_v8 }
 0xec3   :  { %v7855_v39 = vpop.eup %6363  ;;  %v3416_v26 = vmul.f32 1.442695, %v3412_v3 }
 0xec4   :  { %v3655_v16 = vpop.xlane.xlu0 %3654  ;;  %v3268_v9 = vsel %vm555_vm6, %v7855_v39, 0.0 }
 0xec5   :  { %6369 = vpow2.f32 %v3416_v26  ;;  %3269 = vadd.xlane.f32.xlu0 %v3268_v9  ;;  %v3660_v59 = vsub.f32 %v7742_v17, %v3655_v16 }
 0xec7   :  { %v7859_v14 = vpop.eup %6365  ;;  %v3664_v49 = vmul.f32 1.442695, %v3660_v59 }
 0xec8   :  { %v3810_v7 = vpop.xlane.xlu0 %3809  ;;  %v3426_v37 = vsel %vm555_vm6, %v7859_v14, 0.0 }
 0xec9   :  { %v3813_v13 = vsub.f32 %v7747_v47, %v3810_v7  ;;  %3427 = vadd.xlane.f32.xlu0 %v3426_v37 }
 0xecb   :  { %v7864_v2 = vpop.eup %6367  ;;  %v3818_v21 = vmul.f32 1.442695, %v3813_v13 }
 0xecc   :  { %v3804_v41 = vpop.xlane.xlu0 %3803  ;;  %v3420_v62 = vsel %vm555_vm6, %v7864_v2, 0.0 }
 0xecd   :  { %6371 = vpow2.f32 %v3818_v21  ;;  %v3811_v53 = vsub.f32 %v7752_v40, %v3804_v41  ;;  %3421 = vadd.xlane.f32.xlu0 %v3420_v62 }
 0xecf   :  { %v7871_v43 = vpop.eup %6369  ;;  %v3814_v25 = vmul.f32 1.442695, %v3811_v53 }
 0xed0   :  { %v3658_v56 = vpop.xlane.xlu1 %3657  ;;  %v3423_v47 = vsel %vm555_vm6, %v7871_v43, 0.0  ;;  %v3964_v33 = vpop.xlane.xlu0 %3963 }
 0xed1   :  { %6373 = vpow2.f32 %v3814_v25  ;;  %v3661_v11 = vsub.f32 %v7757_v36, %v3658_v56  ;;  %3424 = vadd.xlane.f32.xlu1 %v3423_v47  ;;  %v3969_v3 = vsub.f32 %v7760_v48, %v3964_v33 }
 0xed3   :  { %v3666_v10 = vmul.f32 1.442695, %v3661_v11  ;;  %v3973_v37 = vmul.f32 1.442695, %v3969_v3 }
 0xed4   :  { %v3652_v60 = vpop.xlane.xlu1 %3651  ;;  %v4122_v8 = vpop.xlane.xlu0 %4121 }
 0xed5   :  { %6375 = vpow2.f32 %v3666_v10  ;;  %v3659_v40 = vsub.f32 %v7765_v35, %v3652_v60 }
 0xed7   :  { %v7878_v44 = vpop.eup %6371  ;;  %v3662_v52 = vmul.f32 1.442695, %v3659_v40 }
 0xed8   :  { %v3807_v22 = vpop.xlane.xlu1 %3806  ;;  %v3826_v31 = vsel %vm555_vm6, %v7878_v44, 0.0  ;;  %v4116_v21 = vpop.xlane.xlu0 %4115 }
 0xed9   :  { %6377 = vpow2.f32 %v3662_v52  ;;  %v3812_v36 = vsub.f32 %v7775_v46, %v3807_v22  ;;  %3827 = vadd.xlane.f32.xlu1 %v3826_v31  ;;  %v4125_v46 = vsub.f32 %v7768_v61, %v4122_v8  ;;  %v4123_v25 = vsub.f32 %v7778_v34, %v4116_v21 }
 0xeda   :  { %6379 = vpow2.f32 %v3664_v49 }
 0xedb   :  { %v7883_v17 = vpop.eup %6373  ;;  %v3816_v26 = vmul.f32 1.442695, %v3812_v36  ;;  %v4126_v59 = vmul.f32 1.442695, %v4123_v25 }
 0xedc   :  { %v3967_v35 = vpop.xlane.xlu1 %3966  ;;  %v3820_v16 = vsel %vm555_vm6, %v7883_v17, 0.0 }
 0xedd   :  { %v3970_v9 = vsub.f32 %v7785_v29, %v3967_v35  ;;  %3821 = vadd.xlane.f32.xlu1 %v3820_v16  ;;  %6381 = vpow2.f32 %v3816_v26  ;;  %v4130_v29 = vmul.f32 1.442695, %v4125_v46 }
 0xedf   :  { %v7889_v7 = vpop.eup %6375  ;;  %v3975_v13 = vmul.f32 1.442695, %v3970_v9  ;;  %v7935_v9 = vpack.c.bf16 %v7629_v27, %v7629_v27 }
 0xee0   :  { %v3961_v41 = vpop.xlane.xlu1 %3960  ;;  %v3674_v48 = vsel %vm555_vm6, %v7889_v7, 0.0 }
 0xee1   :  { %6383 = vpow2.f32 %v3975_v13  ;;  %v3968_v62 = vsub.f32 %v7792_v19, %v3961_v41  ;;  %3675 = vadd.xlane.f32.xlu0 %v3674_v48 }
 0xee2   :  { %6385 = vpow2.f32 %v3973_v37  ;;  %v7951_v37 = vpop.permute.xlu0 %3437 }
 0xee3   :  { %v7895_v53 = vpop.eup %6377  ;;  %v3971_v56 = vmul.f32 1.442695, %v3968_v62 }
 0xee4   :  { %v4119_v47 = vpop.xlane.xlu1 %4118  ;;  %v3668_v61 = vsel %vm555_vm6, %v7895_v53, 0.0  ;;  %v7900_v11 = vpop.eup %6379 }
 0xee5   :  { %6387 = vpow2.f32 %v3971_v56  ;;  %3669 = vadd.xlane.f32.xlu0 %v3668_v61  ;;  %v4124_v19 = vsub.f32 %v7797_v42, %v4119_v47  ;;  %v3671_v10 = vsel %vm555_vm6, %v7900_v11, 0.0 }
 0xee6   :  { %6389 = vpow2.f32 %v4130_v29 }
 0xee7   :  { %v7905_v33 = vpop.eup %6381  ;;  %6391 = vpow2.f32 %v4126_v59  ;;  %v4128_v60 = vmul.f32 1.442695, %v4124_v19 }
 0xee8   :  { %v3823_v40 = vsel %vm555_vm6, %v7905_v33, 0.0  ;;  %v7949_v27 = vpop.permute.xlu1 %3439 }
 0xee9   :  { %3672 = vadd.xlane.f32.xlu0 %v3671_v10  ;;  %6393 = vpow2.f32 %v4128_v60 }
 0xeeb   :  { %v7907_v34 = vpop.eup %6383 }
 0xeec   :  { %v3983_v49 = vsel %vm555_vm6, %v7907_v34, 0.0  ;;  %v7913_v52 = vpop.eup %6385 }
 0xeed   :  { %3824 = vadd.xlane.f32.xlu0 %v3823_v40  ;;  %3984 = vadd.xlane.f32.xlu1 %v3983_v49  ;;  %v3980_v31 = vsel %vm555_vm6, %v7913_v52, 0.0 }
 0xeef   :  { %v7915_v42 = vpop.eup %6387 }
 0xef0   :  { %v3977_v22 = vsel %vm555_vm6, %v7915_v42, 0.0  ;;  %v7921_v36 = vpop.eup %6389 }
 0xef1   :  { %3978 = vadd.xlane.f32.xlu1 %v3977_v22  ;;  %3981 = vadd.xlane.f32.xlu0 %v3980_v31  ;;  %v4138_v8 = vsel %vm555_vm6, %v7921_v36, 0.0  ;;  %v7925_v3 = vpop.eup %6391 }
 0xef2   :  { %v4132_v26 = vsel %vm555_vm6, %v7925_v3, 0.0 }
 0xef3   :  { %v7929_v35 = vpop.eup %6393 }
 0xef4   :  { %v4135_v16 = vsel %vm555_vm6, %v7929_v35, 0.0 }
 0xef5   :  { %4139 = vadd.xlane.f32.xlu0 %v4138_v8 }
 0xef9   :  { %4133 = vadd.xlane.f32.xlu0 %v4132_v26 }
 0xefd   :  { %4136 = vadd.xlane.f32.xlu0 %v4135_v16 }
 0xf02   :  { %3841 = vrot.lane.b32.xlu1 %v7935_v9, %s6533_s26 }
 0xf06   :  { %3994 = vrot.lane.b32.xlu1 %v7627_v18, %s6534_s27 }
 0xf0a   :  { %3996 = vrot.lane.b32.xlu1 %v7935_v9, %s6534_s27 }
 0xf0e   :  { %4149 = vrot.lane.b32.xlu1 %v7627_v18, %s8409_s6 }
 0xf12   :  { %4151 = vrot.lane.b32.xlu1 %v7935_v9, %s8409_s6 }
 0xf13   :  { %3839 = vrot.lane.b32.xlu0 %v7627_v18, %s6533_s26 }
 0xf36   :  { %v2964_v46 = vpop.xlane.xlu1 %2963 }
 0xf37   :  { %6395 = vrcp.f32 %v2964_v46 }
 0xf39   :  { %v2961_v13 = vpop.xlane.xlu0 %2960 }
 0xf3a   :  { %6397 = vrcp.f32 %v2961_v13  ;;  %v2958_v21 = vpop.xlane.xlu1 %2957 }
 0xf3b   :  { %6399 = vrcp.f32 %v2958_v21 }
 0xf3e   :  { %v3116_v41 = vpop.xlane.xlu0 %3115 }
 0xf3f   :  { %6401 = vrcp.f32 %v3116_v41 }
 0xf41   :  { %v6396_v48 = vpop.eup %6395 }
 0xf42   :  { %v3110_v62 = vpop.xlane.xlu0 %3109  ;;  %v2970_v56 = vmul.f32 %v6396_v48, %v7816_v4 }
 0xf43   :  { %6403 = vrcp.f32 %v3110_v62 }
 0xf44   :  { %v6398_v29 = vpop.eup %6397  ;;  %v2972_v10 = vpack.c.bf16 %v2970_v56, %v2970_v56 }
 0xf45   :  { %v6400_v25 = vpop.eup %6399  ;;  %v2969_v47 = vmul.f32 %v6398_v29, %v7821_v12  ;;  %v3139_v12 = vsel %vm597_vm4, %v7807_v5, 0 }
 0xf46   :  { %v3113_v61 = vpop.xlane.xlu1 %3112  ;;  %v2968_v59 = vmul.f32 %v6400_v25, %v7823_v15  ;;  %v3449_v25 = vsel %vm597_vm4, %v7949_v27, 0 }
 0xf47   :  { %6405 = vrcp.f32 %v3113_v61 }
 0xf48   :  { %v2971_v19 = vpack.c.bf16 %v2969_v47, %v2968_v59 }
 0xf49   :  { %v6402_v4 = vpop.eup %6401 }
 0xf4a   :  { %v3273_v60 = vpop.xlane.xlu1 %3272  ;;  %5710 = vmatprep.mubr.msk.bf16.mxu0 %vm555_vm6, %v2971_v19  ;;  %v3122_v22 = vmul.f32 %v6402_v4, %v7830_v63  ;;  %v3692_v19 = vsel %vm597_vm4, %v7935_v9, 0 }
 0xf4b   :  { %5711 = vmatmul.mubr.msk.bf16.vlgmr.msra.gmra.mrb[72].mxu0 %vm555_vm6, %v2972_v10  ;;  %6407 = vrcp.f32 %v3273_v60 }
 0xf4c   :  { %5721 = vmatpush3.bf16.msra.mxu0 %v7667_v54  ;;  %v3124_v16 = vpack.c.bf16 %v3122_v22, %v3122_v22 }
 0xf4d   :  { %5861 = vmatprep.subr.msk.bf16.mxu0 %vm597_vm4, %v7807_v5  ;;  %v6404_v49 = vpop.eup %6403 }
 0xf4e   :  { %v3267_v40 = vpop.xlane.xlu1 %3266  ;;  %v3120_v54 = vmul.f32 %v6404_v49, %v7835_v20  ;;  %v3294_v20 = vsel %vm597_vm4, %v7866_v6, 0 }
 0xf4f   :  { %6409 = vrcp.f32 %v3267_v40 }
 0xf50   :  { %5723 = vmatpush3.bf16.msra.mxu0 %v3139_v12 }
 0xf51   :  { %v6406_v15 = vpop.eup %6405  ;;  %5734 = vmatprep.subr.bf16.mxu0 %v7809_v24 }
 0xf52   :  { %v3270_v31 = vpop.xlane.xlu0 %3269  ;;  %v3121_v8 = vmul.f32 %v6406_v15, %v7840_v45 }
 0xf53   :  { %6411 = vrcp.f32 %v3270_v31 }
 0xf54   :  { %v3123_v26 = vpack.c.bf16 %v3121_v8, %v3120_v54 }
 0xf55   :  { %v6408_v5 = vpop.eup %6407 }
 0xf56   :  { %5724 = vmatprep.mubr.msk.bf16.mxu0 %vm555_vm6, %v3123_v26  ;;  %v3428_v46 = vpop.xlane.xlu0 %3427  ;;  %v3279_v21 = vmul.f32 %v6408_v5, %v7845_v50 }
 0xf57   :  { %5725 = vmatmul.mubr.msk.bf16.vlgmr.msra.gmra.mrb[76].mxu0 %vm555_vm6, %v3124_v16  ;;  %6413 = vrcp.f32 %v3428_v46 }
 0xf58   :  { %5735 = vmatpush3.bf16.msra.mxu0 %v7809_v24  ;;  %v3281_v29 = vpack.c.bf16 %v3279_v21, %v3279_v21 }
 0xf59   :  { %5862 = vmatprep.subr.msk.bf16.mxu0 %vm597_vm4, %v7866_v6  ;;  %v6410_v13 = vpop.eup %6409 }
 0xf5a   :  { %v3422_v63 = vpop.xlane.xlu0 %3421  ;;  %v3277_v24 = vmul.f32 %v6410_v13, %v7850_v38 }
 0xf5b   :  { %6415 = vrcp.f32 %v3422_v63 }
 0xf5c   :  { %5737 = vmatpush3.bf16.msra.mxu0 %v3294_v20 }
 0xf5d   :  { %v6412_v45 = vpop.eup %6411  ;;  %5748 = vmatprep.subr.bf16.mxu0 %v7951_v37 }
 0xf5e   :  { %v3425_v41 = vpop.xlane.xlu1 %3424  ;;  %v3278_v48 = vmul.f32 %v6412_v45, %v7855_v39 }
 0xf5f   :  { %6417 = vrcp.f32 %v3425_v41 }
 0xf60   :  { %v3280_v62 = vpack.c.bf16 %v3278_v48, %v3277_v24 }
 0xf61   :  { %v6414_v50 = vpop.eup %6413 }
 0xf62   :  { %5738 = vmatprep.mubr.msk.bf16.mxu0 %vm555_vm6, %v3280_v62  ;;  %v3434_v39 = vmul.f32 %v6414_v50, %v7859_v14 }
 0xf63   :  { %5739 = vmatmul.mubr.msk.bf16.vlgmr.msra.gmra.mrb[80].mxu0 %vm555_vm6, %v3281_v29 }
 0xf64   :  { %5749 = vmatpush3.bf16.msra.mxu0 %v7951_v37  ;;  %v3436_v37 = vpack.c.bf16 %v3434_v39, %v3434_v39 }
 0xf65   :  { %5863 = vmatprep.subr.msk.bf16.mxu0 %vm597_vm4, %v7949_v27  ;;  %v6416_v6 = vpop.eup %6415 }
 0xf66   :  { %v3432_v56 = vmul.f32 %v6416_v6, %v7864_v2  ;;  %v3828_v27 = vpop.xlane.xlu1 %3827 }
 0xf68   :  { %5751 = vmatpush3.bf16.msra.mxu0 %v3449_v25 }
 0xf69   :  { %v6418_v38 = vpop.eup %6417  ;;  %5762 = vmatprep.subr.bf16.mxu0 %v7627_v18 }
 0xf6a   :  { %v3433_v47 = vmul.f32 %v6418_v38, %v7871_v43  ;;  %v3822_v43 = vpop.xlane.xlu1 %3821 }
 0xf6c   :  { %v3435_v61 = vpack.c.bf16 %v3433_v47, %v3432_v56 }
 0xf6e   :  { %5752 = vmatprep.mubr.msk.bf16.mxu0 %vm555_vm6, %v3435_v61  ;;  %v3676_v59 = vpop.xlane.xlu0 %3675 }
 0xf6f   :  { %5753 = vmatmul.mubr.msk.bf16.vlgmr.msra.gmra.mrb[84].mxu0 %vm555_vm6, %v3436_v37  ;;  %6419 = vrcp.f32 %v3676_v59 }
 0xf70   :  { %5763 = vmatpush3.bf16.msra.mxu0 %v7627_v18 }
 0xf71   :  { %5864 = vmatprep.subr.msk.bf16.mxu0 %vm597_vm4, %v7935_v9 }
 0xf72   :  { %v3670_v14 = vpop.xlane.xlu0 %3669 }
 0xf73   :  { %6421 = vrcp.f32 %v3670_v14 }
 0xf74   :  { %5765 = vmatpush3.bf16.msra.mxu0 %v3692_v19 }
 0xf76   :  { %v3673_v2 = vpop.xlane.xlu0 %3672 }
 0xf77   :  { %6423 = vrcp.f32 %v3673_v2 }
 0xf78   :  { %6425 = vrcp.f32 %v3822_v43 }
 0xf79   :  { %v6420_v4 = vpop.eup %6419 }
 0xf7a   :  { %v3825_v10 = vpop.xlane.xlu0 %3824  ;;  %v3985_v60 = vpop.xlane.xlu1 %3984  ;;  %v3682_v12 = vmul.f32 %v6420_v4, %v7889_v7 }
 0xf7b   :  { %6427 = vrcp.f32 %v3825_v10 }
 0xf7c   :  { %6429 = vrcp.f32 %v3828_v27  ;;  %v3684_v26 = vpack.c.bf16 %v3682_v12, %v3682_v12 }
 0xf7d   :  { %v6422_v40 = vpop.eup %6421 }
 0xf7e   :  { %v3982_v18 = vpop.xlane.xlu0 %3981  ;;  %v3979_v15 = vpop.xlane.xlu1 %3978  ;;  %v3680_v9 = vmul.f32 %v6422_v40, %v7895_v53  ;;  %v6156_v40 = vld [vmem:[%s8372_s7 + $0x28] sm:$0xff]  }
 0xf7f   :  { %6431 = vrcp.f32 %v3979_v15  ;;  %v6157_v15 = vld [vmem:[%s8372_s7 + $0x30] sm:$0xff]  }
 0xf80   :  { %6433 = vrcp.f32 %v3982_v18  ;;  %v6155_v18 = vld [vmem:[%s8372_s7 + $0x20] sm:$0xff]  }
 0xf81   :  { %v6424_v49 = vpop.eup %6423  ;;  %6435 = vrcp.f32 %v3985_v60  ;;  %5813 = vmatpush3.bf16.msra.mxu1 %v6155_v18 }
 0xf82   :  { %v4140_v22 = vpop.xlane.xlu0 %4139  ;;  %v3681_v31 = vmul.f32 %v6424_v49, %v7900_v11  ;;  %v6426_v54 = vpop.eup %6425  ;;  %5814 = vmatprep.subr.bf16.mxu1 %v6529_v1 }
 0xf83   :  { %v3832_v7 = vmul.f32 %v6426_v54, %v7883_v17  ;;  %v3842_v63 = vpop.permute.xlu1 %3841  ;;  %v6158_v54 = vld [vmem:[%s8372_s7 + $0x38] sm:$0xff]  }
 0xf84   :  { %v3683_v8 = vpack.c.bf16 %v3681_v31, %v3680_v9  ;;  %v3851_v48 = vsel %vm597_vm4, %v3842_v63, 0 }
 0xf85   :  { %v6428_v16 = vpop.eup %6427  ;;  %5815 = vmatpush3.bf16.msra.mxu1 %v6156_v40 }
 0xf86   :  { %5766 = vmatprep.mubr.msk.bf16.mxu0 %vm555_vm6, %v3683_v8  ;;  %v4134_v46 = vpop.xlane.xlu0 %4133  ;;  %v3833_v5 = vmul.f32 %v6428_v16, %v7905_v33  ;;  %v6430_v11 = vpop.eup %6429  ;;  %5816 = vmatprep.subr.bf16.mxu1 %v6529_v1 }
 0xf87   :  { %5767 = vmatmul.mubr.msk.bf16.vlgmr.msra.gmra.mrb[88].mxu0 %vm555_vm6, %v3684_v26  ;;  %v3995_v45 = vpop.permute.xlu1 %3994  ;;  %v3834_v24 = vmul.f32 %v6430_v11, %v7878_v44 }
 0xf88   :  { %v3835_v53 = vpack.c.bf16 %v3833_v5, %v3832_v7 }
 0xf89   :  { %v6432_v20 = vpop.eup %6431  ;;  %v3836_v29 = vpack.c.bf16 %v3834_v24, %v3834_v24  ;;  %5817 = vmatpush3.bf16.msra.mxu1 %v6157_v15 }
 0xf8a   :  { %v4137_v13 = vpop.xlane.xlu0 %4136  ;;  %5780 = vmatprep.mubr.msk.bf16.mxu0 %vm555_vm6, %v3835_v53  ;;  %v6434_v41 = vpop.eup %6433  ;;  %v3989_v17 = vmul.f32 %v6432_v20, %v7915_v42  ;;  %5818 = vmatprep.subr.bf16.mxu1 %v6529_v1 }
 0xf8b   :  { %6437 = vrcp.f32 %v4137_v13  ;;  %v3990_v33 = vmul.f32 %v6434_v41, %v7913_v52  ;;  %v3997_v62 = vpop.permute.xlu1 %3996  ;;  %v6436_v50 = vpop.eup %6435 }
 0xf8c   :  { %6439 = vrcp.f32 %v4134_v46  ;;  %v3991_v42 = vmul.f32 %v6436_v50, %v7907_v34  ;;  %v4006_v39 = vsel %vm597_vm4, %v3997_v62, 0 }
 0xf8d   :  { %6441 = vrcp.f32 %v4140_v22  ;;  %v3992_v6 = vpack.c.bf16 %v3990_v33, %v3989_v17  ;;  %5819 = vmatpush3.bf16.msra.mxu1 %v6158_v54 }
 0xf8e   :  { %v3840_v21 = vpop.permute.xlu0 %3839  ;;  %v3993_v47 = vpack.c.bf16 %v3991_v42, %v3991_v42 }
 0xf8f   :  { %5776 = vmatprep.subr.bf16.mxu0 %v3840_v21  ;;  %v4150_v52 = vpop.permute.xlu1 %4149 }
 0xf90   :  { %5777 = vmatpush3.bf16.msra.mxu0 %v3840_v21 }
 0xf91   :  { %5865 = vmatprep.subr.msk.bf16.mxu0 %vm597_vm4, %v3842_v63 }
 0xf93   :  { %v4152_v59 = vpop.permute.xlu1 %4151 }
 0xf94   :  { %5779 = vmatpush3.bf16.msra.mxu0 %v3851_v48 }
 0xf95   :  { %5790 = vmatprep.subr.bf16.mxu0 %v3995_v45  ;;  %v6438_v25 = vpop.eup %6437 }
 0xf96   :  { %v6440_v44 = vpop.eup %6439  ;;  %v4145_v38 = vmul.f32 %v6438_v25, %v7929_v35  ;;  %v4161_v35 = vsel %vm597_vm4, %v4152_v59, 0 }
 0xf97   :  { %5781 = vmatmul.mubr.msk.bf16.vlgmr.msra.gmra.mrb[92].mxu0 %vm555_vm6, %v3836_v29  ;;  %v4144_v56 = vmul.f32 %v6440_v44, %v7925_v3  ;;  %v6442_v61 = vpop.eup %6441 }
 0xf98   :  { %5791 = vmatpush3.bf16.msra.mxu0 %v3995_v45  ;;  %5794 = vmatprep.mubr.msk.bf16.mxu0 %vm555_vm6, %v3992_v6  ;;  %v4146_v34 = vmul.f32 %v6442_v61, %v7921_v36 }
 0xf99   :  { %5866 = vmatprep.subr.msk.bf16.mxu0 %vm597_vm4, %v3997_v62  ;;  %v4147_v37 = vpack.c.bf16 %v4145_v38, %v4144_v56 }
 0xf9a   :  { %v4148_v27 = vpack.c.bf16 %v4146_v34, %v4146_v34 }
 0xf9c   :  { %5793 = vmatpush3.bf16.msra.mxu0 %v4006_v39 }
 0xf9d   :  { %5804 = vmatprep.subr.bf16.mxu0 %v4150_v52 }
 0xf9f   :  { %5795 = vmatmul.mubr.msk.bf16.vlgmr.msra.gmra.mrb[96].mxu0 %vm555_vm6, %v3993_v47 }
 0xfa0   :  { %5805 = vmatpush3.bf16.msra.mxu0 %v4150_v52  ;;  %5808 = vmatprep.mubr.msk.bf16.mxu0 %vm555_vm6, %v4147_v37 }
 0xfa1   :  { %5867 = vmatprep.subr.msk.bf16.mxu0 %vm597_vm4, %v4152_v59 }
 0xfa4   :  { %5807 = vmatpush3.bf16.msra.mxu0 %v4161_v35 }
 0xfa7   :  { %5809 = vmatmul.mubr.msk.bf16.vlgmr.msra.gmra.mrb[100].mxu0 %vm555_vm6, %v4148_v27 }
 0xfa8   :  { %4608 = vmatprep.mubr.bf16.mxu0 %v6531_v57 }
0x101e   :  { %v8023_v3 = vpop.f32.mrb[72].mxu0 }
0x101f   :  { %v8025_v14 = vpop.f32.mrb[73].mxu0 }
0x1020   :  { %v5713_v19 = vpop.f32.mrb[74].mxu0 }
0x1021   :  { %v8027_v2 = vpop.f32.mrb[75].mxu0 }
0x102a   :  { %v5726_v43 = vpop.f32.mrb[76].mxu0 }
0x102b   :  { %v3175_v10 = vpop.f32.mrb[77].mxu0 }
0x102c   :  { %v5727_v36 = vpop.f32.mrb[78].mxu0 }
0x102d   :  { %v3178_v60 = vpop.f32.mrb[79].mxu0 }
0x102e   :  { %v6048_v4 = vpack.i.bf16 %v3178_v60, %v3175_v10 }
0x1030   :  { %6049 = vrot.lane.b32.xlu1 %v6048_v4, %s8410_s3 }
0x1036   :  { %v5740_v49 = vpop.f32.mrb[80].mxu0 }
0x1037   :  { %v3330_v12 = vpop.f32.mrb[81].mxu0 }
0x1038   :  { %v5741_v22 = vpop.f32.mrb[82].mxu0 }
0x1039   :  { %v3333_v9 = vpop.f32.mrb[83].mxu0 }
0x103a   :  { %v6053_v31 = vpack.i.bf16 %v3333_v9, %v3330_v12 }
0x103c   :  { %6054 = vrot.lane.b32.xlu0 %v6053_v31, %s8411_s30 }
0x1042   :  { %v5754_v8 = vpop.f32.mrb[84].mxu0 }
0x1043   :  { %v3485_v26 = vpop.f32.mrb[85].mxu0 }
0x1044   :  { %v5755_v16 = vpop.f32.mrb[86].mxu0 }
0x1045   :  { %v3488_v46 = vpop.f32.mrb[87].mxu0 }
0x1046   :  { %v6058_v7 = vpack.i.bf16 %v3488_v46, %v3485_v26 }
0x1048   :  { %6059 = vrot.lane.b32.xlu1 %v6058_v7, %s8412_s5 }
0x105a   :  { %v8047_v5 = vpop.f32.mrb[88].mxu0 }
0x105b   :  { %v3728_v63 = vpop.f32.mrb[89].mxu0 }
0x105c   :  { %v5769_v53 = vpop.f32.mrb[90].mxu0 }
0x105d   :  { %v8049_v13 = vpop.f32.mrb[91].mxu0 }
0x106a   :  { %v8051_v11 = vpop.f32.mrb[92].mxu0 }
0x106b   :  { %v3887_v20 = vpop.f32.mrb[93].mxu0 }
0x106c   :  { %v6063_v45 = vpack.i.bf16 %v3887_v20, %v5726_v43  ;;  %v5783_v21 = vpop.f32.mrb[94].mxu0 }
0x106d   :  { %v8053_v41 = vpop.f32.mrb[95].mxu0 }
0x106e   :  { %v6078_v24 = vpack.i.bf16 %v8051_v11, %v8053_v41  ;;  %6064 = vrot.lane.b32.xlu0 %v6063_v45, %s8410_s3 }
0x1072   :  { %v8058_v17 = vpop.f32.mrb[96].mxu0 }
0x1073   :  { %v4042_v33 = vpop.f32.mrb[97].mxu0 }
0x1074   :  { %v6068_v48 = vpack.i.bf16 %v4042_v33, %v5740_v49  ;;  %v5797_v62 = vpop.f32.mrb[98].mxu0 }
0x1075   :  { %v8060_v29 = vpop.f32.mrb[99].mxu0 }
0x1076   :  { %v6083_v50 = vpack.i.bf16 %v8058_v17, %v8060_v29  ;;  %6069 = vrot.lane.b32.xlu1 %v6068_v48, %s8411_s30 }
0x107a   :  { %v8065_v6 = vpop.f32.mrb[100].mxu0 }
0x107b   :  { %v4197_v25 = vpop.f32.mrb[101].mxu0 }
0x107c   :  { %v6073_v44 = vpack.i.bf16 %v4197_v25, %v5754_v8  ;;  %v5811_v42 = vpop.f32.mrb[102].mxu0 }
0x107d   :  { %v8067_v52 = vpop.f32.mrb[103].mxu0 }
0x107e   :  { %v6088_v38 = vpack.i.bf16 %v8065_v6, %v8067_v52  ;;  %6074 = vrot.lane.b32.xlu0 %v6073_v44, %s8412_s5 }
0x10a2   :  { %v6050_v39 = vpop.permute.xlu1 %6049 }
0x10a3   :  { %v6052_v47 = vunpack.i.h.bf16 %v6050_v39  ;;  %v6051_v61 = vunpack.i.l.bf16 %v6050_v39 }
0x10a5   :  { %v3536_v35 = vsel %vm500_vm3, %v8027_v2, %v6052_v47  ;;  %v3535_v27 = vsel %vm500_vm3, %v8025_v14, %v6051_v61  ;;  %v6161_v47 = vld [vmem:[%s8376_s11 + $0x44] ss:$8 sps:$4 sm:$0xff]   ;;  %v6159_v61 = vld [vmem:[%s8376_s11 + $0x40] ss:$8 sps:$4 sm:$0xff]  }
0x10a6   :  { %4576 = vmatprep.subr.bf16.mxu0 %v6161_v47 }
0x10a7   :  { %4577 = vmatpush1.bf16.msra.mxu0 %v6159_v61 }
0x10ae   :  { %v6055_v56 = vpop.permute.xlu0 %6054 }
0x10af   :  { %v6057_v37 = vunpack.i.h.bf16 %v6055_v56  ;;  %v6056_v59 = vunpack.i.l.bf16 %v6055_v56 }
0x10b1   :  { %v3539_v10 = vsel %vm1157_vm7, %v3536_v35, %v6057_v37  ;;  %v3538_v36 = vsel %vm1157_vm7, %v3535_v27, %v6056_v59  ;;  %v6162_v37 = vld [vmem:[%s8376_s11 + $0x50] ss:$8 sps:$4 sm:$0xff]   ;;  %v6164_v59 = vld [vmem:[%s8376_s11 + $0x54] ss:$8 sps:$4 sm:$0xff]   ;;  %v6165_v35 = vld [vmem:[%s8376_s11 + $0x60] ss:$8 sps:$4 sm:$0xff]  }
0x10b2   :  { %4578 = vmatprep.subr.bf16.mxu0 %v6164_v59  ;;  %v6170_v27 = vld [vmem:[%s8376_s11 + $0x74] ss:$8 sps:$4 sm:$0xff]  }
0x10b3   :  { %4579 = vmatpush1.bf16.msra.mxu0 %v6162_v37 }
0x10ba   :  { %v6060_v34 = vpop.permute.xlu1 %6059 }
0x10bb   :  { %v6062_v19 = vunpack.i.h.bf16 %v6060_v34  ;;  %v6061_v43 = vunpack.i.l.bf16 %v6060_v34  ;;  %v6167_v34 = vld [vmem:[%s8376_s11 + $0x64] ss:$8 sps:$4 sm:$0xff]  }
0x10bc   :  { %4580 = vmatprep.subr.bf16.mxu0 %v6167_v34 }
0x10bd   :  { %v3541_v60 = vsel %vm122_vm1, %v3538_v36, %v6061_v43  ;;  %v3542_v4 = vsel %vm122_vm1, %v3539_v10, %v6062_v19  ;;  %4581 = vmatpush1.bf16.msra.mxu0 %v6165_v35 }
0x10be   :  { %v4256_v18 = vpack.c.bf16 %v3542_v4, %v3541_v60  ;;  %v6168_v60 = vld [vmem:[%s8376_s11 + $0x70] ss:$8 sps:$4 sm:$0xff]   ;;  %4582 = vmatprep.subr.bf16.mxu0 %v6170_v27 }
0x10c0   :  { %5821 = vmatmul.mubr.msk.bf16.vlgmr.msra.gmra.mrb[96].mxu1 %vm191_vm2, %v4256_v18 }
0x10c1   :  { %5824 = vmatprep.mubr.msk.bf16.mxu1 %vm6530_vm0, %v6529_v1  ;;  %4583 = vmatpush1.bf16.msra.mxu0 %v6168_v60 }
0x10c2   :  { %5832 = vmatprep.subr.bf16.mxu0 %v6529_v1 }
0x10e0   :  { %v6065_v2 = vpop.permute.xlu0 %6064 }
0x10e1   :  { %v6067_v49 = vunpack.i.h.bf16 %v6065_v2  ;;  %v6066_v14 = vunpack.i.l.bf16 %v6065_v2 }
0x10e3   :  { %v4247_v9 = vsel %vm500_vm3, %v3728_v63, %v6067_v49  ;;  %v3537_v31 = vsel %vm500_vm3, %v8023_v3, %v6066_v14  ;;  %v8096_v3 = vld [vmem:[%s8373_s8 + $0x1] ss:$0 sm:$0xff] }
0x10e8   :  { %v6070_v40 = vpop.permute.xlu1 %6069 }
0x10e9   :  { %v6072_v12 = vunpack.i.h.bf16 %v6070_v40  ;;  %v6071_v15 = vunpack.i.l.bf16 %v6070_v40 }
0x10eb   :  { %v3540_v26 = vsel %vm1157_vm7, %v3537_v31, %v6071_v15  ;;  %v4250_v16 = vsel %vm1157_vm7, %v4247_v9, %v6072_v12 }
0x10f0   :  { %v6075_v22 = vpop.permute.xlu0 %6074 }
0x10f1   :  { %v6077_v54 = vunpack.i.h.bf16 %v6075_v22  ;;  %v6076_v8 = vunpack.i.l.bf16 %v6075_v22 }
0x10f3   :  { %v3543_v46 = vsel %vm122_vm1, %v3540_v26, %v6076_v8  ;;  %v4253_v7 = vsel %vm122_vm1, %v4250_v16, %v6077_v54 }
0x10f4   :  { %v4257_v53 = vpack.c.bf16 %v4253_v7, %v3543_v46 }
0x10f6   :  { %5825 = vmatmul.mubr.msk.bf16.gmra.mrb[100].mxu1 %vm191_vm2, %v4257_v53 }
0x10f7   :  { %5828 = vmatprep.mubr.msk.bf16.mxu1 %vm6530_vm0, %v6529_v1 }
0x1193   :  { %v4335_v63 = vpop.f32.mrb[96].mxu1 }
0x1194   :  { %v4358_v20 = vadd.f32 %v4335_v63, %v7497_v0  ;;  %v5822_v45 = vpop.f32.mrb[97].mxu1  ;;  %v8175_v63 = vld [vmem:[%s8374_s9 + $0x1] ss:$0 sm:$0xff]  ;;  %s6540_s9 = smov [#allocation4]  }
0x1195   :  { %v4338_v21 = vpop.f32.mrb[98].mxu1 }
0x1196   :  { %v8100_v33 = vadd.f32 %v8096_v3, %v4358_v20  ;;  %v4359_v48 = vadd.f32 %v4338_v21, %v7500_v23  ;;  %v5823_v62 = vpop.f32.mrb[99].mxu1 }
0x1197   :  { %v8182_v62 = vld [vmem:[%s8375_s10 + $0x1] ss:$0 sm:$0xff]  ;;  %s5086_s10 = sshll.u32 %s6540_s9, 4  ;;  %s5087_s10 = int_to_ptr.vmem [resolvable:$true] %s5086_s10 }
0x1198   :  { %v8104_v25 = vadd.f32 %v8096_v3, %v4359_v48  ;;  %v4382_v44 = vsel %vm191_vm2, %v8100_v33, 0.0  ;;  %v4406_v0 = vmul.f32 %v8100_v33, %v8100_v33  ;;  %s6481_s8 = scalar_lea.vmem %s5087_s10, 32  ;;  %p6486_p1 = scmp.lt.s32.totalorder %s5087_s10, %s5087_s10 }
0x1199   :  { %4383 = vadd.xlane.f32.xlu1 %v4382_v44  ;;  %p6482_p0 = scmp.ne.s32.totalorder %s5087_s10, %s6481_s8  ;;  %p6487_p2 = scmp.lt.s32.totalorder %s6481_s8, %s6481_s8 }
0x119a   :  { %v4385_v42 = vsel %vm191_vm2, %v8104_v25, 0.0  ;;  %v4412_v39 = vsel %vm191_vm2, %v4406_v0, 0.0  ;;  %v4407_v23 = vmul.f32 %v8104_v25, %v8104_v25 }
0x119b   :  { %4386 = vadd.xlane.f32.xlu0 %v4385_v42  ;;  %p6488_p3 = por %p6487_p2, %p6486_p1 }
0x119c   :  { %v4415_v56 = vsel %vm191_vm2, %v4407_v23, 0.0 }
0x119d   :  { %p6489_p4 = pnand %p6488_p3, %p6482_p0 }
0x119f   :  { %4413 = vadd.xlane.f32.xlu0 %v4412_v39 }
0x11a3   :  { %4416 = vadd.xlane.f32.xlu0 %v4415_v56 }
0x11c9   :  { %v4343_v19 = vpop.f32.mrb[100].mxu1 }
0x11ca   :  { %v4360_v43 = vadd.f32 %v4343_v19, %v7537_v51  ;;  %v5826_v10 = vpop.f32.mrb[101].mxu1 }
0x11cb   :  { %v4346_v36 = vpop.f32.mrb[102].mxu1 }
0x11cc   :  { %v8142_v4 = vadd.f32 %v8096_v3, %v4360_v43  ;;  %v4361_v18 = vadd.f32 %v4346_v36, %v7540_v58  ;;  %v5827_v2 = vpop.f32.mrb[103].mxu1 }
0x11ce   :  { %v8146_v40 = vadd.f32 %v8096_v3, %v4361_v18  ;;  %v4388_v51 = vsel %vm191_vm2, %v8142_v4, 0.0  ;;  %v4408_v49 = vmul.f32 %v8142_v4, %v8142_v4 }
0x11cf   :  { %4389 = vadd.xlane.f32.xlu1 %v4388_v51 }
0x11d0   :  { %v4391_v14 = vsel %vm191_vm2, %v8146_v40, 0.0  ;;  %v4409_v12 = vmul.f32 %v8146_v40, %v8146_v40  ;;  %v4418_v58 = vsel %vm191_vm2, %v4408_v49, 0.0 }
0x11d1   :  { %4392 = vadd.xlane.f32.xlu0 %v4391_v14 }
0x11d2   :  { %v4421_v15 = vsel %vm191_vm2, %v4409_v12, 0.0 }
0x11d3   :  { %4419 = vadd.xlane.f32.xlu1 %v4418_v58 }
0x11d5   :  { %4422 = vadd.xlane.f32.xlu0 %v4421_v15 }
0x11e4   :  { %6079 = vrot.lane.b32.xlu1 %v6078_v24, %s8410_s3 }
0x11e8   :  { %6089 = vrot.lane.b32.xlu1 %v6088_v38, %s8412_s5 }
0x11eb   :  { %6084 = vrot.lane.b32.xlu0 %v6083_v50, %s8411_s30 }
0x1226   :  { %v4384_v22 = vpop.xlane.xlu1 %4383 }
0x1227   :  { %v4400_v31 = vmul.f32 0.015625, %v4384_v22 }
0x1228   :  { %v4387_v9 = vpop.xlane.xlu0 %4386 }
0x1229   :  { %v4436_v8 = vmul.f32 %v4400_v31, %v4400_v31  ;;  %v4401_v26 = vmul.f32 0.015625, %v4387_v9  ;;  %v4454_v17 = vsub.f32 %v8100_v33, %v4400_v31 }
0x122b   :  { %v4437_v41 = vmul.f32 %v4401_v26, %v4401_v26  ;;  %v4455_v20 = vsub.f32 %v8104_v25, %v4401_v26 }
0x122c   :  { %v4414_v54 = vpop.xlane.xlu0 %4413 }
0x122d   :  { %v4430_v16 = vmul.f32 0.015625, %v4414_v54 }
0x122f   :  { %v4442_v46 = vsub.f32 %v4430_v16, %v4436_v8 }
0x1230   :  { %v4417_v11 = vpop.xlane.xlu0 %4416 }
0x1231   :  { %v4448_v24 = vmax.f32 %v4442_v46, 0.0  ;;  %v4431_v7 = vmul.f32 0.015625, %v4417_v11 }
0x1233   :  { %v4460_v53 = vadd.f32 1e-06, %v4448_v24  ;;  %v4443_v6 = vsub.f32 %v4431_v7, %v4437_v41 }
0x1235   :  { %6443 = vrsqrt.f32 %v4460_v53  ;;  %v4449_v52 = vmax.f32 %v4443_v6, 0.0 }
0x1237   :  { %v4461_v38 = vadd.f32 1e-06, %v4449_v52 }
0x1239   :  { %6445 = vrsqrt.f32 %v4461_v38 }
0x123f   :  { %v6444_v29 = vpop.eup %6443 }
0x1240   :  { %v4472_v50 = vmul.f32 %v6444_v29, %v4454_v17 }
0x1242   :  { %v4484_v48 = vmul.f32 %v8175_v63, %v4472_v50  ;;  %v6172_v50 = vld [vmem:[%s8378_s13 + $0x80] sm:$0xff]  }
0x1243   :  { %v6446_v45 = vpop.eup %6445 }
0x1244   :  { %v4473_v21 = vmul.f32 %v6446_v45, %v4455_v20  ;;  %v4496_v42 = vadd.f32 %v8182_v62, %v4484_v48  ;;  %v6173_v20 = vld [vmem:[%s8378_s13 + $0xc8] sm:$0xff]   ;;  %v6177_v48 = vld [vmem:[%s8378_s13 + $0xd8] sm:$0xff]  }
0x1245   :  { %v6174_v45 = vld [vmem:[%s8378_s13 + $0x88] sm:$0xff]  }
0x1246   :  { %v4485_v44 = vmul.f32 %v8175_v63, %v4473_v21  ;;  %v6176_v21 = vld [vmem:[%s8378_s13 + $0x90] sm:$0xff]  }
0x1248   :  { %v4497_v0 = vadd.f32 %v8182_v62, %v4485_v44  ;;  %v6178_v44 = vld [vmem:[%s8378_s13 + $0x98] sm:$0xff]  }
0x124a   :  { %v4502_v39 = vpack.c.bf16 %v4497_v0, %v4496_v42  ;;  %v6179_v42 = vld [vmem:[%s8378_s13 + $0xe0] sm:$0xff]  }
0x124b   :  { %v6180_v0 = vld [vmem:[%s8378_s13 + $0xa0] sm:$0xff]  }
0x124c   :  { %5284 = vmatmul.mubr.msk.bf16.vlgmr.msra.gmra.mrb[104].mxu0 %vm191_vm2, %v4502_v39  ;;  %v6181_v39 = vld [vmem:[%s8378_s13 + $0xe8] sm:$0xff]  }
0x124d   :  { %4618 = vmatprep.mubr.bf16.mxu0 %v6531_v57 }
0x125c   :  { %v4390_v25 = vpop.xlane.xlu1 %4389 }
0x125d   :  { %v4402_v23 = vmul.f32 0.015625, %v4390_v25  ;;  %v6182_v25 = vld [vmem:[%s8378_s13 + $0xa8] sm:$0xff]  }
0x125e   :  { %v4393_v56 = vpop.xlane.xlu0 %4392 }
0x125f   :  { %v4403_v47 = vmul.f32 0.015625, %v4393_v56  ;;  %v4438_v37 = vmul.f32 %v4402_v23, %v4402_v23  ;;  %v6184_v56 = vld [vmem:[%s8378_s13 + $0xb0] sm:$0xff]  }
0x1260   :  { %v4420_v61 = vpop.xlane.xlu1 %4419 }
0x1261   :  { %v4432_v59 = vmul.f32 0.015625, %v4420_v61  ;;  %v4439_v35 = vmul.f32 %v4403_v47, %v4403_v47  ;;  %v4457_v41 = vsub.f32 %v8146_v40, %v4403_v47  ;;  %v6185_v47 = vld [vmem:[%s8378_s13 + $0xf8] sm:$0xff]  }
0x1262   :  { %v4423_v34 = vpop.xlane.xlu0 %4422  ;;  %v6186_v61 = vld [vmem:[%s8378_s13 + $0xb8] sm:$0xff]  }
0x1263   :  { %v4444_v27 = vsub.f32 %v4432_v59, %v4438_v37  ;;  %v4433_v19 = vmul.f32 0.015625, %v4423_v34  ;;  %v5275_v37 = vld [vmem:[%s8377_s12 + $0x2] sm:$0x3] }
0x1264   :  { %v6080_v43 = vpop.permute.xlu1 %6079  ;;  %v8258_v59 = vrot.slane %v5275_v37, %v6780_v28  ;;  %v8261_v34 = vrot.slane %v5275_v37, %v6785_v30 }
0x1265   :  { %v4450_v10 = vmax.f32 %v4444_v27, 0.0  ;;  %v4445_v36 = vsub.f32 %v4433_v19, %v4439_v35  ;;  %v6082_v60 = vunpack.i.h.bf16 %v6080_v43  ;;  %v6081_v18 = vunpack.i.l.bf16 %v6080_v43 }
0x1266   :  { %v6085_v2 = vpop.permute.xlu0 %6084 }
0x1267   :  { %v4462_v51 = vadd.f32 1e-06, %v4450_v10  ;;  %v4451_v49 = vmax.f32 %v4445_v36, 0.0  ;;  %v4249_v14 = vsel %vm500_vm3, %v8047_v5, %v6082_v60  ;;  %v4248_v12 = vsel %vm500_vm3, %v8049_v13, %v6081_v18 }
0x1268   :  { %v6087_v58 = vunpack.i.h.bf16 %v6085_v2  ;;  %v6086_v15 = vunpack.i.l.bf16 %v6085_v2  ;;  %v6090_v22 = vpop.permute.xlu1 %6089  ;;  %v4456_v13 = vsub.f32 %v8142_v4, %v4402_v23  ;;  %v6171_v4 = vld [vmem:[%s8378_s13 + $0xc0] sm:$0xff]   ;;  %v6183_v23 = vld [vmem:[%s8378_s13 + $0xf0] sm:$0xff]  }
0x1269   :  { %6447 = vrsqrt.f32 %v4462_v51  ;;  %v4463_v9 = vadd.f32 1e-06, %v4451_v49  ;;  %v6092_v31 = vunpack.i.h.bf16 %v6090_v22  ;;  %v6091_v54 = vunpack.i.l.bf16 %v6090_v22  ;;  %5511 = vmatprep.subr.bf16.mxu1 %v6171_v4 }
0x126a   :  { %v4252_v8 = vsel %vm1157_vm7, %v4249_v14, %v6087_v58  ;;  %v4251_v26 = vsel %vm1157_vm7, %v4248_v12, %v6086_v15  ;;  %5512 = vmatpush3.bf16.msra.mxu1 %v6172_v50 }
0x126b   :  { %6449 = vrsqrt.f32 %v4463_v9  ;;  %v4254_v16 = vsel %vm122_vm1, %v4251_v26, %v6091_v54  ;;  %v4255_v46 = vsel %vm122_vm1, %v4252_v8, %v6092_v31  ;;  %5513 = vmatprep.subr.bf16.mxu1 %v6173_v20 }
0x126c   :  { %v4258_v5 = vpack.c.bf16 %v4255_v46, %v4254_v16 }
0x126e   :  { %5829 = vmatmul.mubr.msk.bf16.gmra.mrb[104].mxu1 %vm191_vm2, %v4258_v5 }
0x126f   :  { %5514 = vmatpush3.bf16.msra.mxu1 %v6174_v45 }
0x1273   :  { %v6448_v11 = vpop.eup %6447 }
0x1274   :  { %v4474_v24 = vmul.f32 %v6448_v11, %v4456_v13 }
0x1275   :  { %v6450_v7 = vpop.eup %6449 }
0x1276   :  { %v4475_v53 = vmul.f32 %v6450_v7, %v4457_v41  ;;  %v4486_v6 = vmul.f32 %v8175_v63, %v4474_v24 }
0x1278   :  { %v4487_v52 = vmul.f32 %v8175_v63, %v4475_v53  ;;  %v4498_v38 = vadd.f32 %v8182_v62, %v4486_v6 }
0x127a   :  { %v4499_v17 = vadd.f32 %v8182_v62, %v4487_v52 }
0x127c   :  { %v4503_v29 = vpack.c.bf16 %v4499_v17, %v4498_v38 }
0x127e   :  { %5285 = vmatmul.mubr.msk.bf16.gmra.mrb[108].mxu0 %vm191_vm2, %v4503_v29 }
0x127f   :  { %4628 = vmatprep.mubr.bf16.mxu0 %v6531_v57  ;;  %v6175_v57 = vld [vmem:[%s8378_s13 + $0xd0] sm:$0xff]  }
0x1280   :  { %5515 = vmatprep.subr.bf16.mxu1 %v6175_v57 }
0x1281   :  { %5516 = vmatpush3.bf16.msra.mxu1 %v6176_v21 }
0x1282   :  { %5517 = vmatprep.subr.bf16.mxu1 %v6177_v48 }
0x1285   :  { %5518 = vmatpush3.bf16.msra.mxu1 %v6178_v44 }
0x1286   :  { %5519 = vmatprep.subr.bf16.mxu1 %v6179_v42 }
0x1289   :  { %5520 = vmatpush3.bf16.msra.mxu1 %v6180_v0 }
0x128a   :  { %5521 = vmatprep.subr.bf16.mxu1 %v6181_v39 }
0x128d   :  { %5522 = vmatpush3.bf16.msra.mxu1 %v6182_v25 }
0x128e   :  { %5523 = vmatprep.subr.bf16.mxu1 %v6183_v23 }
0x1291   :  { %5524 = vmatpush3.bf16.msra.mxu1 %v6184_v56 }
0x1292   :  { %5525 = vmatprep.subr.bf16.mxu1 %v6185_v47 }
0x1295   :  { %5526 = vmatpush3.bf16.msra.mxu1 %v6186_v61 }
0x131f   :  { %v4610_v35 = vpop.f32.mrb[104].mxu0 }
0x1320   :  { %v4611_v27 = vadd.f32 %v4610_v35, %v8258_v59  ;;  %v4612_v19 = vpop.f32.mrb[105].mxu0 }
0x1321   :  { %v4613_v43 = vadd.f32 %v4612_v19, %v8261_v34  ;;  %v4614_v10 = vpop.f32.mrb[106].mxu0 }
0x1322   :  { %v4651_v36 = vmul.f32 0.044715, %v4611_v27  ;;  %v4615_v60 = vadd.f32 %v4614_v10, %v8258_v59  ;;  %v4616_v18 = vpop.f32.mrb[107].mxu0  ;;  %v4639_v38 = vmul.f32 0.5, %v4611_v27 }
0x1323   :  { %v4652_v2 = vmul.f32 0.044715, %v4613_v43  ;;  %v4617_v51 = vadd.f32 %v4616_v18, %v8261_v34  ;;  %v4640_v4 = vmul.f32 0.5, %v4613_v43 }
0x1324   :  { %v4663_v49 = vmul.f32 %v4651_v36, %v4611_v27  ;;  %v4653_v28 = vmul.f32 0.044715, %v4615_v60  ;;  %v4641_v17 = vmul.f32 0.5, %v4615_v60 }
0x1325   :  { %v4664_v14 = vmul.f32 %v4652_v2, %v4613_v43  ;;  %v4654_v12 = vmul.f32 0.044715, %v4617_v51  ;;  %v4642_v50 = vmul.f32 0.5, %v4617_v51 }
0x1326   :  { %v4675_v30 = vmul.f32 %v4663_v49, %v4611_v27  ;;  %v4665_v58 = vmul.f32 %v4653_v28, %v4615_v60 }
0x1327   :  { %v4676_v15 = vmul.f32 %v4664_v14, %v4613_v43  ;;  %v4666_v22 = vmul.f32 %v4654_v12, %v4617_v51 }
0x1328   :  { %v4687_v9 = vadd.f32 %v4675_v30, %v4611_v27  ;;  %v4677_v31 = vmul.f32 %v4665_v58, %v4615_v60 }
0x1329   :  { %v4678_v54 = vmul.f32 %v4666_v22, %v4617_v51  ;;  %v4688_v8 = vadd.f32 %v4676_v15, %v4613_v43 }
0x132a   :  { %v4699_v26 = vmul.f32 0.7978846, %v4687_v9  ;;  %v4689_v16 = vadd.f32 %v4677_v31, %v4615_v60 }
0x132b   :  { %v4690_v46 = vadd.f32 %v4678_v54, %v4617_v51  ;;  %v4700_v5 = vmul.f32 0.7978846, %v4688_v8 }
0x132c   :  { %6451 = vtanh.f32 %v4699_v26  ;;  %v4701_v13 = vmul.f32 0.7978846, %v4689_v16 }
0x132d   :  { %v4702_v11 = vmul.f32 0.7978846, %v4690_v46  ;;  %6453 = vtanh.f32 %v4700_v5 }
0x132e   :  { %6455 = vtanh.f32 %v4701_v13 }
0x132f   :  { %6457 = vtanh.f32 %v4702_v11 }
0x1336   :  { %v6452_v41 = vpop.eup %6451 }
0x1337   :  { %v6454_v24 = vpop.eup %6453  ;;  %v4723_v7 = vadd.f32 1.0, %v6452_v41 }
0x1338   :  { %v6456_v53 = vpop.eup %6455  ;;  %v4724_v6 = vadd.f32 1.0, %v6454_v24 }
0x1339   :  { %v6458_v52 = vpop.eup %6457  ;;  %v4725_v29 = vadd.f32 1.0, %v6456_v53  ;;  %v4735_v45 = vmul.f32 %v4723_v7, %v4639_v38 }
0x133a   :  { %v4726_v20 = vadd.f32 1.0, %v6458_v52  ;;  %v4736_v21 = vmul.f32 %v4724_v6, %v4640_v4 }
0x133b   :  { %v4737_v57 = vmul.f32 %v4725_v29, %v4641_v17 }
0x133c   :  { %v4738_v48 = vmul.f32 %v4726_v20, %v4642_v50 }
0x133d   :  { %v4747_v44 = vpack.c.bf16 %v4737_v57, %v4735_v45 }
0x133e   :  { %v4748_v42 = vpack.c.bf16 %v4738_v48, %v4736_v21 }
0x1340   :  { %4914 = vmatprep.mubr.bf16.mxu1 %v4748_v42 }
0x1341   :  { %v4351_v0 = vpop.f32.mrb[104].mxu1  ;;  %4915 = vmatmul.mubr.bf16.vlgmr.msra.gmra.mrb[108].mxu1 %v4747_v44 }
0x1342   :  { %v4362_v39 = vadd.f32 %v4351_v0, %v7552_v55  ;;  %v5830_v25 = vpop.f32.mrb[105].mxu1 }
0x1343   :  { %v4354_v23 = vpop.f32.mrb[106].mxu1 }
0x1344   :  { %v8269_v56 = vadd.f32 %v8096_v3, %v4362_v39  ;;  %v4363_v47 = vadd.f32 %v4354_v23, %v7556_v32  ;;  %v5831_v61 = vpop.f32.mrb[107].mxu1 }
0x1346   :  { %v8273_v37 = vadd.f32 %v8096_v3, %v4363_v47  ;;  %v4394_v35 = vsel %vm191_vm2, %v8269_v56, 0.0  ;;  %v4410_v19 = vmul.f32 %v8269_v56, %v8269_v56 }
0x1347   :  { %4395 = vadd.xlane.f32.xlu1 %v4394_v35 }
0x1348   :  { %v4397_v27 = vsel %vm191_vm2, %v8273_v37, 0.0  ;;  %v4411_v55 = vmul.f32 %v8273_v37, %v8273_v37  ;;  %v4424_v3 = vsel %vm191_vm2, %v4410_v19, 0.0 }
0x1349   :  { %4398 = vadd.xlane.f32.xlu0 %v4397_v27 }
0x134a   :  { %v4427_v32 = vsel %vm191_vm2, %v4411_v55, 0.0 }
0x134b   :  { %4428 = vadd.xlane.f32.xlu1 %v4427_v32 }
0x134d   :  { %4425 = vadd.xlane.f32.xlu0 %v4424_v3 }
0x1351   :  { %v4620_v43 = vpop.f32.mrb[108].mxu0 }
0x1352   :  { %v4621_v10 = vadd.f32 %v4620_v43, %v8258_v59  ;;  %v4622_v36 = vpop.f32.mrb[109].mxu0 }
0x1353   :  { %v4623_v60 = vadd.f32 %v4622_v36, %v8261_v34  ;;  %v4624_v18 = vpop.f32.mrb[110].mxu0 }
0x1354   :  { %v4655_v2 = vmul.f32 0.044715, %v4621_v10  ;;  %v4625_v51 = vadd.f32 %v4624_v18, %v8258_v59  ;;  %v4626_v49 = vpop.f32.mrb[111].mxu0  ;;  %v4643_v4 = vmul.f32 0.5, %v4621_v10 }
0x1355   :  { %v4656_v28 = vmul.f32 0.044715, %v4623_v60  ;;  %v4627_v14 = vadd.f32 %v4626_v49, %v8261_v34  ;;  %v4644_v45 = vmul.f32 0.5, %v4623_v60 }
0x1356   :  { %v4667_v12 = vmul.f32 %v4655_v2, %v4621_v10  ;;  %v4657_v30 = vmul.f32 0.044715, %v4625_v51  ;;  %v4645_v50 = vmul.f32 0.5, %v4625_v51 }
0x1357   :  { %v4668_v58 = vmul.f32 %v4656_v28, %v4623_v60  ;;  %v4658_v15 = vmul.f32 0.044715, %v4627_v14  ;;  %v4646_v57 = vmul.f32 0.5, %v4627_v14 }
0x1358   :  { %v4679_v22 = vmul.f32 %v4667_v12, %v4621_v10  ;;  %v4669_v9 = vmul.f32 %v4657_v30, %v4625_v51 }
0x1359   :  { %v4680_v31 = vmul.f32 %v4668_v58, %v4623_v60  ;;  %v4670_v54 = vmul.f32 %v4658_v15, %v4627_v14 }
0x135a   :  { %v4681_v8 = vmul.f32 %v4669_v9, %v4625_v51  ;;  %v4691_v26 = vadd.f32 %v4679_v22, %v4621_v10 }
0x135b   :  { %v4682_v16 = vmul.f32 %v4670_v54, %v4627_v14  ;;  %v4692_v46 = vadd.f32 %v4680_v31, %v4623_v60 }
0x135c   :  { %v4693_v5 = vadd.f32 %v4681_v8, %v4625_v51  ;;  %v4703_v13 = vmul.f32 0.7978846, %v4691_v26 }
0x135d   :  { %v4694_v11 = vadd.f32 %v4682_v16, %v4627_v14  ;;  %v4704_v41 = vmul.f32 0.7978846, %v4692_v46 }
0x135e   :  { %v4705_v24 = vmul.f32 0.7978846, %v4693_v5  ;;  %6459 = vtanh.f32 %v4703_v13 }
0x135f   :  { %v4706_v7 = vmul.f32 0.7978846, %v4694_v11  ;;  %6461 = vtanh.f32 %v4704_v41 }
0x1360   :  { %6463 = vtanh.f32 %v4705_v24  ;;  %v5336_v24 = vld [vmem:[%s8379_s14 + $0x1] ss:$0 sm:$0xff] }
0x1361   :  { %6465 = vtanh.f32 %v4706_v7 }
0x1368   :  { %v6460_v53 = vpop.eup %6459 }
0x1369   :  { %v6462_v6 = vpop.eup %6461  ;;  %v4727_v52 = vadd.f32 1.0, %v6460_v53 }
0x136a   :  { %v6464_v38 = vpop.eup %6463  ;;  %v4728_v17 = vadd.f32 1.0, %v6462_v6 }
0x136b   :  { %v6466_v29 = vpop.eup %6465  ;;  %v4729_v20 = vadd.f32 1.0, %v6464_v38  ;;  %v4739_v48 = vmul.f32 %v4727_v52, %v4643_v4  ;;  %v6189_v4 = vld [vmem:[%s8382_s17 + $0x10] sm:$0xff]  }
0x136c   :  { %v4730_v21 = vadd.f32 1.0, %v6466_v29  ;;  %v4740_v42 = vmul.f32 %v4728_v17, %v4644_v45  ;;  %v6188_v29 = vld [vmem:[%s8382_s17 + $0x8] sm:$0xff]  }
0x136d   :  { %v4741_v44 = vmul.f32 %v4729_v20, %v4645_v50  ;;  %v6190_v50 = vld [vmem:[%s8382_s17 + $0x18] sm:$0xff]  }
0x136e   :  { %v4742_v0 = vmul.f32 %v4730_v21, %v4646_v57 }
0x136f   :  { %v4749_v39 = vpack.c.bf16 %v4741_v44, %v4739_v48 }
0x1370   :  { %v4750_v25 = vpack.c.bf16 %v4742_v0, %v4740_v42 }
0x1372   :  { %4921 = vmatprep.mubr.bf16.mxu1 %v4750_v25 }
0x1373   :  { %4922 = vmatmul.mubr.bf16.gmra.mrb[112].mxu1 %v4749_v39 }
0x13d4   :  { %v4396_v23 = vpop.xlane.xlu1 %4395 }
0x13d5   :  { %v4404_v61 = vmul.f32 0.015625, %v4396_v23 }
0x13d6   :  { %v4399_v47 = vpop.xlane.xlu0 %4398 }
0x13d7   :  { %v4405_v35 = vmul.f32 0.015625, %v4399_v47  ;;  %v4440_v3 = vmul.f32 %v4404_v61, %v4404_v61  ;;  %v4458_v14 = vsub.f32 %v8269_v56, %v4404_v61 }
0x13d8   :  { %v4429_v27 = vpop.xlane.xlu1 %4428 }
0x13d9   :  { %v4441_v55 = vmul.f32 %v4405_v35, %v4405_v35  ;;  %v4435_v19 = vmul.f32 0.015625, %v4429_v27  ;;  %v4459_v49 = vsub.f32 %v8273_v37, %v4405_v35 }
0x13da   :  { %v4426_v32 = vpop.xlane.xlu0 %4425 }
0x13db   :  { %v4447_v43 = vsub.f32 %v4435_v19, %v4441_v55  ;;  %v4434_v10 = vmul.f32 0.015625, %v4426_v32 }
0x13dd   :  { %v4453_v36 = vmax.f32 %v4447_v43, 0.0  ;;  %v4446_v60 = vsub.f32 %v4434_v10, %v4440_v3 }
0x13df   :  { %v4465_v18 = vadd.f32 1e-06, %v4453_v36  ;;  %v4452_v2 = vmax.f32 %v4446_v60, 0.0 }
0x13e1   :  { %6467 = vrsqrt.f32 %v4465_v18  ;;  %v4464_v51 = vadd.f32 1e-06, %v4452_v2 }
0x13e3   :  { %6469 = vrsqrt.f32 %v4464_v51 }
0x13eb   :  { %v6468_v28 = vpop.eup %6467 }
0x13ec   :  { %v4477_v12 = vmul.f32 %v6468_v28, %v4459_v49 }
0x13ed   :  { %v6470_v30 = vpop.eup %6469 }
0x13ee   :  { %v4476_v58 = vmul.f32 %v6470_v30, %v4458_v14  ;;  %v4489_v15 = vmul.f32 %v8175_v63, %v4477_v12 }
0x13f0   :  { %v4488_v22 = vmul.f32 %v8175_v63, %v4476_v58  ;;  %v4501_v31 = vadd.f32 %v8182_v62, %v4489_v15 }
0x13f2   :  { %v4500_v9 = vadd.f32 %v8182_v62, %v4488_v22 }
0x13f4   :  { %v4504_v54 = vpack.c.bf16 %v4501_v31, %v4500_v9 }
0x13f6   :  { %5286 = vmatmul.mubr.msk.bf16.gmra.mrb[112].mxu0 %vm191_vm2, %v4504_v54 }
0x13f7   :  { %5840 = vmatprep.mubr.msk.bf16.mxu0 %vm6530_vm0, %v6529_v1 }
0x1414   :  { %v5527_v37 = vpop.f32.mrb[108].mxu1 }
0x1415   :  { %v5528_v8 = vpop.f32.mrb[109].mxu1 }
0x1416   :  { %v5529_v56 = vadd.f32 %v5528_v8, %v5527_v37  ;;  %v5530_v26 = vpop.f32.mrb[110].mxu1 }
0x1417   :  { %v5531_v16 = vpop.f32.mrb[111].mxu1 }
0x1418   :  { %v4935_v41 = vadd.f32 %v5529_v56, %v8100_v33 }
0x141a   :  { %v4945_v53 = vadd.f32 %v5336_v24, %v4935_v41 }
0x1446   :  { %v5533_v46 = vpop.f32.mrb[112].mxu1 }
0x1447   :  { %v5534_v5 = vpop.f32.mrb[113].mxu1 }
0x1448   :  { %v5536_v13 = vpop.f32.mrb[114].mxu1 }
0x1449   :  { %v5537_v11 = vpop.f32.mrb[115].mxu1 }
0x144a   :  { %v5538_v63 = vadd.f32 %v5537_v11, %v5536_v13 }
0x144c   :  { %v4936_v62 = vadd.f32 %v5538_v63, %v8146_v40  ;;  %v6187_v40 = vld [vmem:[%s8382_s17] sm:$0xff]  }
0x144d   :  { %5833 = vmatpush3.bf16.msra.mxu0 %v6187_v40 }
0x144e   :  { %v4946_v7 = vadd.f32 %v5336_v24, %v4936_v62  ;;  %5834 = vmatprep.subr.bf16.mxu0 %v6529_v1 }
0x1450   :  { %v4948_v6 = vrot.slane %v4946_v7, 7 }
0x1451   :  { %5835 = vmatpush3.bf16.msra.mxu0 %v6188_v29 }
0x1452   :  { %v8303_v52 = vsel %vm4950_vm8, %v4945_v53, %v4948_v6  ;;  %5836 = vmatprep.subr.bf16.mxu0 %v6529_v1 }
0x1453   :  { %v4955_v38 = vsel %vm4954_vm9, %v8303_v52, 0.0  ;;  %v4959_v17 = vmul.f32 %v8303_v52, %v8303_v52 }
0x1454   :  { %4956 = vadd.xlane.f32.xlu0 %v4955_v38  ;;  %v5337_v38 = vld [vmem:[%s8380_s15] ss:$0 sm:$0xff] }
0x1455   :  { %v4960_v33 = vsel %vm4954_vm9, %v4959_v17, 0.0  ;;  %5837 = vmatpush3.bf16.msra.mxu0 %v6189_v4 }
0x1456   :  { %4961 = vadd.xlane.f32.xlu1 %v4960_v33  ;;  %5838 = vmatprep.subr.bf16.mxu0 %v6529_v1  ;;  %v5338_v33 = vld [vmem:[%s8381_s16] ss:$0 sm:$0xff] }
0x1459   :  { %5839 = vmatpush3.bf16.msra.mxu0 %v6190_v50 }
0x14c9   :  { %v4630_v20 = vpop.f32.mrb[112].mxu0 }
0x14ca   :  { %v4631_v45 = vadd.f32 %v4630_v20, %v8258_v59  ;;  %v4632_v57 = vpop.f32.mrb[113].mxu0 }
0x14cb   :  { %v4633_v21 = vadd.f32 %v4632_v57, %v8261_v34  ;;  %v4634_v48 = vpop.f32.mrb[114].mxu0 }
0x14cc   :  { %v4659_v44 = vmul.f32 0.044715, %v4631_v45  ;;  %v4635_v42 = vadd.f32 %v4634_v48, %v8258_v59  ;;  %v4636_v0 = vpop.f32.mrb[115].mxu0  ;;  %v4647_v31 = vmul.f32 0.5, %v4631_v45 }
0x14cd   :  { %v4660_v39 = vmul.f32 0.044715, %v4633_v21  ;;  %v4637_v25 = vadd.f32 %v4636_v0, %v8261_v34  ;;  %v4648_v9 = vmul.f32 0.5, %v4633_v21 }
0x14ce   :  { %v4671_v23 = vmul.f32 %v4659_v44, %v4631_v45  ;;  %v4661_v47 = vmul.f32 0.044715, %v4635_v42  ;;  %v4649_v54 = vmul.f32 0.5, %v4635_v42 }
0x14cf   :  { %v4672_v61 = vmul.f32 %v4660_v39, %v4633_v21  ;;  %v4662_v35 = vmul.f32 0.044715, %v4637_v25  ;;  %v4650_v26 = vmul.f32 0.5, %v4637_v25 }
0x14d0   :  { %v4683_v1 = vmul.f32 %v4671_v23, %v4631_v45  ;;  %v4673_v27 = vmul.f32 %v4661_v47, %v4635_v42 }
0x14d1   :  { %v4684_v55 = vmul.f32 %v4672_v61, %v4633_v21  ;;  %v4674_v19 = vmul.f32 %v4662_v35, %v4637_v25 }
0x14d2   :  { %v4685_v32 = vmul.f32 %v4673_v27, %v4635_v42  ;;  %v4695_v3 = vadd.f32 %v4683_v1, %v4631_v45 }
0x14d3   :  { %v4686_v43 = vmul.f32 %v4674_v19, %v4637_v25  ;;  %v4696_v10 = vadd.f32 %v4684_v55, %v4633_v21 }
0x14d4   :  { %v4697_v36 = vadd.f32 %v4685_v32, %v4635_v42  ;;  %v4707_v60 = vmul.f32 0.7978846, %v4695_v3 }
0x14d5   :  { %v4698_v18 = vadd.f32 %v4686_v43, %v4637_v25  ;;  %v4708_v59 = vmul.f32 0.7978846, %v4696_v10 }
0x14d6   :  { %v4709_v2 = vmul.f32 0.7978846, %v4697_v36  ;;  %6471 = vtanh.f32 %v4707_v60 }
0x14d7   :  { %v4710_v51 = vmul.f32 0.7978846, %v4698_v18  ;;  %6473 = vtanh.f32 %v4708_v59 }
0x14d8   :  { %6475 = vtanh.f32 %v4709_v2 }
0x14d9   :  { %6477 = vtanh.f32 %v4710_v51 }
0x14e0   :  { %v6472_v34 = vpop.eup %6471 }
0x14e1   :  { %v6474_v49 = vpop.eup %6473  ;;  %v4957_v28 = vpop.xlane.xlu0 %4956  ;;  %v4731_v14 = vadd.f32 1.0, %v6472_v34 }
0x14e2   :  { %v6476_v12 = vpop.eup %6475  ;;  %v4958_v30 = vmul.f32 0.015625, %v4957_v28  ;;  %v4732_v58 = vadd.f32 1.0, %v6474_v49 }
0x14e3   :  { %v6478_v15 = vpop.eup %6477  ;;  %v4962_v22 = vpop.xlane.xlu1 %4961  ;;  %v4733_v37 = vadd.f32 1.0, %v6476_v12  ;;  %v4743_v46 = vmul.f32 %v4731_v14, %v4647_v31 }
0x14e4   :  { %v4964_v8 = vmul.f32 %v4958_v30, %v4958_v30  ;;  %v4963_v56 = vmul.f32 0.015625, %v4962_v22  ;;  %v4734_v16 = vadd.f32 1.0, %v6478_v15  ;;  %v4744_v11 = vmul.f32 %v4732_v58, %v4648_v9 }
0x14e5   :  { %v4745_v5 = vmul.f32 %v4733_v37, %v4649_v54  ;;  %v4967_v53 = vsub.f32 %v8303_v52, %v4958_v30 }
0x14e6   :  { %v4965_v13 = vsub.f32 %v4963_v56, %v4964_v8  ;;  %v4746_v63 = vmul.f32 %v4734_v16, %v4650_v26 }
0x14e7   :  { %v4751_v41 = vpack.c.bf16 %v4745_v5, %v4743_v46 }
0x14e8   :  { %v4966_v62 = vmax.f32 %v4965_v13, 0.0  ;;  %v4752_v24 = vpack.c.bf16 %v4746_v63, %v4744_v11 }
0x14ea   :  { %v4968_v7 = vadd.f32 1e-06, %v4966_v62  ;;  %4928 = vmatprep.mubr.bf16.mxu1 %v4752_v24 }
0x14eb   :  { %4929 = vmatmul.mubr.bf16.gmra.mrb[116].mxu1 %v4751_v41 }
0x14ec   :  { %6479 = vrsqrt.f32 %v4968_v7 }
0x14f6   :  { %v6480_v6 = vpop.eup %6479 }
0x14f7   :  { %v4970_v17 = vmul.f32 %v6480_v6, %v4967_v53 }
0x14f9   :  { %v4977_v40 = vmul.f32 %v5337_v38, %v4970_v17 }
0x14fb   :  { %v4984_v29 = vadd.f32 %v5338_v33, %v4977_v40 }
0x14fd   :  { %4985 = vst.msk [vmem:[#allocation4] sm:$0x3] %vm4954_vm9, %v4984_v29  ;;  %v4986_v4 = vpack.c.bf16 %v4984_v29, %v4984_v29 }
0x14ff   :  { %5841 = vmatmul.mubr.msk.bf16.vlgmr.msra.gmra.mrb[116].mxu0 %vm191_vm2, %v4986_v4 }
0x1500   :  { %6492 = shalt.err (!%p6489_p4)
}
0x1501   :  { %s6493_s16 = scalar_lea.hbm %s8385_s20, 32 }
0x1502   :  { %p6494_p5 = scmp.ne.s32.totalorder %s8385_s20, %s6493_s16  ;;  %p6497_p6 = scmp.lt.u32.totalorder %s6493_s16, %s8385_s20 }
0x1504   :  { %p6499_p7 = pnand %p6497_p6, %p6494_p5 }
0x1506   :  { %6502 = shalt.err (!%p6499_p7)
}
0x1507   :  { %5089 = dma.vmem_to_hbm [thread:$0]  %s5087_s10, 32, %s8385_s20, [#allocation5]   ;;  %v5339_v57 = vld [vmem:[%s8383_s18] ss:$0 sm:$0xff] }
0x1508   :  { %s6541_s12 = smov [#allocation2]  }
0x1509   :  { %s5076_s13 = sshll.u32 %s6541_s12, 4  ;;  %s5077_s13 = int_to_ptr.vmem [resolvable:$true] %s5076_s13 }
0x150a   :  { %s6503_s4 = scalar_lea.vmem %s5077_s13, 32  ;;  %p6508_p9 = scmp.lt.s32.totalorder %s5077_s13, %s5077_s13 }
0x150b   :  { %p6504_p8 = scmp.ne.s32.totalorder %s5077_s13, %s6503_s4  ;;  %p6509_p10 = scmp.lt.s32.totalorder %s6503_s4, %s6503_s4 }
0x150d   :  { %p6510_p11 = por %p6509_p10, %p6508_p9 }
0x150f   :  { %p6511_p12 = pnand %p6510_p11, %p6504_p8 }
0x15be   :  { %v5539_v52 = vpop.f32.mrb[116].mxu1 }
0x15bf   :  { %v5540_v50 = vpop.f32.mrb[117].mxu1 }
0x15c0   :  { %v5542_v20 = vpop.f32.mrb[118].mxu1 }
0x15c1   :  { %v5543_v45 = vpop.f32.mrb[119].mxu1 }
0x15d2   :  { %v5063_v21 = vpop.f32.mrb[116].mxu0 }
0x15d3   :  { %v5064_v48 = vadd.f32 %v5339_v57, %v5063_v21  ;;  %v5842_v44 = vpop.f32.mrb[117].mxu0 }
0x15d4   :  { %v5066_v42 = vpop.f32.mrb[118].mxu0 }
0x15d5   :  { %5069 = vst [vmem:[#allocation2] sm:$0x3] %v5064_v48  ;;  %v5843_v0 = vpop.f32.mrb[119].mxu0 }
0x15d6   :  { %6514 = shalt.err (!%p6511_p12)
}
0x15d7   :  { %s6515_s18 = scalar_lea.hbm %s8384_s19, 32 }
0x15d8   :  { %p6516_p13 = scmp.ne.s32.totalorder %s8384_s19, %s6515_s18  ;;  %p6519_p0 = scmp.lt.u32.totalorder %s6515_s18, %s8384_s19 }
0x15da   :  { %p6521_p1 = pnand %p6519_p0, %p6516_p13 }
0x15dc   :  { %6524 = shalt.err (!%p6521_p1)
}
0x15dd   :  { %5079 = dma.vmem_to_hbm [thread:$0]  %s5077_s13, 32, %s8384_s19, [#allocation3]  }
0x15de   :  { %6525 = dma.done.wait [#allocation3], 32  }
0x15df   :  { %6526 = vsyncadd [#allocation3], 4294967264 }
0x15e0   :  { %6527 = dma.done.wait [#allocation5], 32  }
0x15e1   :  { %6528 = vsyncadd [#allocation5], 4294967264 }
0x15e2   :  { %5096 = vsyncpa [#allocation3], 1 }
0x15e3   :  { %5097 = vsyncpa [#allocation5], 1 }

</bundles_post_ra>
